<compile_context>
chip_gen: v6e
topology: v6e:2x2x1
jax: 0.10.0
libtpu: 0.0.40
codegen_flags: <defaults>
</compile_context>

<pallas_src>
import functools

import jax
import jax.numpy as jnp
from jax.experimental import pallas as pl
from jax.experimental.pallas import tpu as pltpu


# -----------------------------------------------------------------------------
# Fused Linear (+bias, optional ReLU) Pallas kernel
# -----------------------------------------------------------------------------
WEIGHT_DTYPE = jnp.bfloat16   # bf16 weights/activations, f32 accumulation
TM_CAP = 256                  # row tile (multiple of 16 for bf16 sublanes)
TN_CAP = 2048                 # output-feature tile
TK_CAP = 2048                 # reduction tile
# 48 MiB keeps the largest tile set (~24 MiB live, fully double-buffered) under
# v7x's 64 MiB/TensorCore and leaves Mosaic scratch headroom on every chip.
VMEM_LIMIT = 48 * 1024 * 1024


def _round_up(v, m):
    return (v + m - 1) // m * m


def _choose_tk(k):
    return min(TK_CAP, _round_up(k, 128))


def _choose_tn(n):
    nb = _round_up(n, 128)
    tn = min(TN_CAP, nb)
    # Ensure >= 2 output-column blocks when possible: with tiny M the j axis is
    # the only parallel grid axis, and v7x has 2 TensorCores to feed.  Harmless
    # (same tiles or slightly smaller) on single-TC v5e/v6e.
    if nb > 128 and nb // tn < 2:
        tn = _round_up((nb + 1) // 2, 128)
    return tn


def _linear_kernel(x_ref, w_ref, b_ref, o_ref, acc_ref, *, relu):
    k = pl.program_id(2)

    @pl.when(k == 0)
    def _():
        acc_ref[...] = jnp.zeros_like(acc_ref)

    acc_ref[...] += jnp.dot(
        x_ref[...], w_ref[...], preferred_element_type=jnp.float32
    )

    @pl.when(k == pl.num_programs(2) - 1)
    def _():
        out = acc_ref[...] + b_ref[...]      # bias block constant in k
        if relu:
            out = jnp.maximum(out, 0.0)
        o_ref[...] = out.astype(o_ref.dtype)


def _expand_rows(w, segments):
    """Insert zero weight rows so each logical input segment lands at its
    producer's padded offset.  segments: list of (logical_k, padded_k)."""
    parts, off = [], 0
    for k_log, k_pad in segments:
        seg = w[off:off + k_log]
        parts.append(jnp.pad(seg, ((0, k_pad - k_log), (0, 0))))
        off += k_log
    return jnp.concatenate(parts, axis=0)


def _pack_linear(w, b):
    """Pre-pad a (K, N) weight + (N,) bias ONCE to tile multiples, cast to bf16."""
    K, N = w.shape
    tk, tn = _choose_tk(K), _choose_tn(N)
    Kp, Np = _round_up(K, tk), _round_up(N, tn)
    wp = jnp.zeros((Kp, Np), WEIGHT_DTYPE).at[:K, :N].set(w.astype(WEIGHT_DTYPE))
    bp = jnp.zeros((1, Np), jnp.float32).at[0, :N].set(b.astype(jnp.float32))
    return {"w": wp, "b": bp}, {"n_out": N, "tk": tk, "tn": tn}


def pallas_linear(x, layer, lmeta, *, relu=False, rows=None, out_padded=False):
    """y = x @ W + b (optionally ReLU).

    x may be an already row/column padded bf16 activation from a previous
    pallas_linear (columns beyond the logical width multiply zero weight rows).
    With out_padded=True the full padded (Mp, Np) bf16 block is returned so the
    next linear consumes it with no slice / re-pad / f32 round trip.
    """
    wp, bp = layer["w"], layer["b"]
    n_out, tk, tn = lmeta["n_out"], lmeta["tk"], lmeta["tn"]
    Kp, Np = wp.shape
    M_in, K_in = x.shape
    M = M_in if rows is None else rows

    tm = min(TM_CAP, _round_up(max(M, 16), 16))
    Mp = _round_up(M, tm)

    xb = x.astype(WEIGHT_DTYPE)
    if K_in != Kp or M_in != Mp:
        xb = xb[:Mp, :Kp]
        xb = jnp.pad(xb, ((0, Mp - xb.shape[0]), (0, Kp - xb.shape[1])))

    odt = WEIGHT_DTYPE if out_padded else jnp.float32
    grid = (Mp // tm, Np // tn, Kp // tk)
    out = pl.pallas_call(
        functools.partial(_linear_kernel, relu=relu),
        out_shape=jax.ShapeDtypeStruct((Mp, Np), odt),
        grid_spec=pltpu.PrefetchScalarGridSpec(
            num_scalar_prefetch=0,
            grid=grid,
            in_specs=[
                pl.BlockSpec((tm, tk), lambda i, j, k: (i, k)),
                pl.BlockSpec((tk, tn), lambda i, j, k: (k, j)),
                pl.BlockSpec((1, tn), lambda i, j, k: (0, j)),
            ],
            out_specs=pl.BlockSpec((tm, tn), lambda i, j, k: (i, j)),
            scratch_shapes=[pltpu.VMEM((tm, tn), jnp.float32)],
        ),
        compiler_params=pltpu.CompilerParams(
            dimension_semantics=("parallel", "parallel", "arbitrary"),
            vmem_limit_bytes=VMEM_LIMIT,
        ),
    )(xb, wp, bp)
    if out_padded:
        return out
    return out[:M, :n_out]


# -----------------------------------------------------------------------------
# roi_align (torchvision semantics, aligned=False) as a Pallas kernel
# -----------------------------------------------------------------------------
# TODO(synk): torchvision's default adaptive sampling_ratio (= ceil(roi/bin))
# is data-dependent; a fixed sampling_ratio=2 is used here.
def _interp_matrix(starts, bins, out_size, s, size):
    """Per-ROI averaged bilinear interpolation matrix, shape (R, out_size, size)."""
    k = (jnp.arange(out_size * s, dtype=jnp.float32) + 0.5) / s     # (out*s,)
    pos = starts[:, None] + k[None, :] * bins[:, None]              # (R, out*s)
    valid = (pos >= -1.0) & (pos <= float(size))
    p = jnp.clip(pos, 0.0, float(size - 1))
    p0 = jnp.floor(p)
    p1 = jnp.minimum(p0 + 1.0, float(size - 1))
    lp = p - p0
    hp = 1.0 - lp
    idx = jnp.arange(size, dtype=jnp.float32)                       # (size,)
    w = (hp[..., None] * (idx == p0[..., None]).astype(jnp.float32)
         + lp[..., None] * (idx == p1[..., None]).astype(jnp.float32))
    w = w * valid[..., None].astype(jnp.float32)                    # (R, out*s, size)
    return w.reshape(starts.shape[0], out_size, s, size).mean(axis=2)


def _pool_matrix(areas, out_h, out_w, spatial_scale, H, W, sampling_ratio=2):
    """Per-ROI pooling matrix: pooled_flat = M @ feat_(H*W, C), M:(oh*ow, H*W)."""
    x1 = areas[:, 1] * spatial_scale
    y1 = areas[:, 2] * spatial_scale
    x2 = areas[:, 3] * spatial_scale
    y2 = areas[:, 4] * spatial_scale
    roi_w = jnp.maximum(x2 - x1, 1.0)
    roi_h = jnp.maximum(y2 - y1, 1.0)
    a_y = _interp_matrix(y1, roi_h / out_h, out_h, sampling_ratio, H)  # (R,oh,H)
    a_x = _interp_matrix(x1, roi_w / out_w, out_w, sampling_ratio, W)  # (R,ow,W)
    m = a_y[:, :, None, :, None] * a_x[:, None, :, None, :]           # (R,oh,ow,H,W)
    return m.reshape(areas.shape[0], out_h * out_w, H * W)


def _roi_pool_kernel(bidx_ref, m_ref, feat_ref, out_ref):
    del bidx_ref  # consumed by the feature index_map
    out_ref[0] = jnp.dot(
        m_ref[0], feat_ref[0], preferred_element_type=jnp.float32
    ).astype(out_ref.dtype)


def roi_pool_matmul(m, feat_flat, bidx):
    """pooled[r] = m[r] @ feat_flat[bidx[r]]  -> (R, oh*ow, C) bf16, C on lanes."""
    R, ohw, HW = m.shape
    B, _, C = feat_flat.shape
    del B
    return pl.pallas_call(
        _roi_pool_kernel,
        out_shape=jax.ShapeDtypeStruct((R, ohw, C), WEIGHT_DTYPE),
        grid_spec=pltpu.PrefetchScalarGridSpec(
            num_scalar_prefetch=1,
            grid=(R,),
            in_specs=[
                pl.BlockSpec((1, ohw, HW), lambda r, b: (r, 0, 0)),
                # per-ROI batch selection via scalar-prefetched index (no
                # one-hot fold, no re-DMA while the batch index is unchanged)
                pl.BlockSpec((1, HW, C), lambda r, b: (b[r], 0, 0)),
            ],
            out_specs=pl.BlockSpec((1, ohw, C), lambda r, b: (r, 0, 0)),
        ),
        compiler_params=pltpu.CompilerParams(
            dimension_semantics=("parallel",),
            vmem_limit_bytes=VMEM_LIMIT,
        ),
    )(bidx, m, feat_flat)


# -----------------------------------------------------------------------------
# Parameters (pre-padded, bf16) + static per-layer metadata
# -----------------------------------------------------------------------------
def init_params(key, feat_c, roi_size, side1, side2, n_class,
                hid_cls1, hid_side, hid_cls2):
    ks = iter(jax.random.split(key, 16))

    def lin_wb(din, dout, std=0.01):
        w = jax.random.normal(next(ks), (din, dout), jnp.float32) * std
        b = jnp.zeros((dout,), jnp.float32)
        return w, b

    params, meta = {}, {}

    def add(name, w, b):
        p, m = _pack_linear(w, b)
        params[name], meta[name] = p, m

    add("side_encoder_0", *lin_wb(feat_c * side1 * side2, hid_side))
    add("side_encoder_1", *lin_wb(hid_side, hid_side))
    add("classifier1_0", *lin_wb(feat_c * roi_size * roi_size, hid_cls1))
    add("classifier1_1", *lin_wb(hid_cls1, hid_cls1))
    # the four (hid_side, 1) loc heads stacked into one (hid_side, 4) weight;
    # column order: [left, right, top, bottom]
    add("loc", *lin_wb(hid_side, 4))

    # classifier2/score consume PADDED activations of their producers: expand
    # their weight rows to match the producers' padded output widths.
    p_se1 = params["side_encoder_1"]["w"].shape[1]
    w_c2, b_c2 = lin_wb(hid_side * 4, hid_cls2)
    add("classifier2_0", _expand_rows(w_c2, [(hid_side, p_se1)] * 4), b_c2)

    p_c11 = params["classifier1_1"]["w"].shape[1]
    p_c20 = params["classifier2_0"]["w"].shape[1]
    w_sc, b_sc = lin_wb(hid_cls1 + hid_cls2, n_class)
    add("score", _expand_rows(w_sc, [(hid_cls1, p_c11), (hid_cls2, p_c20)]), b_sc)

    return params, meta


# -----------------------------------------------------------------------------
# Forward pass (faithful to VGG16RoIHead_Side2.forward)
# -----------------------------------------------------------------------------
def vgg16_roihead_side2_forward(params, x0, x, rois, roi_indices, *, meta,
                                roi_size, spatial_scale, side1=3, side2=5):
    del x0  # unused by the reference forward (kept for signature parity)
    rois = rois.astype(jnp.float32)
    roi_indices = roi_indices.astype(jnp.float32)
    B, C, H, W = x.shape
    R = rois.shape[0]

    ind_rois = jnp.concatenate([roi_indices[:, None], rois], axis=1)
    ind_rois = ind_rois[:, jnp.array([0, 2, 1, 4, 3])]  # [idx, x1, y1, x2, y2]

    w_box = ind_rois[:, 3] - ind_rois[:, 1]
    h_box = ind_rois[:, 4] - ind_rois[:, 2]
    # NOTE: matches PyTorch: degenerate (<=0) boxes would give -inf/NaN there too.
    side_w = jnp.maximum(2.0 * jnp.log2(w_box), 0.2 * w_box)
    side_h = jnp.maximum(2.0 * jnp.log2(h_box), 0.2 * h_box)

    img_max = float(int(x.shape[-1] / spatial_scale))  # same as the reference

    def clamp(a):
        return a.at[:, 1:5].set(jnp.clip(a[:, 1:5], 0.0, img_max))

    areas_left = ind_rois
    areas_left = areas_left.at[:, 1].set(areas_left[:, 1] - 0.5 * side_w)
    areas_left = areas_left.at[:, 3].set(areas_left[:, 1] + 0.5 * side_w)
    areas_left = clamp(areas_left)

    areas_right = ind_rois
    areas_right = areas_right.at[:, 1].set(areas_right[:, 3] - 0.5 * side_w)
    areas_right = areas_right.at[:, 3].set(areas_right[:, 3] + 0.5 * side_w)
    areas_right = clamp(areas_right)

    areas_top = ind_rois
    areas_top = areas_top.at[:, 2].set(areas_top[:, 2] - 0.5 * side_h)
    areas_top = areas_top.at[:, 4].set(areas_top[:, 2] + 0.5 * side_h)
    areas_top = clamp(areas_top)

    areas_bottom = ind_rois
    areas_bottom = areas_bottom.at[:, 2].set(areas_bottom[:, 4] - 0.5 * side_h)
    areas_bottom = areas_bottom.at[:, 4].set(areas_bottom[:, 4] + 0.5 * side_h)
    areas_bottom = clamp(areas_bottom)

    # channel-last flattened feature map (bf16), prepared once per forward
    feat_flat = jnp.transpose(x, (0, 2, 3, 1)).reshape(B, H * W, C)
    feat_flat = feat_flat.astype(WEIGHT_DTYPE)
    bidx = ind_rois[:, 0].astype(jnp.int32)

    # ---- all four side pools in ONE Pallas roi_align launch (4R ROIs) ----
    m_side = jnp.concatenate([
        _pool_matrix(areas_left, side1, side2, spatial_scale, H, W),
        _pool_matrix(areas_right, side1, side2, spatial_scale, H, W),
        _pool_matrix(areas_top, side2, side1, spatial_scale, H, W),
        _pool_matrix(areas_bottom, side2, side1, spatial_scale, H, W),
    ], axis=0).astype(WEIGHT_DTYPE)                              # (4R, s1*s2, H*W)
    pool_all = roi_pool_matmul(m_side, feat_flat, jnp.tile(bidx, 4))
    pool_all = pool_all.reshape(4 * R, side1 * side2 * C)
    # NOTE: per-ROI features are flattened (oh, ow, C) channel-last instead of
    # PyTorch's (C, oh, ow); weights are initialized in-script so this is
    # equivalent up to a permutation of the random weights.

    # ---- shared side encoder, padded bf16 chaining between kernels ----
    h = pallas_linear(pool_all, params["side_encoder_0"], meta["side_encoder_0"],
                      relu=True, out_padded=True)
    fc_all = pallas_linear(h, params["side_encoder_1"], meta["side_encoder_1"],
                           relu=True, rows=4 * R, out_padded=True)  # (Mp, P) bf16
    fc_left, fc_right = fc_all[0:R], fc_all[R:2 * R]
    fc_top, fc_bottom = fc_all[2 * R:3 * R], fc_all[3 * R:4 * R]

    # ---- the four loc heads as one stacked (hid_side, 4) matmul ----
    diffs_all = pallas_linear(fc_all, params["loc"], meta["loc"],
                              rows=4 * R)                           # (4R, 4) f32
    diff_left = diffs_all[0:R, 0:1]
    diff_right = diffs_all[R:2 * R, 1:2]
    diff_top = diffs_all[2 * R:3 * R, 2:3]
    diff_bottom = diffs_all[3 * R:4 * R, 3:4]

    mean, std = 0.0, 0.1
    diff_left_bn = diff_left * std + mean
    diff_top_bn = diff_top * std + mean
    diff_right_bn = diff_right * std + mean
    diff_bottom_bn = diff_bottom * std + mean

    # sequential in-place semantics of the PyTorch code
    fine = ind_rois
    fine = fine.at[:, 1].set(
        diff_left_bn.reshape(-1) * (fine[:, 3] - fine[:, 1]) + fine[:, 1])
    fine = fine.at[:, 2].set(
        diff_top_bn.reshape(-1) * (fine[:, 4] - fine[:, 2]) + fine[:, 2])
    fine = fine.at[:, 3].set(
        diff_right_bn.reshape(-1) * (fine[:, 3] - fine[:, 1]) + fine[:, 3])
    fine = fine.at[:, 4].set(
        diff_bottom_bn.reshape(-1) * (fine[:, 4] - fine[:, 2]) + fine[:, 4])

    # ---- center pool (second Pallas roi_align launch) + classifier chain ----
    m_center = _pool_matrix(fine, roi_size, roi_size,
                            spatial_scale, H, W).astype(WEIGHT_DTYPE)
    pool_center = roi_pool_matmul(m_center, feat_flat, bidx)
    pool_center = pool_center.reshape(R, roi_size * roi_size * C)

    f_center = pallas_linear(pool_center, params["classifier1_0"],
                             meta["classifier1_0"], relu=True, out_padded=True)
    f_center = pallas_linear(f_center, params["classifier1_1"],
                             meta["classifier1_1"], relu=True, rows=R,
                             out_padded=True)

    pool_boundary = jnp.concatenate([fc_left, fc_right, fc_top, fc_bottom],
                                    axis=1)                          # padded bf16
    f_boundary = pallas_linear(pool_boundary, params["classifier2_0"],
                               meta["classifier2_0"], relu=True, out_padded=True)

    roi_scores = pallas_linear(
        jnp.concatenate([f_center, f_boundary], axis=1),
        params["score"], meta["score"], rows=R)

    diffs = jnp.concatenate([diff_left, diff_right, diff_top, diff_bottom],
                            axis=1)
    return diffs, roi_scores, fine[:, jnp.array([2, 1, 4, 3])]


# -----------------------------------------------------------------------------
# Demo
# -----------------------------------------------------------------------------
if __name__ == "__main__":
    # Small-shape stand-ins for the real module (512ch / 4096 / 2048 / 1024):
    FEAT_C, ROI_SIZE, SIDE1, SIDE2 = 32, 7, 3, 5
    HID_CLS1, HID_SIDE, HID_CLS2 = 256, 128, 64
    N_CLASS = 5
    SPATIAL_SCALE = 0.25
    B, H, W = 2, 16, 16
    R = 8

    key = jax.random.PRNGKey(0)
    kp, kx, kr1, kr2 = jax.random.split(key, 4)

    params, meta = init_params(kp, FEAT_C, ROI_SIZE, SIDE1, SIDE2, N_CLASS,
                               HID_CLS1, HID_SIDE, HID_CLS2)

    x = jax.random.normal(kx, (B, FEAT_C, H, W), jnp.float32)
    x0 = x  # unused by the forward pass
    # rois are [ymin, xmin, ymax, xmax] in image coordinates (image = 64x64)
    tl = jax.random.uniform(kr1, (R, 2), minval=0.0, maxval=28.0)
    wh = jax.random.uniform(kr2, (R, 2), minval=8.0, maxval=30.0)
    rois = jnp.concatenate([tl, tl + wh], axis=1).astype(jnp.float32)
    roi_indices = jnp.arange(R, dtype=jnp.int32) % B

    fwd = jax.jit(functools.partial(
        vgg16_roihead_side2_forward, meta=meta,
        roi_size=ROI_SIZE, spatial_scale=SPATIAL_SCALE,
        side1=SIDE1, side2=SIDE2))

    diffs, roi_scores, fine_rois_yx = fwd(params, x0, x, rois, roi_indices)
    jax.block_until_ready((diffs, roi_scores, fine_rois_yx))

    assert diffs.shape == (R, 4)
    assert roi_scores.shape == (R, N_CLASS)
    assert fine_rois_yx.shape == (R, 4)
    assert bool(jnp.all(jnp.isfinite(diffs)))
    assert bool(jnp.all(jnp.isfinite(roi_scores)))
    assert bool(jnp.all(jnp.isfinite(fine_rois_yx)))
    print("KERNEL_OK")
</pallas_src>

<mosaic_0001>
module attributes {stable_mosaic.version = 11 : i64} {
  func.func @_roi_pool_kernel(%arg0: i32, %arg1: memref<32xi32, #tpu.memory_space<smem>>, %arg2: memref<1x15x256xbf16, #tpu.memory_space<vmem>>, %arg3: memref<1x256x32xbf16, #tpu.memory_space<vmem>>, %arg4: memref<1x15x32xbf16, #tpu.memory_space<vmem>>) attributes {dimension_semantics = [#tpu.dimension_semantics<parallel>], iteration_bounds = array<i64: 32>, scalar_prefetch = 1 : i64, scratch_operands = 0 : i64, tpu.core_type = #tpu.core_type<tc>, window_params = [{transform_indices = @transform_0, window_bounds = array<i64: 1, 15, 256>}, {transform_indices = @transform_1, window_bounds = array<i64: 1, 256, 32>}, {transform_indices = @transform_2, window_bounds = array<i64: 1, 15, 32>}]} {
    %c0 = arith.constant 0 : index
    %c0_0 = arith.constant 0 : index
    %c0_1 = arith.constant 0 : index
    %0 = vector.load %arg2[%c0, %c0_0, %c0_1] : memref<1x15x256xbf16, #tpu.memory_space<vmem>>, vector<1x15x256xbf16>
    %1 = vector.shape_cast %0 : vector<1x15x256xbf16> to vector<15x256xbf16>
    %c0_2 = arith.constant 0 : index
    %c0_3 = arith.constant 0 : index
    %c0_4 = arith.constant 0 : index
    %2 = vector.load %arg3[%c0_2, %c0_3, %c0_4] : memref<1x256x32xbf16, #tpu.memory_space<vmem>>, vector<1x256x32xbf16>
    %3 = vector.shape_cast %2 : vector<1x256x32xbf16> to vector<256x32xbf16>
    %cst = arith.constant dense<0.000000e+00> : vector<15x32xf32>
    %4 = tpu.matmul %1, %3, %cst {dimension_numbers = #tpu.dot_dimension_numbers<[1], [0], [0], [1], [0, 0, 1, 1], [], []>} : vector<15x256xbf16>, vector<256x32xbf16>, vector<15x32xf32> -> vector<15x32xf32>
    %5 = arith.truncf %4 : vector<15x32xf32> to vector<15x32xbf16>
    %c0_5 = arith.constant 0 : index
    %c0_6 = arith.constant 0 : index
    %c0_7 = arith.constant 0 : index
    %6 = vector.load %arg4[%c0_5, %c0_6, %c0_7] : memref<1x15x32xbf16, #tpu.memory_space<vmem>>, vector<1x15x32xbf16>
    %7 = vector.shape_cast %6 : vector<1x15x32xbf16> to vector<15x32xbf16>
    %8 = vector.shape_cast %5 : vector<15x32xbf16> to vector<1x15x32xbf16>
    tpu.vector_store %arg4[%c0_5, %c0_6, %c0_7], %8 {strides = array<i32>} : memref<1x15x32xbf16, #tpu.memory_space<vmem>>, vector<1x15x32xbf16>,
    return
  }
  func.func @transform_0(%arg0: i32, %arg1: memref<32xi32, #tpu.memory_space<smem>>) -> (i32, i32, i32) {
    %c0_i32 = arith.constant 0 : i32
    %c0_i32_0 = arith.constant 0 : i32
    %c0_i32_1 = arith.constant 0 : i32
    return %arg0, %c0_i32, %c0_i32_0 : i32, i32, i32
  }
  func.func @transform_1(%arg0: i32, %arg1: memref<32xi32, #tpu.memory_space<smem>>) -> (i32, i32, i32) {
    %0 = arith.index_cast %arg0 : i32 to index
    %1 = memref.load %arg1[%0] : memref<32xi32, #tpu.memory_space<smem>>
    %c0_i32 = arith.constant 0 : i32
    %c0_i32_0 = arith.constant 0 : i32
    %c0_i32_1 = arith.constant 0 : i32
    return %1, %c0_i32, %c0_i32_0 : i32, i32, i32
  }
  func.func @transform_2(%arg0: i32, %arg1: memref<32xi32, #tpu.memory_space<smem>>) -> (i32, i32, i32) {
    %c0_i32 = arith.constant 0 : i32
    %c0_i32_0 = arith.constant 0 : i32
    %c0_i32_1 = arith.constant 0 : i32
    return %arg0, %c0_i32, %c0_i32_0 : i32, i32, i32
  }
}

module attributes {stable_mosaic.version = 11 : i64} {
  func.func @_linear_kernel(%arg0: i32, %arg1: i32, %arg2: i32, %arg3: memref<32x512xbf16, #tpu.memory_space<vmem>>, %arg4: memref<512x128xbf16, #tpu.memory_space<vmem>>, %arg5: memref<1x128xf32, #tpu.memory_space<vmem>>, %arg6: memref<32x128xbf16, #tpu.memory_space<vmem>>, %arg7: memref<32x128xf32, #tpu.memory_space<vmem>>) attributes {dimension_semantics = [#tpu.dimension_semantics<parallel>, #tpu.dimension_semantics<parallel>, #tpu.dimension_semantics<arbitrary>], iteration_bounds = array<i64: 1, 1, 1>, scalar_prefetch = 0 : i64, scratch_operands = 1 : i64, tpu.core_type = #tpu.core_type<tc>, window_params = [{transform_indices = @transform_0, window_bounds = array<i64: 32, 512>}, {transform_indices = @transform_1, window_bounds = array<i64: 512, 128>}, {transform_indices = @transform_2, window_bounds = array<i64: 1, 128>}, {transform_indices = @transform_3, window_bounds = array<i64: 32, 128>}]} {
    %c0_i32 = arith.constant 0 : i32
    %0 = arith.cmpi eq, %arg2, %c0_i32 : i32
    %1 = arith.extui %0 : i1 to i32
    %c0_i32_0 = arith.constant 0 : i32
    %2 = arith.cmpi ne, %1, %c0_i32_0 : i32
    scf.if %2 {
      %cst_10 = arith.constant 0.000000e+00 : f32
      %12 = vector.broadcast %cst_10 : f32 to vector<32x128xf32>
      %c0_11 = arith.constant 0 : index
      %c0_12 = arith.constant 0 : index
      %13 = vector.load %arg7[%c0_11, %c0_12] : memref<32x128xf32, #tpu.memory_space<vmem>>, vector<32x128xf32>
      tpu.vector_store %arg7[%c0_11, %c0_12], %12 {strides = array<i32>} : memref<32x128xf32, #tpu.memory_space<vmem>>, vector<32x128xf32>,
    } else {
    }
    %c0 = arith.constant 0 : index
    %c0_1 = arith.constant 0 : index
    %3 = vector.load %arg7[%c0, %c0_1] : memref<32x128xf32, #tpu.memory_space<vmem>>, vector<32x128xf32>
    %c0_2 = arith.constant 0 : index
    %c0_3 = arith.constant 0 : index
    %4 = vector.load %arg3[%c0_2, %c0_3] : memref<32x512xbf16, #tpu.memory_space<vmem>>, vector<32x512xbf16>
    %c0_4 = arith.constant 0 : index
    %c0_5 = arith.constant 0 : index
    %5 = vector.load %arg4[%c0_4, %c0_5] : memref<512x128xbf16, #tpu.memory_space<vmem>>, vector<512x128xbf16>
    %cst = arith.constant dense<0.000000e+00> : vector<32x128xf32>
    %6 = tpu.matmul %4, %5, %cst {dimension_numbers = #tpu.dot_dimension_numbers<[1], [0], [0], [1], [0, 0, 1, 1], [], []>} : vector<32x512xbf16>, vector<512x128xbf16>, vector<32x128xf32> -> vector<32x128xf32>
    %7 = arith.addf %3, %6 : vector<32x128xf32>
    %c0_6 = arith.constant 0 : index
    %c0_7 = arith.constant 0 : index
    %8 = vector.load %arg7[%c0_6, %c0_7] : memref<32x128xf32, #tpu.memory_space<vmem>>, vector<32x128xf32>
    tpu.vector_store %arg7[%c0_6, %c0_7], %7 {strides = array<i32>} : memref<32x128xf32, #tpu.memory_space<vmem>>, vector<32x128xf32>,
    %c0_i32_8 = arith.constant 0 : i32
    %9 = arith.cmpi eq, %arg2, %c0_i32_8 : i32
    %10 = arith.extui %9 : i1 to i32
    %c0_i32_9 = arith.constant 0 : i32
    %11 = arith.cmpi ne, %10, %c0_i32_9 : i32
    scf.if %11 {
      %c0_10 = arith.constant 0 : index
      %c0_11 = arith.constant 0 : index
      %12 = vector.load %arg7[%c0_10, %c0_11] : memref<32x128xf32, #tpu.memory_space<vmem>>, vector<32x128xf32>
      %c0_12 = arith.constant 0 : index
      %c0_13 = arith.constant 0 : index
      %13 = vector.load %arg5[%c0_12, %c0_13] : memref<1x128xf32, #tpu.memory_space<vmem>>, vector<1x128xf32>
      %14 = vector.broadcast %13 : vector<1x128xf32> to vector<32x128xf32>
      %15 = arith.addf %12, %14 : vector<32x128xf32>
      %cst_14 = arith.constant 0.000000e+00 : f32
      %16 = vector.broadcast %cst_14 : f32 to vector<32x128xf32>
      %17 = arith.maximumf %15, %16 : vector<32x128xf32>
      %18 = arith.truncf %17 : vector<32x128xf32> to vector<32x128xbf16>
      %c0_15 = arith.constant 0 : index
      %c0_16 = arith.constant 0 : index
      %19 = vector.load %arg6[%c0_15, %c0_16] : memref<32x128xbf16, #tpu.memory_space<vmem>>, vector<32x128xbf16>
      tpu.vector_store %arg6[%c0_15, %c0_16], %18 {strides = array<i32>} : memref<32x128xbf16, #tpu.memory_space<vmem>>, vector<32x128xbf16>,
    } else {
    }
    return
  }
  func.func @transform_0(%arg0: i32, %arg1: i32, %arg2: i32) -> (i32, i32) {
    %c0_i32 = arith.constant 0 : i32
    return %arg0, %arg2 : i32, i32
  }
  func.func @transform_1(%arg0: i32, %arg1: i32, %arg2: i32) -> (i32, i32) {
    %c0_i32 = arith.constant 0 : i32
    return %arg2, %arg1 : i32, i32
  }
  func.func @transform_2(%arg0: i32, %arg1: i32, %arg2: i32) -> (i32, i32) {
    %c0_i32 = arith.constant 0 : i32
    %c0_i32_0 = arith.constant 0 : i32
    return %c0_i32, %arg1 : i32, i32
  }
  func.func @transform_3(%arg0: i32, %arg1: i32, %arg2: i32) -> (i32, i32) {
    %c0_i32 = arith.constant 0 : i32
    return %arg0, %arg1 : i32, i32
  }
}

module attributes {stable_mosaic.version = 11 : i64} {
  func.func @_linear_kernel(%arg0: i32, %arg1: i32, %arg2: i32, %arg3: memref<32x128xbf16, #tpu.memory_space<vmem>>, %arg4: memref<128x128xbf16, #tpu.memory_space<vmem>>, %arg5: memref<1x128xf32, #tpu.memory_space<vmem>>, %arg6: memref<32x128xbf16, #tpu.memory_space<vmem>>, %arg7: memref<32x128xf32, #tpu.memory_space<vmem>>) attributes {dimension_semantics = [#tpu.dimension_semantics<parallel>, #tpu.dimension_semantics<parallel>, #tpu.dimension_semantics<arbitrary>], iteration_bounds = array<i64: 1, 1, 1>, scalar_prefetch = 0 : i64, scratch_operands = 1 : i64, tpu.core_type = #tpu.core_type<tc>, window_params = [{transform_indices = @transform_0, window_bounds = array<i64: 32, 128>}, {transform_indices = @transform_1, window_bounds = array<i64: 128, 128>}, {transform_indices = @transform_2, window_bounds = array<i64: 1, 128>}, {transform_indices = @transform_3, window_bounds = array<i64: 32, 128>}]} {
    %c0_i32 = arith.constant 0 : i32
    %0 = arith.cmpi eq, %arg2, %c0_i32 : i32
    %1 = arith.extui %0 : i1 to i32
    %c0_i32_0 = arith.constant 0 : i32
    %2 = arith.cmpi ne, %1, %c0_i32_0 : i32
    scf.if %2 {
      %cst_10 = arith.constant 0.000000e+00 : f32
      %12 = vector.broadcast %cst_10 : f32 to vector<32x128xf32>
      %c0_11 = arith.constant 0 : index
      %c0_12 = arith.constant 0 : index
      %13 = vector.load %arg7[%c0_11, %c0_12] : memref<32x128xf32, #tpu.memory_space<vmem>>, vector<32x128xf32>
      tpu.vector_store %arg7[%c0_11, %c0_12], %12 {strides = array<i32>} : memref<32x128xf32, #tpu.memory_space<vmem>>, vector<32x128xf32>,
    } else {
    }
    %c0 = arith.constant 0 : index
    %c0_1 = arith.constant 0 : index
    %3 = vector.load %arg7[%c0, %c0_1] : memref<32x128xf32, #tpu.memory_space<vmem>>, vector<32x128xf32>
    %c0_2 = arith.constant 0 : index
    %c0_3 = arith.constant 0 : index
    %4 = vector.load %arg3[%c0_2, %c0_3] : memref<32x128xbf16, #tpu.memory_space<vmem>>, vector<32x128xbf16>
    %c0_4 = arith.constant 0 : index
    %c0_5 = arith.constant 0 : index
    %5 = vector.load %arg4[%c0_4, %c0_5] : memref<128x128xbf16, #tpu.memory_space<vmem>>, vector<128x128xbf16>
    %cst = arith.constant dense<0.000000e+00> : vector<32x128xf32>
    %6 = tpu.matmul %4, %5, %cst {dimension_numbers = #tpu.dot_dimension_numbers<[1], [0], [0], [1], [0, 0, 1, 1], [], []>} : vector<32x128xbf16>, vector<128x128xbf16>, vector<32x128xf32> -> vector<32x128xf32>
    %7 = arith.addf %3, %6 : vector<32x128xf32>
    %c0_6 = arith.constant 0 : index
    %c0_7 = arith.constant 0 : index
    %8 = vector.load %arg7[%c0_6, %c0_7] : memref<32x128xf32, #tpu.memory_space<vmem>>, vector<32x128xf32>
    tpu.vector_store %arg7[%c0_6, %c0_7], %7 {strides = array<i32>} : memref<32x128xf32, #tpu.memory_space<vmem>>, vector<32x128xf32>,
    %c0_i32_8 = arith.constant 0 : i32
    %9 = arith.cmpi eq, %arg2, %c0_i32_8 : i32
    %10 = arith.extui %9 : i1 to i32
    %c0_i32_9 = arith.constant 0 : i32
    %11 = arith.cmpi ne, %10, %c0_i32_9 : i32
    scf.if %11 {
      %c0_10 = arith.constant 0 : index
      %c0_11 = arith.constant 0 : index
      %12 = vector.load %arg7[%c0_10, %c0_11] : memref<32x128xf32, #tpu.memory_space<vmem>>, vector<32x128xf32>
      %c0_12 = arith.constant 0 : index
      %c0_13 = arith.constant 0 : index
      %13 = vector.load %arg5[%c0_12, %c0_13] : memref<1x128xf32, #tpu.memory_space<vmem>>, vector<1x128xf32>
      %14 = vector.broadcast %13 : vector<1x128xf32> to vector<32x128xf32>
      %15 = arith.addf %12, %14 : vector<32x128xf32>
      %cst_14 = arith.constant 0.000000e+00 : f32
      %16 = vector.broadcast %cst_14 : f32 to vector<32x128xf32>
      %17 = arith.maximumf %15, %16 : vector<32x128xf32>
      %18 = arith.truncf %17 : vector<32x128xf32> to vector<32x128xbf16>
      %c0_15 = arith.constant 0 : index
      %c0_16 = arith.constant 0 : index
      %19 = vector.load %arg6[%c0_15, %c0_16] : memref<32x128xbf16, #tpu.memory_space<vmem>>, vector<32x128xbf16>
      tpu.vector_store %arg6[%c0_15, %c0_16], %18 {strides = array<i32>} : memref<32x128xbf16, #tpu.memory_space<vmem>>, vector<32x128xbf16>,
    } else {
    }
    return
  }
  func.func @transform_0(%arg0: i32, %arg1: i32, %arg2: i32) -> (i32, i32) {
    %c0_i32 = arith.constant 0 : i32
    return %arg0, %arg2 : i32, i32
  }
  func.func @transform_1(%arg0: i32, %arg1: i32, %arg2: i32) -> (i32, i32) {
    %c0_i32 = arith.constant 0 : i32
    return %arg2, %arg1 : i32, i32
  }
  func.func @transform_2(%arg0: i32, %arg1: i32, %arg2: i32) -> (i32, i32) {
    %c0_i32 = arith.constant 0 : i32
    %c0_i32_0 = arith.constant 0 : i32
    return %c0_i32, %arg1 : i32, i32
  }
  func.func @transform_3(%arg0: i32, %arg1: i32, %arg2: i32) -> (i32, i32) {
    %c0_i32 = arith.constant 0 : i32
    return %arg0, %arg1 : i32, i32
  }
}

module attributes {stable_mosaic.version = 11 : i64} {
  func.func @_linear_kernel(%arg0: i32, %arg1: i32, %arg2: i32, %arg3: memref<32x128xbf16, #tpu.memory_space<vmem>>, %arg4: memref<128x128xbf16, #tpu.memory_space<vmem>>, %arg5: memref<1x128xf32, #tpu.memory_space<vmem>>, %arg6: memref<32x128xf32, #tpu.memory_space<vmem>>, %arg7: memref<32x128xf32, #tpu.memory_space<vmem>>) attributes {dimension_semantics = [#tpu.dimension_semantics<parallel>, #tpu.dimension_semantics<parallel>, #tpu.dimension_semantics<arbitrary>], iteration_bounds = array<i64: 1, 1, 1>, scalar_prefetch = 0 : i64, scratch_operands = 1 : i64, tpu.core_type = #tpu.core_type<tc>, window_params = [{transform_indices = @transform_0, window_bounds = array<i64: 32, 128>}, {transform_indices = @transform_1, window_bounds = array<i64: 128, 128>}, {transform_indices = @transform_2, window_bounds = array<i64: 1, 128>}, {transform_indices = @transform_3, window_bounds = array<i64: 32, 128>}]} {
    %c0_i32 = arith.constant 0 : i32
    %0 = arith.cmpi eq, %arg2, %c0_i32 : i32
    %1 = arith.extui %0 : i1 to i32
    %c0_i32_0 = arith.constant 0 : i32
    %2 = arith.cmpi ne, %1, %c0_i32_0 : i32
    scf.if %2 {
      %cst_10 = arith.constant 0.000000e+00 : f32
      %12 = vector.broadcast %cst_10 : f32 to vector<32x128xf32>
      %c0_11 = arith.constant 0 : index
      %c0_12 = arith.constant 0 : index
      %13 = vector.load %arg7[%c0_11, %c0_12] : memref<32x128xf32, #tpu.memory_space<vmem>>, vector<32x128xf32>
      tpu.vector_store %arg7[%c0_11, %c0_12], %12 {strides = array<i32>} : memref<32x128xf32, #tpu.memory_space<vmem>>, vector<32x128xf32>,
    } else {
    }
    %c0 = arith.constant 0 : index
    %c0_1 = arith.constant 0 : index
    %3 = vector.load %arg7[%c0, %c0_1] : memref<32x128xf32, #tpu.memory_space<vmem>>, vector<32x128xf32>
    %c0_2 = arith.constant 0 : index
    %c0_3 = arith.constant 0 : index
    %4 = vector.load %arg3[%c0_2, %c0_3] : memref<32x128xbf16, #tpu.memory_space<vmem>>, vector<32x128xbf16>
    %c0_4 = arith.constant 0 : index
    %c0_5 = arith.constant 0 : index
    %5 = vector.load %arg4[%c0_4, %c0_5] : memref<128x128xbf16, #tpu.memory_space<vmem>>, vector<128x128xbf16>
    %cst = arith.constant dense<0.000000e+00> : vector<32x128xf32>
    %6 = tpu.matmul %4, %5, %cst {dimension_numbers = #tpu.dot_dimension_numbers<[1], [0], [0], [1], [0, 0, 1, 1], [], []>} : vector<32x128xbf16>, vector<128x128xbf16>, vector<32x128xf32> -> vector<32x128xf32>
    %7 = arith.addf %3, %6 : vector<32x128xf32>
    %c0_6 = arith.constant 0 : index
    %c0_7 = arith.constant 0 : index
    %8 = vector.load %arg7[%c0_6, %c0_7] : memref<32x128xf32, #tpu.memory_space<vmem>>, vector<32x128xf32>
    tpu.vector_store %arg7[%c0_6, %c0_7], %7 {strides = array<i32>} : memref<32x128xf32, #tpu.memory_space<vmem>>, vector<32x128xf32>,
    %c0_i32_8 = arith.constant 0 : i32
    %9 = arith.cmpi eq, %arg2, %c0_i32_8 : i32
    %10 = arith.extui %9 : i1 to i32
    %c0_i32_9 = arith.constant 0 : i32
    %11 = arith.cmpi ne, %10, %c0_i32_9 : i32
    scf.if %11 {
      %c0_10 = arith.constant 0 : index
      %c0_11 = arith.constant 0 : index
      %12 = vector.load %arg7[%c0_10, %c0_11] : memref<32x128xf32, #tpu.memory_space<vmem>>, vector<32x128xf32>
      %c0_12 = arith.constant 0 : index
      %c0_13 = arith.constant 0 : index
      %13 = vector.load %arg5[%c0_12, %c0_13] : memref<1x128xf32, #tpu.memory_space<vmem>>, vector<1x128xf32>
      %14 = vector.broadcast %13 : vector<1x128xf32> to vector<32x128xf32>
      %15 = arith.addf %12, %14 : vector<32x128xf32>
      %c0_14 = arith.constant 0 : index
      %c0_15 = arith.constant 0 : index
      %16 = vector.load %arg6[%c0_14, %c0_15] : memref<32x128xf32, #tpu.memory_space<vmem>>, vector<32x128xf32>
      tpu.vector_store %arg6[%c0_14, %c0_15], %15 {strides = array<i32>} : memref<32x128xf32, #tpu.memory_space<vmem>>, vector<32x128xf32>,
    } else {
    }
    return
  }
  func.func @transform_0(%arg0: i32, %arg1: i32, %arg2: i32) -> (i32, i32) {
    %c0_i32 = arith.constant 0 : i32
    return %arg0, %arg2 : i32, i32
  }
  func.func @transform_1(%arg0: i32, %arg1: i32, %arg2: i32) -> (i32, i32) {
    %c0_i32 = arith.constant 0 : i32
    return %arg2, %arg1 : i32, i32
  }
  func.func @transform_2(%arg0: i32, %arg1: i32, %arg2: i32) -> (i32, i32) {
    %c0_i32 = arith.constant 0 : i32
    %c0_i32_0 = arith.constant 0 : i32
    return %c0_i32, %arg1 : i32, i32
  }
  func.func @transform_3(%arg0: i32, %arg1: i32, %arg2: i32) -> (i32, i32) {
    %c0_i32 = arith.constant 0 : i32
    return %arg0, %arg1 : i32, i32
  }
}

module attributes {stable_mosaic.version = 11 : i64} {
  func.func @_linear_kernel(%arg0: i32, %arg1: i32, %arg2: i32, %arg3: memref<16x512xbf16, #tpu.memory_space<vmem>>, %arg4: memref<512x128xbf16, #tpu.memory_space<vmem>>, %arg5: memref<1x128xf32, #tpu.memory_space<vmem>>, %arg6: memref<16x128xbf16, #tpu.memory_space<vmem>>, %arg7: memref<16x128xf32, #tpu.memory_space<vmem>>) attributes {dimension_semantics = [#tpu.dimension_semantics<parallel>, #tpu.dimension_semantics<parallel>, #tpu.dimension_semantics<arbitrary>], iteration_bounds = array<i64: 1, 1, 1>, scalar_prefetch = 0 : i64, scratch_operands = 1 : i64, tpu.core_type = #tpu.core_type<tc>, window_params = [{transform_indices = @transform_0, window_bounds = array<i64: 16, 512>}, {transform_indices = @transform_1, window_bounds = array<i64: 512, 128>}, {transform_indices = @transform_2, window_bounds = array<i64: 1, 128>}, {transform_indices = @transform_3, window_bounds = array<i64: 16, 128>}]} {
    %c0_i32 = arith.constant 0 : i32
    %0 = arith.cmpi eq, %arg2, %c0_i32 : i32
    %1 = arith.extui %0 : i1 to i32
    %c0_i32_0 = arith.constant 0 : i32
    %2 = arith.cmpi ne, %1, %c0_i32_0 : i32
    scf.if %2 {
      %cst_10 = arith.constant 0.000000e+00 : f32
      %12 = vector.broadcast %cst_10 : f32 to vector<16x128xf32>
      %c0_11 = arith.constant 0 : index
      %c0_12 = arith.constant 0 : index
      %13 = vector.load %arg7[%c0_11, %c0_12] : memref<16x128xf32, #tpu.memory_space<vmem>>, vector<16x128xf32>
      tpu.vector_store %arg7[%c0_11, %c0_12], %12 {strides = array<i32>} : memref<16x128xf32, #tpu.memory_space<vmem>>, vector<16x128xf32>,
    } else {
    }
    %c0 = arith.constant 0 : index
    %c0_1 = arith.constant 0 : index
    %3 = vector.load %arg7[%c0, %c0_1] : memref<16x128xf32, #tpu.memory_space<vmem>>, vector<16x128xf32>
    %c0_2 = arith.constant 0 : index
    %c0_3 = arith.constant 0 : index
    %4 = vector.load %arg3[%c0_2, %c0_3] : memref<16x512xbf16, #tpu.memory_space<vmem>>, vector<16x512xbf16>
    %c0_4 = arith.constant 0 : index
    %c0_5 = arith.constant 0 : index
    %5 = vector.load %arg4[%c0_4, %c0_5] : memref<512x128xbf16, #tpu.memory_space<vmem>>, vector<512x128xbf16>
    %cst = arith.constant dense<0.000000e+00> : vector<16x128xf32>
    %6 = tpu.matmul %4, %5, %cst {dimension_numbers = #tpu.dot_dimension_numbers<[1], [0], [0], [1], [0, 0, 1, 1], [], []>} : vector<16x512xbf16>, vector<512x128xbf16>, vector<16x128xf32> -> vector<16x128xf32>
    %7 = arith.addf %3, %6 : vector<16x128xf32>
    %c0_6 = arith.constant 0 : index
    %c0_7 = arith.constant 0 : index
    %8 = vector.load %arg7[%c0_6, %c0_7] : memref<16x128xf32, #tpu.memory_space<vmem>>, vector<16x128xf32>
    tpu.vector_store %arg7[%c0_6, %c0_7], %7 {strides = array<i32>} : memref<16x128xf32, #tpu.memory_space<vmem>>, vector<16x128xf32>,
    %c0_i32_8 = arith.constant 0 : i32
    %9 = arith.cmpi eq, %arg2, %c0_i32_8 : i32
    %10 = arith.extui %9 : i1 to i32
    %c0_i32_9 = arith.constant 0 : i32
    %11 = arith.cmpi ne, %10, %c0_i32_9 : i32
    scf.if %11 {
      %c0_10 = arith.constant 0 : index
      %c0_11 = arith.constant 0 : index
      %12 = vector.load %arg7[%c0_10, %c0_11] : memref<16x128xf32, #tpu.memory_space<vmem>>, vector<16x128xf32>
      %c0_12 = arith.constant 0 : index
      %c0_13 = arith.constant 0 : index
      %13 = vector.load %arg5[%c0_12, %c0_13] : memref<1x128xf32, #tpu.memory_space<vmem>>, vector<1x128xf32>
      %14 = vector.broadcast %13 : vector<1x128xf32> to vector<16x128xf32>
      %15 = arith.addf %12, %14 : vector<16x128xf32>
      %cst_14 = arith.constant 0.000000e+00 : f32
      %16 = vector.broadcast %cst_14 : f32 to vector<16x128xf32>
      %17 = arith.maximumf %15, %16 : vector<16x128xf32>
      %18 = arith.truncf %17 : vector<16x128xf32> to vector<16x128xbf16>
      %c0_15 = arith.constant 0 : index
      %c0_16 = arith.constant 0 : index
      %19 = vector.load %arg6[%c0_15, %c0_16] : memref<16x128xbf16, #tpu.memory_space<vmem>>, vector<16x128xbf16>
      tpu.vector_store %arg6[%c0_15, %c0_16], %18 {strides = array<i32>} : memref<16x128xbf16, #tpu.memory_space<vmem>>, vector<16x128xbf16>,
    } else {
    }
    return
  }
  func.func @transform_0(%arg0: i32, %arg1: i32, %arg2: i32) -> (i32, i32) {
    %c0_i32 = arith.constant 0 : i32
    return %arg0, %arg2 : i32, i32
  }
  func.func @transform_1(%arg0: i32, %arg1: i32, %arg2: i32) -> (i32, i32) {
    %c0_i32 = arith.constant 0 : i32
    return %arg2, %arg1 : i32, i32
  }
  func.func @transform_2(%arg0: i32, %arg1: i32, %arg2: i32) -> (i32, i32) {
    %c0_i32 = arith.constant 0 : i32
    %c0_i32_0 = arith.constant 0 : i32
    return %c0_i32, %arg1 : i32, i32
  }
  func.func @transform_3(%arg0: i32, %arg1: i32, %arg2: i32) -> (i32, i32) {
    %c0_i32 = arith.constant 0 : i32
    return %arg0, %arg1 : i32, i32
  }
}

module attributes {stable_mosaic.version = 11 : i64} {
  func.func @_roi_pool_kernel(%arg0: i32, %arg1: memref<8xi32, #tpu.memory_space<smem>>, %arg2: memref<1x49x256xbf16, #tpu.memory_space<vmem>>, %arg3: memref<1x256x32xbf16, #tpu.memory_space<vmem>>, %arg4: memref<1x49x32xbf16, #tpu.memory_space<vmem>>) attributes {dimension_semantics = [#tpu.dimension_semantics<parallel>], iteration_bounds = array<i64: 8>, scalar_prefetch = 1 : i64, scratch_operands = 0 : i64, tpu.core_type = #tpu.core_type<tc>, window_params = [{transform_indices = @transform_0, window_bounds = array<i64: 1, 49, 256>}, {transform_indices = @transform_1, window_bounds = array<i64: 1, 256, 32>}, {transform_indices = @transform_2, window_bounds = array<i64: 1, 49, 32>}]} {
    %c0 = arith.constant 0 : index
    %c0_0 = arith.constant 0 : index
    %c0_1 = arith.constant 0 : index
    %0 = vector.load %arg2[%c0, %c0_0, %c0_1] : memref<1x49x256xbf16, #tpu.memory_space<vmem>>, vector<1x49x256xbf16>
    %1 = vector.shape_cast %0 : vector<1x49x256xbf16> to vector<49x256xbf16>
    %c0_2 = arith.constant 0 : index
    %c0_3 = arith.constant 0 : index
    %c0_4 = arith.constant 0 : index
    %2 = vector.load %arg3[%c0_2, %c0_3, %c0_4] : memref<1x256x32xbf16, #tpu.memory_space<vmem>>, vector<1x256x32xbf16>
    %3 = vector.shape_cast %2 : vector<1x256x32xbf16> to vector<256x32xbf16>
    %cst = arith.constant dense<0.000000e+00> : vector<49x32xf32>
    %4 = tpu.matmul %1, %3, %cst {dimension_numbers = #tpu.dot_dimension_numbers<[1], [0], [0], [1], [0, 0, 1, 1], [], []>} : vector<49x256xbf16>, vector<256x32xbf16>, vector<49x32xf32> -> vector<49x32xf32>
    %5 = arith.truncf %4 : vector<49x32xf32> to vector<49x32xbf16>
    %c0_5 = arith.constant 0 : index
    %c0_6 = arith.constant 0 : index
    %c0_7 = arith.constant 0 : index
    %6 = vector.load %arg4[%c0_5, %c0_6, %c0_7] : memref<1x49x32xbf16, #tpu.memory_space<vmem>>, vector<1x49x32xbf16>
    %7 = vector.shape_cast %6 : vector<1x49x32xbf16> to vector<49x32xbf16>
    %8 = vector.shape_cast %5 : vector<49x32xbf16> to vector<1x49x32xbf16>
    tpu.vector_store %arg4[%c0_5, %c0_6, %c0_7], %8 {strides = array<i32>} : memref<1x49x32xbf16, #tpu.memory_space<vmem>>, vector<1x49x32xbf16>,
    return
  }
  func.func @transform_0(%arg0: i32, %arg1: memref<8xi32, #tpu.memory_space<smem>>) -> (i32, i32, i32) {
    %c0_i32 = arith.constant 0 : i32
    %c0_i32_0 = arith.constant 0 : i32
    %c0_i32_1 = arith.constant 0 : i32
    return %arg0, %c0_i32, %c0_i32_0 : i32, i32, i32
  }
  func.func @transform_1(%arg0: i32, %arg1: memref<8xi32, #tpu.memory_space<smem>>) -> (i32, i32, i32) {
    %0 = arith.index_cast %arg0 : i32 to index
    %1 = memref.load %arg1[%0] : memref<8xi32, #tpu.memory_space<smem>>
    %c0_i32 = arith.constant 0 : i32
    %c0_i32_0 = arith.constant 0 : i32
    %c0_i32_1 = arith.constant 0 : i32
    return %1, %c0_i32, %c0_i32_0 : i32, i32, i32
  }
  func.func @transform_2(%arg0: i32, %arg1: memref<8xi32, #tpu.memory_space<smem>>) -> (i32, i32, i32) {
    %c0_i32 = arith.constant 0 : i32
    %c0_i32_0 = arith.constant 0 : i32
    %c0_i32_1 = arith.constant 0 : i32
    return %arg0, %c0_i32, %c0_i32_0 : i32, i32, i32
  }
}

module attributes {stable_mosaic.version = 11 : i64} {
  func.func @_linear_kernel(%arg0: i32, %arg1: i32, %arg2: i32, %arg3: memref<16x256xbf16, #tpu.memory_space<vmem>>, %arg4: memref<256x128xbf16, #tpu.memory_space<vmem>>, %arg5: memref<1x128xf32, #tpu.memory_space<vmem>>, %arg6: memref<16x128xbf16, #tpu.memory_space<vmem>>, %arg7: memref<16x128xf32, #tpu.memory_space<vmem>>) attributes {dimension_semantics = [#tpu.dimension_semantics<parallel>, #tpu.dimension_semantics<parallel>, #tpu.dimension_semantics<arbitrary>], iteration_bounds = array<i64: 1, 2, 1>, scalar_prefetch = 0 : i64, scratch_operands = 1 : i64, tpu.core_type = #tpu.core_type<tc>, window_params = [{transform_indices = @transform_0, window_bounds = array<i64: 16, 256>}, {transform_indices = @transform_1, window_bounds = array<i64: 256, 128>}, {transform_indices = @transform_2, window_bounds = array<i64: 1, 128>}, {transform_indices = @transform_3, window_bounds = array<i64: 16, 128>}]} {
    %c0_i32 = arith.constant 0 : i32
    %0 = arith.cmpi eq, %arg2, %c0_i32 : i32
    %1 = arith.extui %0 : i1 to i32
    %c0_i32_0 = arith.constant 0 : i32
    %2 = arith.cmpi ne, %1, %c0_i32_0 : i32
    scf.if %2 {
      %cst_10 = arith.constant 0.000000e+00 : f32
      %12 = vector.broadcast %cst_10 : f32 to vector<16x128xf32>
      %c0_11 = arith.constant 0 : index
      %c0_12 = arith.constant 0 : index
      %13 = vector.load %arg7[%c0_11, %c0_12] : memref<16x128xf32, #tpu.memory_space<vmem>>, vector<16x128xf32>
      tpu.vector_store %arg7[%c0_11, %c0_12], %12 {strides = array<i32>} : memref<16x128xf32, #tpu.memory_space<vmem>>, vector<16x128xf32>,
    } else {
    }
    %c0 = arith.constant 0 : index
    %c0_1 = arith.constant 0 : index
    %3 = vector.load %arg7[%c0, %c0_1] : memref<16x128xf32, #tpu.memory_space<vmem>>, vector<16x128xf32>
    %c0_2 = arith.constant 0 : index
    %c0_3 = arith.constant 0 : index
    %4 = vector.load %arg3[%c0_2, %c0_3] : memref<16x256xbf16, #tpu.memory_space<vmem>>, vector<16x256xbf16>
    %c0_4 = arith.constant 0 : index
    %c0_5 = arith.constant 0 : index
    %5 = vector.load %arg4[%c0_4, %c0_5] : memref<256x128xbf16, #tpu.memory_space<vmem>>, vector<256x128xbf16>
    %cst = arith.constant dense<0.000000e+00> : vector<16x128xf32>
    %6 = tpu.matmul %4, %5, %cst {dimension_numbers = #tpu.dot_dimension_numbers<[1], [0], [0], [1], [0, 0, 1, 1], [], []>} : vector<16x256xbf16>, vector<256x128xbf16>, vector<16x128xf32> -> vector<16x128xf32>
    %7 = arith.addf %3, %6 : vector<16x128xf32>
    %c0_6 = arith.constant 0 : index
    %c0_7 = arith.constant 0 : index
    %8 = vector.load %arg7[%c0_6, %c0_7] : memref<16x128xf32, #tpu.memory_space<vmem>>, vector<16x128xf32>
    tpu.vector_store %arg7[%c0_6, %c0_7], %7 {strides = array<i32>} : memref<16x128xf32, #tpu.memory_space<vmem>>, vector<16x128xf32>,
    %c0_i32_8 = arith.constant 0 : i32
    %9 = arith.cmpi eq, %arg2, %c0_i32_8 : i32
    %10 = arith.extui %9 : i1 to i32
    %c0_i32_9 = arith.constant 0 : i32
    %11 = arith.cmpi ne, %10, %c0_i32_9 : i32
    scf.if %11 {
      %c0_10 = arith.constant 0 : index
      %c0_11 = arith.constant 0 : index
      %12 = vector.load %arg7[%c0_10, %c0_11] : memref<16x128xf32, #tpu.memory_space<vmem>>, vector<16x128xf32>
      %c0_12 = arith.constant 0 : index
      %c0_13 = arith.constant 0 : index
      %13 = vector.load %arg5[%c0_12, %c0_13] : memref<1x128xf32, #tpu.memory_space<vmem>>, vector<1x128xf32>
      %14 = vector.broadcast %13 : vector<1x128xf32> to vector<16x128xf32>
      %15 = arith.addf %12, %14 : vector<16x128xf32>
      %cst_14 = arith.constant 0.000000e+00 : f32
      %16 = vector.broadcast %cst_14 : f32 to vector<16x128xf32>
      %17 = arith.maximumf %15, %16 : vector<16x128xf32>
      %18 = arith.truncf %17 : vector<16x128xf32> to vector<16x128xbf16>
      %c0_15 = arith.constant 0 : index
      %c0_16 = arith.constant 0 : index
      %19 = vector.load %arg6[%c0_15, %c0_16] : memref<16x128xbf16, #tpu.memory_space<vmem>>, vector<16x128xbf16>
      tpu.vector_store %arg6[%c0_15, %c0_16], %18 {strides = array<i32>} : memref<16x128xbf16, #tpu.memory_space<vmem>>, vector<16x128xbf16>,
    } else {
    }
    return
  }
  func.func @transform_0(%arg0: i32, %arg1: i32, %arg2: i32) -> (i32, i32) {
    %c0_i32 = arith.constant 0 : i32
    return %arg0, %arg2 : i32, i32
  }
  func.func @transform_1(%arg0: i32, %arg1: i32, %arg2: i32) -> (i32, i32) {
    %c0_i32 = arith.constant 0 : i32
    return %arg2, %arg1 : i32, i32
  }
  func.func @transform_2(%arg0: i32, %arg1: i32, %arg2: i32) -> (i32, i32) {
    %c0_i32 = arith.constant 0 : i32
    %c0_i32_0 = arith.constant 0 : i32
    return %c0_i32, %arg1 : i32, i32
  }
  func.func @transform_3(%arg0: i32, %arg1: i32, %arg2: i32) -> (i32, i32) {
    %c0_i32 = arith.constant 0 : i32
    return %arg0, %arg1 : i32, i32
  }
}

module attributes {stable_mosaic.version = 11 : i64} {
  func.func @_linear_kernel(%arg0: i32, %arg1: i32, %arg2: i32, %arg3: memref<16x1664xbf16, #tpu.memory_space<vmem>>, %arg4: memref<1664x128xbf16, #tpu.memory_space<vmem>>, %arg5: memref<1x128xf32, #tpu.memory_space<vmem>>, %arg6: memref<16x128xbf16, #tpu.memory_space<vmem>>, %arg7: memref<16x128xf32, #tpu.memory_space<vmem>>) attributes {dimension_semantics = [#tpu.dimension_semantics<parallel>, #tpu.dimension_semantics<parallel>, #tpu.dimension_semantics<arbitrary>], iteration_bounds = array<i64: 1, 2, 1>, scalar_prefetch = 0 : i64, scratch_operands = 1 : i64, tpu.core_type = #tpu.core_type<tc>, window_params = [{transform_indices = @transform_0, window_bounds = array<i64: 16, 1664>}, {transform_indices = @transform_1, window_bounds = array<i64: 1664, 128>}, {transform_indices = @transform_2, window_bounds = array<i64: 1, 128>}, {transform_indices = @transform_3, window_bounds = array<i64: 16, 128>}]} {
    %c0_i32 = arith.constant 0 : i32
    %0 = arith.cmpi eq, %arg2, %c0_i32 : i32
    %1 = arith.extui %0 : i1 to i32
    %c0_i32_0 = arith.constant 0 : i32
    %2 = arith.cmpi ne, %1, %c0_i32_0 : i32
    scf.if %2 {
      %cst_10 = arith.constant 0.000000e+00 : f32
      %12 = vector.broadcast %cst_10 : f32 to vector<16x128xf32>
      %c0_11 = arith.constant 0 : index
      %c0_12 = arith.constant 0 : index
      %13 = vector.load %arg7[%c0_11, %c0_12] : memref<16x128xf32, #tpu.memory_space<vmem>>, vector<16x128xf32>
      tpu.vector_store %arg7[%c0_11, %c0_12], %12 {strides = array<i32>} : memref<16x128xf32, #tpu.memory_space<vmem>>, vector<16x128xf32>,
    } else {
    }
    %c0 = arith.constant 0 : index
    %c0_1 = arith.constant 0 : index
    %3 = vector.load %arg7[%c0, %c0_1] : memref<16x128xf32, #tpu.memory_space<vmem>>, vector<16x128xf32>
    %c0_2 = arith.constant 0 : index
    %c0_3 = arith.constant 0 : index
    %4 = vector.load %arg3[%c0_2, %c0_3] : memref<16x1664xbf16, #tpu.memory_space<vmem>>, vector<16x1664xbf16>
    %c0_4 = arith.constant 0 : index
    %c0_5 = arith.constant 0 : index
    %5 = vector.load %arg4[%c0_4, %c0_5] : memref<1664x128xbf16, #tpu.memory_space<vmem>>, vector<1664x128xbf16>
    %cst = arith.constant dense<0.000000e+00> : vector<16x128xf32>
    %6 = tpu.matmul %4, %5, %cst {dimension_numbers = #tpu.dot_dimension_numbers<[1], [0], [0], [1], [0, 0, 1, 1], [], []>} : vector<16x1664xbf16>, vector<1664x128xbf16>, vector<16x128xf32> -> vector<16x128xf32>
    %7 = arith.addf %3, %6 : vector<16x128xf32>
    %c0_6 = arith.constant 0 : index
    %c0_7 = arith.constant 0 : index
    %8 = vector.load %arg7[%c0_6, %c0_7] : memref<16x128xf32, #tpu.memory_space<vmem>>, vector<16x128xf32>
    tpu.vector_store %arg7[%c0_6, %c0_7], %7 {strides = array<i32>} : memref<16x128xf32, #tpu.memory_space<vmem>>, vector<16x128xf32>,
    %c0_i32_8 = arith.constant 0 : i32
    %9 = arith.cmpi eq, %arg2, %c0_i32_8 : i32
    %10 = arith.extui %9 : i1 to i32
    %c0_i32_9 = arith.constant 0 : i32
    %11 = arith.cmpi ne, %10, %c0_i32_9 : i32
    scf.if %11 {
      %c0_10 = arith.constant 0 : index
      %c0_11 = arith.constant 0 : index
      %12 = vector.load %arg7[%c0_10, %c0_11] : memref<16x128xf32, #tpu.memory_space<vmem>>, vector<16x128xf32>
      %c0_12 = arith.constant 0 : index
      %c0_13 = arith.constant 0 : index
      %13 = vector.load %arg5[%c0_12, %c0_13] : memref<1x128xf32, #tpu.memory_space<vmem>>, vector<1x128xf32>
      %14 = vector.broadcast %13 : vector<1x128xf32> to vector<16x128xf32>
      %15 = arith.addf %12, %14 : vector<16x128xf32>
      %cst_14 = arith.constant 0.000000e+00 : f32
      %16 = vector.broadcast %cst_14 : f32 to vector<16x128xf32>
      %17 = arith.maximumf %15, %16 : vector<16x128xf32>
      %18 = arith.truncf %17 : vector<16x128xf32> to vector<16x128xbf16>
      %c0_15 = arith.constant 0 : index
      %c0_16 = arith.constant 0 : index
      %19 = vector.load %arg6[%c0_15, %c0_16] : memref<16x128xbf16, #tpu.memory_space<vmem>>, vector<16x128xbf16>
      tpu.vector_store %arg6[%c0_15, %c0_16], %18 {strides = array<i32>} : memref<16x128xbf16, #tpu.memory_space<vmem>>, vector<16x128xbf16>,
    } else {
    }
    return
  }
  func.func @transform_0(%arg0: i32, %arg1: i32, %arg2: i32) -> (i32, i32) {
    %c0_i32 = arith.constant 0 : i32
    return %arg0, %arg2 : i32, i32
  }
  func.func @transform_1(%arg0: i32, %arg1: i32, %arg2: i32) -> (i32, i32) {
    %c0_i32 = arith.constant 0 : i32
    return %arg2, %arg1 : i32, i32
  }
  func.func @transform_2(%arg0: i32, %arg1: i32, %arg2: i32) -> (i32, i32) {
    %c0_i32 = arith.constant 0 : i32
    %c0_i32_0 = arith.constant 0 : i32
    return %c0_i32, %arg1 : i32, i32
  }
  func.func @transform_3(%arg0: i32, %arg1: i32, %arg2: i32) -> (i32, i32) {
    %c0_i32 = arith.constant 0 : i32
    return %arg0, %arg1 : i32, i32
  }
}

module attributes {stable_mosaic.version = 11 : i64} {
  func.func @_linear_kernel(%arg0: i32, %arg1: i32, %arg2: i32, %arg3: memref<16x384xbf16, #tpu.memory_space<vmem>>, %arg4: memref<384x128xbf16, #tpu.memory_space<vmem>>, %arg5: memref<1x128xf32, #tpu.memory_space<vmem>>, %arg6: memref<16x128xf32, #tpu.memory_space<vmem>>, %arg7: memref<16x128xf32, #tpu.memory_space<vmem>>) attributes {dimension_semantics = [#tpu.dimension_semantics<parallel>, #tpu.dimension_semantics<parallel>, #tpu.dimension_semantics<arbitrary>], iteration_bounds = array<i64: 1, 1, 1>, scalar_prefetch = 0 : i64, scratch_operands = 1 : i64, tpu.core_type = #tpu.core_type<tc>, window_params = [{transform_indices = @transform_0, window_bounds = array<i64: 16, 384>}, {transform_indices = @transform_1, window_bounds = array<i64: 384, 128>}, {transform_indices = @transform_2, window_bounds = array<i64: 1, 128>}, {transform_indices = @transform_3, window_bounds = array<i64: 16, 128>}]} {
    %c0_i32 = arith.constant 0 : i32
    %0 = arith.cmpi eq, %arg2, %c0_i32 : i32
    %1 = arith.extui %0 : i1 to i32
    %c0_i32_0 = arith.constant 0 : i32
    %2 = arith.cmpi ne, %1, %c0_i32_0 : i32
    scf.if %2 {
      %cst_10 = arith.constant 0.000000e+00 : f32
      %12 = vector.broadcast %cst_10 : f32 to vector<16x128xf32>
      %c0_11 = arith.constant 0 : index
      %c0_12 = arith.constant 0 : index
      %13 = vector.load %arg7[%c0_11, %c0_12] : memref<16x128xf32, #tpu.memory_space<vmem>>, vector<16x128xf32>
      tpu.vector_store %arg7[%c0_11, %c0_12], %12 {strides = array<i32>} : memref<16x128xf32, #tpu.memory_space<vmem>>, vector<16x128xf32>,
    } else {
    }
    %c0 = arith.constant 0 : index
    %c0_1 = arith.constant 0 : index
    %3 = vector.load %arg7[%c0, %c0_1] : memref<16x128xf32, #tpu.memory_space<vmem>>, vector<16x128xf32>
    %c0_2 = arith.constant 0 : index
    %c0_3 = arith.constant 0 : index
    %4 = vector.load %arg3[%c0_2, %c0_3] : memref<16x384xbf16, #tpu.memory_space<vmem>>, vector<16x384xbf16>
    %c0_4 = arith.constant 0 : index
    %c0_5 = arith.constant 0 : index
    %5 = vector.load %arg4[%c0_4, %c0_5] : memref<384x128xbf16, #tpu.memory_space<vmem>>, vector<384x128xbf16>
    %cst = arith.constant dense<0.000000e+00> : vector<16x128xf32>
    %6 = tpu.matmul %4, %5, %cst {dimension_numbers = #tpu.dot_dimension_numbers<[1], [0], [0], [1], [0, 0, 1, 1], [], []>} : vector<16x384xbf16>, vector<384x128xbf16>, vector<16x128xf32> -> vector<16x128xf32>
    %7 = arith.addf %3, %6 : vector<16x128xf32>
    %c0_6 = arith.constant 0 : index
    %c0_7 = arith.constant 0 : index
    %8 = vector.load %arg7[%c0_6, %c0_7] : memref<16x128xf32, #tpu.memory_space<vmem>>, vector<16x128xf32>
    tpu.vector_store %arg7[%c0_6, %c0_7], %7 {strides = array<i32>} : memref<16x128xf32, #tpu.memory_space<vmem>>, vector<16x128xf32>,
    %c0_i32_8 = arith.constant 0 : i32
    %9 = arith.cmpi eq, %arg2, %c0_i32_8 : i32
    %10 = arith.extui %9 : i1 to i32
    %c0_i32_9 = arith.constant 0 : i32
    %11 = arith.cmpi ne, %10, %c0_i32_9 : i32
    scf.if %11 {
      %c0_10 = arith.constant 0 : index
      %c0_11 = arith.constant 0 : index
      %12 = vector.load %arg7[%c0_10, %c0_11] : memref<16x128xf32, #tpu.memory_space<vmem>>, vector<16x128xf32>
      %c0_12 = arith.constant 0 : index
      %c0_13 = arith.constant 0 : index
      %13 = vector.load %arg5[%c0_12, %c0_13] : memref<1x128xf32, #tpu.memory_space<vmem>>, vector<1x128xf32>
      %14 = vector.broadcast %13 : vector<1x128xf32> to vector<16x128xf32>
      %15 = arith.addf %12, %14 : vector<16x128xf32>
      %c0_14 = arith.constant 0 : index
      %c0_15 = arith.constant 0 : index
      %16 = vector.load %arg6[%c0_14, %c0_15] : memref<16x128xf32, #tpu.memory_space<vmem>>, vector<16x128xf32>
      tpu.vector_store %arg6[%c0_14, %c0_15], %15 {strides = array<i32>} : memref<16x128xf32, #tpu.memory_space<vmem>>, vector<16x128xf32>,
    } else {
    }
    return
  }
  func.func @transform_0(%arg0: i32, %arg1: i32, %arg2: i32) -> (i32, i32) {
    %c0_i32 = arith.constant 0 : i32
    return %arg0, %arg2 : i32, i32
  }
  func.func @transform_1(%arg0: i32, %arg1: i32, %arg2: i32) -> (i32, i32) {
    %c0_i32 = arith.constant 0 : i32
    return %arg2, %arg1 : i32, i32
  }
  func.func @transform_2(%arg0: i32, %arg1: i32, %arg2: i32) -> (i32, i32) {
    %c0_i32 = arith.constant 0 : i32
    %c0_i32_0 = arith.constant 0 : i32
    return %c0_i32, %arg1 : i32, i32
  }
  func.func @transform_3(%arg0: i32, %arg1: i32, %arg2: i32) -> (i32, i32) {
    %c0_i32 = arith.constant 0 : i32
    return %arg0, %arg1 : i32, i32
  }
}

</mosaic_0001>

<bundles_post_ra>
// kernel: tile.8
= control target key start
LH: loop header
LB: loop body
LE: loop exit
PB: predicated region body
PF: predicated region fallthrough
CT: control target
= control target key end

     0   :  { %s22_s0 = inlined_call_operand.vmem [shape: s32[8], index: 0, kind: input, shape index: {}]   ;;  %s23_s1 = inlined_call_operand.vmem [shape: s32[4,8], index: 1, kind: output, shape index: {}]  }
   0x1   :  { %v4_v0 = vld [vmem:[%s22_s0] ss:$0 sm:$0xff] }
   0x2   :  { %5 = vst [vmem:[%s23_s1] sm:$0xf] %v4_v0 }

// kernel: tile.9
= control target key start
LH: loop header
LB: loop body
LE: loop exit
PB: predicated region body
PF: predicated region fallthrough
CT: control target
= control target key end

     0   :  { %vm8_vm0 = vcmask 64512   ;;  %s40_s8 = smov 8   ;;  %s41_s9 = smov 16   ;;  %vm14_vm1 = vcmask 261312   ;;  %vm20_vm2 = vcmask 195712   ;;  %vm26_vm3 = vcmask 130112   ;;  %s58_s0 = inlined_call_operand.vmem [shape: s32[4,8], index: 0, kind: input, shape index: {}]   ;;  %s59_s1 = inlined_call_operand.vmem [shape: s32[32], index: 1, kind: output, shape index: {}]  }
   0x1   :  { %v5_v0 = vld [vmem:[%s58_s0] sm:$0xf]  ;;  %s39_s0 = smov 24  }
   0x2   :  { %6 = vst [vmem:[#allocation1] sm:$0xf] %v5_v0 }
   0x9   :  { %v11_v1 = vld [vmem:[#allocation1 + $0x3] sm:$0x1]   ;;  %v23_v2 = vld [vmem:[#allocation1 + $0x1] sm:$0x1]   ;;  %v7_v3 = vld [vmem:[#allocation1] sm:$0x1]  }
   0xa   :  { %12 = vrot.lane.b32.xlu0 %v11_v1, %s39_s0  ;;  %24 = vrot.lane.b32.xlu1 %v23_v2, %s40_s8  ;;  %v17_v4 = vld [vmem:[#allocation1 + $0x2] sm:$0x1]   ;;  %9 = vst.msk [vmem:[#allocation0] sm:$0x1] %vm8_vm0, %v7_v3  }
   0xe   :  { %18 = vrot.lane.b32.xlu0 %v17_v4, %s41_s9 }
  0x7c   :  { %v13_v5 = vpop.permute.xlu0 %12   ;;  %v25_v6 = vpop.permute.xlu1 %24  }
  0x7d   :  { %15 = vst.msk [vmem:[#allocation0] sm:$0x1] %vm14_vm1, %v13_v5  }
  0x80   :  { %v19_v7 = vpop.permute.xlu0 %18  }
  0x81   :  { %21 = vst.msk [vmem:[#allocation0] sm:$0x1] %vm20_vm2, %v19_v7  }
  0x82   :  { %27 = vst.msk [vmem:[#allocation0] sm:$0x1] %vm26_vm3, %v25_v6  }
  0x89   :  { %v32_v8 = vld [vmem:[#allocation0] sm:$0x1] }
  0x8a   :  { %35 = vst [vmem:[%s59_s1] sm:$0x1] %v32_v8 }

// kernel: vgg16_roihead_side2_forward.9
= control target key start
LH: loop header
LB: loop body
LE: loop exit
PB: predicated region body
PF: predicated region fallthrough
CT: control target
= control target key end

     0   :  { %s605_s0 = inlined_call_operand.vmem [shape: s32[32], index: 0, kind: input, shape index: {}]   ;;  %s606_s1 = inlined_call_operand.vmem [shape: bf16[32,15,256], index: 1, kind: input, shape index: {}]   ;;  %s607_s2 = inlined_call_operand.vmem [shape: bf16[2,256,32], index: 2, kind: input, shape index: {}]   ;;  %s608_s3 = inlined_call_operand.vmem [shape: bf16[32,15,32], index: 3, kind: output, shape index: {}]  }
   0x1   :  { %s8_s14 = sshll.u32 %s605_s0, 4  ;;  %s9_s14 = int_to_ptr.vmem [resolvable:$true] %s8_s14 }
   0x2   :  { %s531_s15 = scalar_lea.vmem %s9_s14, 16  ;;  %p536_p1 = scmp.lt.s32.totalorder %s9_s14, %s9_s14 }
   0x3   :  { %p532_p0 = scmp.ne.s32.totalorder %s9_s14, %s531_s15  ;;  %p537_p2 = scmp.lt.s32.totalorder %s531_s15, %s531_s15 }
   0x5   :  { %p538_p3 = por %p537_p2, %p536_p1 }
   0x7   :  { %p539_p4 = pnand %p538_p3, %p532_p0 }
   0x9   :  { %542 = shalt.err (!%p539_p4)  }
   0xa   :  { %s553_s16 = smov [#allocation3]  }
   0xb   :  { %11 = dma.vmem_to_smem %s9_s14, 16, %s553_s16, [#allocation2] }
   0xc   :  { %547 = dma.done.wait [#allocation2], 16 }
   0xd   :  { %548 = vsyncadd [#allocation2], 4294967280 }
   0xe   :  { %13 = sfence }
   0xf   :  { %s577_s17 = smov 0  }
  0x10 LB: > { %s443_s0 = sadd.s32 4294967295, %s551_s17   ;;  %p447_p5 = scmp.ge.s32.totalorder %s551_s17, 1  ;;  %s551_s17 = sphi %s577_s17, %s19_s17  }
  0x11   : > { %p133_p6 = scmp.lt.s32.totalorder %s551_s17, 33 }
  0x13   : > { %p134_p7 = pnand %p447_p5, %p133_p6 }
  0x14   : > { %s166_s18 = sld [smem:[#allocation3 + %s443_s0]] (!%p134_p7)  ;;  %p161_p8 = scmp.lt.s32.totalorder (!%p134_p7), %s443_s0, 31 }
  0x15   : > { %137 = sbr.rel (%p134_p7) target bundleno = 269 (0x10d), region = 28 }
  0x1a   : > { %s610_s0 = smov (!%p161_p8, %s443_s0), 31  ;;  %p167_p9 = scmp.lt.s32.totalorder %s166_s18, 1  ;;  %vm368_vm0 = vcmask 257024   ;;  %vm371_vm1 = vsmask.f32 3328 }
  0x1b   : > { %s476_s19 = sshll.u32 %s610_s0, 4  ;;  %s478_s27 = sshll.u32 %s610_s0, 3  ;;  %vm372_vm2 = vmand %vm368_vm0, %vm371_vm1 }
  0x1c   : > { %s591_s22 = scalar_lea.vmem %s606_s1, %s476_s19  ;;  %s612_s18 = smov (!%p167_p9, %s166_s18), 1 }
  0x1d   : > { %v530_v0 = vld [vmem:[%s591_s22 + $0x4] ss:$8 sps:$4 sm:$0xff]   ;;  %s477_s23 = sshll.u32 %s612_s18, 7  ;;  %v528_v17 = vld [vmem:[%s591_s22] ss:$8 sps:$4 sm:$0xff]   ;;  %s177_s30 = scalar_lea.vmem %s608_s3, %s478_s27 }
  0x1e   : > { %351 = vmatprep.mubr.bf16.mxu0 %v530_v0  ;;  %s171_s26 = scalar_lea.vmem %s607_s2, %s477_s23  ;;  %v373_v25 = vld [vmem:[%s177_s30 + $0x4] sm:$0xf] }
  0x1f   : > { %v512_v1 = vld [vmem:[%s171_s26 + $0x78] sm:$0xff]   ;;  %v514_v3 = vld [vmem:[%s171_s26 + $0x70] sm:$0xff]   ;;  %v516_v5 = vld [vmem:[%s171_s26 + $0x68] sm:$0xff]  }
  0x20   : > { %v513_v2 = vld [vmem:[%s171_s26 + $0x38] sm:$0xff]   ;;  %481 = vmatprep.subr.bf16.mxu0 %v512_v1  ;;  %v515_v4 = vld [vmem:[%s171_s26 + $0x30] sm:$0xff]   ;;  %v517_v6 = vld [vmem:[%s171_s26 + $0x28] sm:$0xff]  }
  0x21   : > { %482 = vmatpush3.bf16.msra.mxu0 %v513_v2  ;;  %v518_v7 = vld [vmem:[%s171_s26 + $0x60] sm:$0xff]   ;;  %v520_v9 = vld [vmem:[%s171_s26 + $0x58] sm:$0xff]   ;;  %v522_v11 = vld [vmem:[%s171_s26 + $0x50] sm:$0xff]  }
  0x22   : > { %483 = vmatprep.subr.bf16.mxu0 %v514_v3  ;;  %v519_v8 = vld [vmem:[%s171_s26 + $0x20] sm:$0xff]   ;;  %v521_v10 = vld [vmem:[%s171_s26 + $0x18] sm:$0xff]   ;;  %v523_v12 = vld [vmem:[%s171_s26 + $0x10] sm:$0xff]  }
  0x23   : > { %v524_v13 = vld [vmem:[%s171_s26 + $0x48] sm:$0xff]   ;;  %v526_v15 = vld [vmem:[%s171_s26 + $0x40] sm:$0xff]  }
  0x24   : > { %v525_v14 = vld [vmem:[%s171_s26 + $0x8] sm:$0xff]   ;;  %v527_v16 = vld [vmem:[%s171_s26] sm:$0xff]  }
  0x25   : > { %484 = vmatpush3.bf16.msra.mxu0 %v515_v4 }
  0x26   : > { %485 = vmatprep.subr.bf16.mxu0 %v516_v5 }
  0x29   : > { %486 = vmatpush3.bf16.msra.mxu0 %v517_v6 }
  0x2a   : > { %487 = vmatprep.subr.bf16.mxu0 %v518_v7 }
  0x2d   : > { %488 = vmatpush3.bf16.msra.mxu0 %v519_v8 }
  0x2e   : > { %489 = vmatprep.subr.bf16.mxu0 %v520_v9 }
  0x31   : > { %490 = vmatpush3.bf16.msra.mxu0 %v521_v10 }
  0x32   : > { %491 = vmatprep.subr.bf16.mxu0 %v522_v11 }
  0x35   : > { %492 = vmatpush3.bf16.msra.mxu0 %v523_v12 }
  0x36   : > { %493 = vmatprep.subr.bf16.mxu0 %v524_v13 }
  0x39   : > { %494 = vmatpush3.bf16.msra.mxu0 %v525_v14 }
  0x3a   : > { %495 = vmatprep.subr.bf16.mxu0 %v526_v15 }
  0x3d   : > { %496 = vmatpush3.bf16.msra.mxu0 %v527_v16 }
  0x40   : > { %352 = vmatmul.mubr.bf16.vlgmr.msra.gmra.mxu0 %v528_v17 }
 0x100   : > { %v497_v18 = vpop.f32.mrf.mxu0 }
 0x102   : > { %v498_v19 = vpop.f32.mrf.mxu0 }
 0x103   : > { %v499_v20 = vadd.f32 %v498_v19, %v497_v18 }
 0x104   : > { %v500_v21 = vpop.f32.mrf.mxu0 }
 0x105   : > { %v479_v22 = vpack.c.bf16 %v499_v20, %v499_v20 }
 0x106   : > { %v501_v23 = vpop.f32.mrf.mxu0 }
 0x107   : > { %369 = vst.msk [vmem:[%s177_s30] sm:$0xf] %vm368_vm0, %v479_v22  ;;  %v502_v24 = vadd.f32 %v501_v23, %v500_v21 }
 0x109   : > { %v480_v26 = vpack.c.bf16 %v502_v24, %v502_v24 }
 0x10b   : > { %v374_v27 = vsel %vm372_vm2, %v480_v26, %v373_v25 }
 0x10c   : > { %375 = vst [vmem:[%s177_s30 + $0x4] sm:$0xf] %v374_v27 }
 0x10d PF: > { %s19_s17 = sadd.s32 1, %s551_s17  }
 0x10e   : > { %p16_p10 = scmp.ge.s32.totalorder %s19_s17, 34  }
 0x110   :  { %18 = sbr.rel (!%p16_p10) target bundleno = 16 (0x10), region = 61 }

// kernel: vgg16_roihead_side2_forward.11
= control target key start
LH: loop header
LB: loop body
LE: loop exit
PB: predicated region body
PF: predicated region fallthrough
CT: control target
= control target key end

     0   :  { %s339_s1 = inlined_call_operand.vmem [shape: bf16[128,128], index: 1, kind: input, shape index: {}]   ;;  %s340_s0 = inlined_call_operand.vmem [shape: bf16[32,128], index: 0, kind: input, shape index: {}]   ;;  %s341_s2 = inlined_call_operand.vmem [shape: f32[1,128], index: 2, kind: input, shape index: {}]   ;;  %s342_s3 = inlined_call_operand.vmem [shape: bf16[32,128], index: 3, kind: output, shape index: {}]  }
   0x1   :  { %v270_v0 = vld [vmem:[%s339_s1 + $0x38] sm:$0xff]   ;;  %v271_v1 = vld [vmem:[%s339_s1 + $0x30] sm:$0xff]   ;;  %v272_v2 = vld [vmem:[%s339_s1 + $0x28] sm:$0xff]  }
   0x2   :  { %250 = vmatprep.subr.bf16.mxu0 %v270_v0  ;;  %v273_v3 = vld [vmem:[%s339_s1 + $0x20] sm:$0xff]   ;;  %v274_v5 = vld [vmem:[%s339_s1 + $0x18] sm:$0xff]   ;;  %v275_v6 = vld [vmem:[%s339_s1 + $0x10] sm:$0xff]  }
   0x3   :  { %251 = vmatpush3.bf16.msra.mxu0 %v270_v0  ;;  %v278_v4 = vld [vmem:[%s340_s0] sm:$0xff]   ;;  %v276_v7 = vld [vmem:[%s339_s1 + $0x8] sm:$0xff]  }
   0x4   :  { %252 = vmatprep.subr.bf16.mxu0 %v271_v1  ;;  %266 = vmatprep.mubr.bf16.mxu0 %v278_v4  ;;  %v277_v8 = vld [vmem:[%s339_s1] sm:$0xff]   ;;  %v279_v9 = vld [vmem:[%s340_s0 + $0x8] sm:$0xff]  }
   0x5   :  { %v220_v11 = vld [vmem:[%s341_s2] ss:$0 sm:$0xff] }
   0x7   :  { %253 = vmatpush3.bf16.msra.mxu0 %v271_v1 }
   0x8   :  { %254 = vmatprep.subr.bf16.mxu0 %v272_v2 }
   0xb   :  { %255 = vmatpush3.bf16.msra.mxu0 %v272_v2 }
   0xc   :  { %256 = vmatprep.subr.bf16.mxu0 %v273_v3 }
   0xf   :  { %257 = vmatpush3.bf16.msra.mxu0 %v273_v3 }
  0x10   :  { %258 = vmatprep.subr.bf16.mxu0 %v274_v5 }
  0x13   :  { %259 = vmatpush3.bf16.msra.mxu0 %v274_v5 }
  0x14   :  { %260 = vmatprep.subr.bf16.mxu0 %v275_v6 }
  0x17   :  { %261 = vmatpush3.bf16.msra.mxu0 %v275_v6 }
  0x18   :  { %262 = vmatprep.subr.bf16.mxu0 %v276_v7 }
  0x1b   :  { %263 = vmatpush3.bf16.msra.mxu0 %v276_v7 }
  0x1c   :  { %264 = vmatprep.subr.bf16.mxu0 %v277_v8 }
  0x1f   :  { %265 = vmatpush3.bf16.msra.mxu0 %v277_v8 }
  0x22   :  { %267 = vmatmul.mubr.bf16.vlgmr.msra.gmra.mxu0 %v279_v9 }
  0xe2   :  { %v268_v10 = vpop.f32.mrf.mxu0 }
  0xe3   :  { %v180_v13 = vadd.f32 %v268_v10, %v220_v11 }
  0xe4   :  { %v141_v12 = vpop.f32.mrf.mxu0 }
  0xe5   :  { %v178_v15 = vadd.f32 %v220_v11, %v141_v12  ;;  %v184_v18 = vmax.f32 %v180_v13, 0.0 }
  0xe6   :  { %v269_v14 = vpop.f32.mrf.mxu0 }
  0xe7   :  { %v181_v16 = vadd.f32 %v269_v14, %v220_v11  ;;  %v182_v21 = vmax.f32 %v178_v15, 0.0 }
  0xe8   :  { %v144_v17 = vpop.f32.mrf.mxu0 }
  0xe9   :  { %v185_v19 = vmax.f32 %v181_v16, 0.0  ;;  %v179_v20 = vadd.f32 %v220_v11, %v144_v17 }
  0xeb   :  { %v237_v22 = vpack.c.bf16 %v185_v19, %v184_v18  ;;  %v183_v23 = vmax.f32 %v179_v20, 0.0 }
  0xed   :  { %239 = vst [vmem:[%s342_s3 + $0x8] sm:$0xff] %v237_v22   ;;  %v232_v24 = vpack.c.bf16 %v183_v23, %v182_v21 }
  0xef   :  { %233 = vst [vmem:[%s342_s3] sm:$0xff] %v232_v24  }

// kernel: vgg16_roihead_side2_forward.10
= control target key start
LH: loop header
LB: loop body
LE: loop exit
PB: predicated region body
PF: predicated region fallthrough
CT: control target
= control target key end

     0   :  { %s792_s1 = inlined_call_operand.vmem [shape: bf16[512,128], index: 1, kind: input, shape index: {}]   ;;  %s793_s0 = inlined_call_operand.vmem [shape: bf16[32,512], index: 0, kind: input, shape index: {}]   ;;  %s794_s2 = inlined_call_operand.vmem [shape: f32[1,128], index: 2, kind: input, shape index: {}]   ;;  %s795_s3 = inlined_call_operand.vmem [shape: bf16[32,128], index: 3, kind: output, shape index: {}]  }
   0x1   :  { %v599_v0 = vld [vmem:[%s792_s1 + $0x78] sm:$0xff]   ;;  %v603_v4 = vld [vmem:[%s792_s1 + $0x70] sm:$0xff]   ;;  %v607_v8 = vld [vmem:[%s792_s1 + $0x68] sm:$0xff]  }
   0x2   :  { %v600_v1 = vld [vmem:[%s792_s1 + $0xf8] sm:$0xff]   ;;  %543 = vmatprep.subr.bf16.mxu0 %v599_v0  ;;  %v604_v5 = vld [vmem:[%s792_s1 + $0xf0] sm:$0xff]   ;;  %v608_v9 = vld [vmem:[%s792_s1 + $0xe8] sm:$0xff]  }
   0x3   :  { %v601_v2 = vld [vmem:[%s792_s1 + $0x38] sm:$0xff]   ;;  %571 = vmatprep.subr.bf16.mxu1 %v600_v1  ;;  %v605_v6 = vld [vmem:[%s792_s1 + $0x30] sm:$0xff]   ;;  %v609_v10 = vld [vmem:[%s792_s1 + $0x28] sm:$0xff]  }
   0x4   :  { %v602_v3 = vld [vmem:[%s792_s1 + $0xb8] sm:$0xff]   ;;  %544 = vmatpush3.bf16.msra.mxu0 %v601_v2  ;;  %v606_v7 = vld [vmem:[%s792_s1 + $0xb0] sm:$0xff]   ;;  %v610_v11 = vld [vmem:[%s792_s1 + $0xa8] sm:$0xff]  }
   0x5   :  { %572 = vmatpush3.bf16.msra.mxu1 %v602_v3  ;;  %545 = vmatprep.subr.bf16.mxu0 %v603_v4  ;;  %v611_v12 = vld [vmem:[%s792_s1 + $0x60] sm:$0xff]   ;;  %v615_v16 = vld [vmem:[%s792_s1 + $0x58] sm:$0xff]   ;;  %v619_v20 = vld [vmem:[%s792_s1 + $0x50] sm:$0xff]  }
   0x6   :  { %573 = vmatprep.subr.bf16.mxu1 %v604_v5  ;;  %v612_v13 = vld [vmem:[%s792_s1 + $0xe0] sm:$0xff]   ;;  %v616_v17 = vld [vmem:[%s792_s1 + $0xd8] sm:$0xff]   ;;  %v620_v21 = vld [vmem:[%s792_s1 + $0xd0] sm:$0xff]  }
   0x7   :  { %v613_v14 = vld [vmem:[%s792_s1 + $0x20] sm:$0xff]   ;;  %v617_v18 = vld [vmem:[%s792_s1 + $0x18] sm:$0xff]   ;;  %v621_v22 = vld [vmem:[%s792_s1 + $0x10] sm:$0xff]  }
   0x8   :  { %546 = vmatpush3.bf16.msra.mxu0 %v605_v6  ;;  %v614_v15 = vld [vmem:[%s792_s1 + $0xa0] sm:$0xff]   ;;  %v618_v19 = vld [vmem:[%s792_s1 + $0x98] sm:$0xff]   ;;  %v622_v23 = vld [vmem:[%s792_s1 + $0x90] sm:$0xff]  }
   0x9   :  { %574 = vmatpush3.bf16.msra.mxu1 %v606_v7  ;;  %547 = vmatprep.subr.bf16.mxu0 %v607_v8  ;;  %v623_v24 = vld [vmem:[%s792_s1 + $0x48] sm:$0xff]   ;;  %v627_v28 = vld [vmem:[%s792_s1 + $0x40] sm:$0xff]  }
   0xa   :  { %575 = vmatprep.subr.bf16.mxu1 %v608_v9  ;;  %v624_v25 = vld [vmem:[%s792_s1 + $0xc8] sm:$0xff]   ;;  %v628_v29 = vld [vmem:[%s792_s1 + $0xc0] sm:$0xff]  }
   0xb   :  { %v625_v26 = vld [vmem:[%s792_s1 + $0x8] sm:$0xff]   ;;  %v629_v30 = vld [vmem:[%s792_s1] sm:$0xff]  }
   0xc   :  { %548 = vmatpush3.bf16.msra.mxu0 %v609_v10  ;;  %v626_v27 = vld [vmem:[%s792_s1 + $0x88] sm:$0xff]   ;;  %v630_v31 = vld [vmem:[%s792_s1 + $0x80] sm:$0xff]  }
   0xd   :  { %576 = vmatpush3.bf16.msra.mxu1 %v610_v11  ;;  %549 = vmatprep.subr.bf16.mxu0 %v611_v12  ;;  %v631_v32 = vld [vmem:[%s793_s0] ss:$16 sps:$4 sm:$0xff]   ;;  %v633_v33 = vld [vmem:[%s793_s0 + $0x4] ss:$16 sps:$4 sm:$0xff]   ;;  %v634_v34 = vld [vmem:[%s793_s0 + $0x8] ss:$16 sps:$4 sm:$0xff]  }
   0xe   :  { %577 = vmatprep.subr.bf16.mxu1 %v612_v13  ;;  %v636_v35 = vld [vmem:[%s793_s0 + $0xc] ss:$16 sps:$4 sm:$0xff]   ;;  %363 = vmatprep.mubr.bf16.mxu0 %v633_v33  ;;  %v637_v36 = vld [vmem:[%s793_s0 + $0x24] ss:$16 sps:$4 sm:$0xff]   ;;  %v641_v38 = vld [vmem:[%s793_s0 + $0x20] ss:$16 sps:$4 sm:$0xff]  }
   0xf   :  { %412 = vmatprep.mubr.bf16.mxu1 %v636_v35  ;;  %v639_v37 = vld [vmem:[%s793_s0 + $0x2c] ss:$16 sps:$4 sm:$0xff]   ;;  %v642_v39 = vld [vmem:[%s793_s0 + $0x28] ss:$16 sps:$4 sm:$0xff]   ;;  %v523_v50 = vld [vmem:[%s794_s2] ss:$0 sm:$0xff] }
  0x10   :  { %550 = vmatpush3.bf16.msra.mxu0 %v613_v14 }
  0x11   :  { %578 = vmatpush3.bf16.msra.mxu1 %v614_v15  ;;  %551 = vmatprep.subr.bf16.mxu0 %v615_v16 }
  0x12   :  { %579 = vmatprep.subr.bf16.mxu1 %v616_v17 }
  0x14   :  { %552 = vmatpush3.bf16.msra.mxu0 %v617_v18 }
  0x15   :  { %580 = vmatpush3.bf16.msra.mxu1 %v618_v19  ;;  %553 = vmatprep.subr.bf16.mxu0 %v619_v20 }
  0x16   :  { %581 = vmatprep.subr.bf16.mxu1 %v620_v21 }
  0x18   :  { %554 = vmatpush3.bf16.msra.mxu0 %v621_v22 }
  0x19   :  { %582 = vmatpush3.bf16.msra.mxu1 %v622_v23  ;;  %555 = vmatprep.subr.bf16.mxu0 %v623_v24 }
  0x1a   :  { %583 = vmatprep.subr.bf16.mxu1 %v624_v25 }
  0x1c   :  { %556 = vmatpush3.bf16.msra.mxu0 %v625_v26 }
  0x1d   :  { %584 = vmatpush3.bf16.msra.mxu1 %v626_v27  ;;  %557 = vmatprep.subr.bf16.mxu0 %v627_v28 }
  0x1e   :  { %585 = vmatprep.subr.bf16.mxu1 %v628_v29 }
  0x20   :  { %558 = vmatpush3.bf16.msra.mxu0 %v629_v30 }
  0x21   :  { %586 = vmatpush3.bf16.msra.mxu1 %v630_v31 }
  0x23   :  { %364 = vmatmul.mubr.bf16.vlgmr.msra.gmra.mxu0 %v631_v32 }
  0x24   :  { %413 = vmatmul.mubr.bf16.vlgmr.msra.gmra.mxu1 %v634_v34  ;;  %371 = vmatprep.mubr.bf16.mxu0 %v637_v36 }
  0x25   :  { %420 = vmatprep.mubr.bf16.mxu1 %v639_v37 }
  0x2b   :  { %372 = vmatmul.mubr.bf16.gmra.mxu0 %v641_v38 }
  0x2c   :  { %421 = vmatmul.mubr.bf16.gmra.mxu1 %v642_v39 }
  0xe3   :  { %v559_v40 = vpop.f32.mrf.mxu0 }
  0xe4   :  { %v587_v41 = vpop.f32.mrf.mxu1 }
  0xe5   :  { %v560_v42 = vpop.f32.mrf.mxu0 }
  0xe6   :  { %v561_v43 = vadd.f32 %v560_v42, %v559_v40  ;;  %v588_v44 = vpop.f32.mrf.mxu1 }
  0xe7   :  { %v589_v45 = vadd.f32 %v588_v44, %v587_v41  ;;  %v562_v46 = vpop.f32.mrf.mxu0 }
  0xe8   :  { %v590_v47 = vpop.f32.mrf.mxu1 }
  0xe9   :  { %v415_v48 = vadd.f32 %v589_v45, %v561_v43  ;;  %v563_v49 = vpop.f32.mrf.mxu0 }
  0xea   :  { %v564_v51 = vadd.f32 %v563_v49, %v562_v46  ;;  %v591_v52 = vpop.f32.mrf.mxu1 }
  0xeb   :  { %v592_v53 = vadd.f32 %v591_v52, %v590_v47  ;;  %v565_v54 = vpop.f32.mrf.mxu0  ;;  %v451_v56 = vadd.f32 %v523_v50, %v415_v48 }
  0xec   :  { %v593_v55 = vpop.f32.mrf.mxu1 }
  0xed   :  { %v418_v57 = vadd.f32 %v592_v53, %v564_v51  ;;  %v566_v58 = vpop.f32.mrf.mxu0  ;;  %v455_v1 = vmax.f32 %v451_v56, 0.0 }
  0xee   :  { %v567_v59 = vadd.f32 %v566_v58, %v565_v54  ;;  %v594_v60 = vpop.f32.mrf.mxu1 }
  0xef   :  { %v452_v61 = vadd.f32 %v523_v50, %v418_v57  ;;  %v595_v62 = vadd.f32 %v594_v60, %v593_v55  ;;  %v568_v63 = vpop.f32.mrf.mxu0 }
  0xf0   :  { %v596_v0 = vpop.f32.mrf.mxu1 }
  0xf1   :  { %v456_v2 = vmax.f32 %v452_v61, 0.0  ;;  %v423_v3 = vadd.f32 %v595_v62, %v567_v59  ;;  %v569_v4 = vpop.f32.mrf.mxu0 }
  0xf2   :  { %v570_v5 = vadd.f32 %v569_v4, %v568_v63  ;;  %v597_v6 = vpop.f32.mrf.mxu1 }
  0xf3   :  { %v535_v7 = vpack.c.bf16 %v456_v2, %v455_v1  ;;  %v598_v8 = vadd.f32 %v597_v6, %v596_v0  ;;  %v453_v9 = vadd.f32 %v523_v50, %v423_v3 }
  0xf5   :  { %536 = vst [vmem:[%s795_s3] sm:$0xff] %v535_v7   ;;  %v426_v10 = vadd.f32 %v598_v8, %v570_v5  ;;  %v457_v12 = vmax.f32 %v453_v9, 0.0 }
  0xf7   :  { %v454_v11 = vadd.f32 %v523_v50, %v426_v10 }
  0xf9   :  { %v458_v13 = vmax.f32 %v454_v11, 0.0 }
  0xfb   :  { %v540_v14 = vpack.c.bf16 %v458_v13, %v457_v12 }
  0xfd   :  { %542 = vst [vmem:[%s795_s3 + $0x8] sm:$0xff] %v540_v14  }

// kernel: vgg16_roihead_side2_forward.12
= control target key start
LH: loop header
LB: loop body
LE: loop exit
PB: predicated region body
PF: predicated region fallthrough
CT: control target
= control target key end

     0   :  { %s306_s1 = inlined_call_operand.vmem [shape: bf16[128,128], index: 1, kind: input, shape index: {}]   ;;  %s307_s0 = inlined_call_operand.vmem [shape: bf16[32,128], index: 0, kind: input, shape index: {}]   ;;  %s308_s2 = inlined_call_operand.vmem [shape: f32[1,128], index: 2, kind: input, shape index: {}]   ;;  %s309_s3 = inlined_call_operand.vmem [shape: f32[32,128], index: 3, kind: output, shape index: {}]  }
   0x1   :  { %v231_v0 = vld [vmem:[%s306_s1 + $0x38] sm:$0xff]   ;;  %v232_v1 = vld [vmem:[%s306_s1 + $0x30] sm:$0xff]   ;;  %v233_v2 = vld [vmem:[%s306_s1 + $0x28] sm:$0xff]  }
   0x2   :  { %211 = vmatprep.subr.bf16.mxu0 %v231_v0  ;;  %v234_v3 = vld [vmem:[%s306_s1 + $0x20] sm:$0xff]   ;;  %v235_v5 = vld [vmem:[%s306_s1 + $0x18] sm:$0xff]   ;;  %v236_v6 = vld [vmem:[%s306_s1 + $0x10] sm:$0xff]  }
   0x3   :  { %212 = vmatpush3.bf16.msra.mxu0 %v231_v0  ;;  %v239_v4 = vld [vmem:[%s307_s0] sm:$0xff]   ;;  %v237_v7 = vld [vmem:[%s306_s1 + $0x8] sm:$0xff]  }
   0x4   :  { %213 = vmatprep.subr.bf16.mxu0 %v232_v1  ;;  %227 = vmatprep.mubr.bf16.mxu0 %v239_v4  ;;  %v238_v8 = vld [vmem:[%s306_s1] sm:$0xff]   ;;  %v240_v9 = vld [vmem:[%s307_s0 + $0x8] sm:$0xff]  }
   0x5   :  { %v200_v10 = vld [vmem:[%s308_s2] ss:$0 sm:$0xff] }
   0x7   :  { %214 = vmatpush3.bf16.msra.mxu0 %v232_v1 }
   0x8   :  { %215 = vmatprep.subr.bf16.mxu0 %v233_v2 }
   0xb   :  { %216 = vmatpush3.bf16.msra.mxu0 %v233_v2 }
   0xc   :  { %217 = vmatprep.subr.bf16.mxu0 %v234_v3 }
   0xf   :  { %218 = vmatpush3.bf16.msra.mxu0 %v234_v3 }
  0x10   :  { %219 = vmatprep.subr.bf16.mxu0 %v235_v5 }
  0x13   :  { %220 = vmatpush3.bf16.msra.mxu0 %v235_v5 }
  0x14   :  { %221 = vmatprep.subr.bf16.mxu0 %v236_v6 }
  0x17   :  { %222 = vmatpush3.bf16.msra.mxu0 %v236_v6 }
  0x18   :  { %223 = vmatprep.subr.bf16.mxu0 %v237_v7 }
  0x1b   :  { %224 = vmatpush3.bf16.msra.mxu0 %v237_v7 }
  0x1c   :  { %225 = vmatprep.subr.bf16.mxu0 %v238_v8 }
  0x1f   :  { %226 = vmatpush3.bf16.msra.mxu0 %v238_v8 }
  0x22   :  { %228 = vmatmul.mubr.bf16.vlgmr.msra.gmra.mxu0 %v240_v9 }
  0xe2   :  { %v229_v11 = vpop.f32.mrf.mxu0 }
  0xe3   :  { %v180_v12 = vadd.f32 %v229_v11, %v200_v10 }
  0xe4   :  { %v141_v13 = vpop.f32.mrf.mxu0 }
  0xe5   :  { %184 = vst [vmem:[%s309_s3 + $0x10] sm:$0xff] %v180_v12  ;;  %v178_v14 = vadd.f32 %v200_v10, %v141_v13 }
  0xe6   :  { %v230_v15 = vpop.f32.mrf.mxu0 }
  0xe7   :  { %182 = vst [vmem:[%s309_s3] sm:$0xff] %v178_v14  ;;  %v181_v16 = vadd.f32 %v230_v15, %v200_v10 }
  0xe8   :  { %v144_v17 = vpop.f32.mrf.mxu0 }
  0xe9   :  { %185 = vst [vmem:[%s309_s3 + $0x18] sm:$0xff] %v181_v16  ;;  %v179_v18 = vadd.f32 %v200_v10, %v144_v17 }
  0xeb   :  { %183 = vst [vmem:[%s309_s3 + $0x8] sm:$0xff] %v179_v18 }

// kernel: vgg16_roihead_side2_forward.16
= control target key start
LH: loop header
LB: loop body
LE: loop exit
PB: predicated region body
PF: predicated region fallthrough
CT: control target
= control target key end

     0   :  { %s681_s1 = inlined_call_operand.vmem [shape: bf16[512,128], index: 1, kind: input, shape index: {}]   ;;  %s682_s0 = inlined_call_operand.vmem [shape: bf16[16,512], index: 0, kind: input, shape index: {}]   ;;  %s683_s2 = inlined_call_operand.vmem [shape: f32[1,128], index: 2, kind: input, shape index: {}]   ;;  %s684_s3 = inlined_call_operand.vmem [shape: bf16[16,128], index: 3, kind: output, shape index: {}]  }
   0x1   :  { %v509_v0 = vld [vmem:[%s681_s1 + $0x78] sm:$0xff]   ;;  %v513_v4 = vld [vmem:[%s681_s1 + $0x70] sm:$0xff]   ;;  %v517_v8 = vld [vmem:[%s681_s1 + $0x68] sm:$0xff]  }
   0x2   :  { %v510_v1 = vld [vmem:[%s681_s1 + $0xf8] sm:$0xff]   ;;  %465 = vmatprep.subr.bf16.mxu0 %v509_v0  ;;  %v514_v5 = vld [vmem:[%s681_s1 + $0xf0] sm:$0xff]   ;;  %v518_v9 = vld [vmem:[%s681_s1 + $0xe8] sm:$0xff]  }
   0x3   :  { %v511_v2 = vld [vmem:[%s681_s1 + $0x38] sm:$0xff]   ;;  %487 = vmatprep.subr.bf16.mxu1 %v510_v1  ;;  %v515_v6 = vld [vmem:[%s681_s1 + $0x30] sm:$0xff]   ;;  %v519_v10 = vld [vmem:[%s681_s1 + $0x28] sm:$0xff]  }
   0x4   :  { %v512_v3 = vld [vmem:[%s681_s1 + $0xb8] sm:$0xff]   ;;  %466 = vmatpush3.bf16.msra.mxu0 %v511_v2  ;;  %v516_v7 = vld [vmem:[%s681_s1 + $0xb0] sm:$0xff]   ;;  %v520_v11 = vld [vmem:[%s681_s1 + $0xa8] sm:$0xff]  }
   0x5   :  { %488 = vmatpush3.bf16.msra.mxu1 %v512_v3  ;;  %467 = vmatprep.subr.bf16.mxu0 %v513_v4  ;;  %v521_v12 = vld [vmem:[%s681_s1 + $0x60] sm:$0xff]   ;;  %v525_v16 = vld [vmem:[%s681_s1 + $0x58] sm:$0xff]   ;;  %v529_v20 = vld [vmem:[%s681_s1 + $0x50] sm:$0xff]  }
   0x6   :  { %489 = vmatprep.subr.bf16.mxu1 %v514_v5  ;;  %v522_v13 = vld [vmem:[%s681_s1 + $0xe0] sm:$0xff]   ;;  %v526_v17 = vld [vmem:[%s681_s1 + $0xd8] sm:$0xff]   ;;  %v530_v21 = vld [vmem:[%s681_s1 + $0xd0] sm:$0xff]  }
   0x7   :  { %v523_v14 = vld [vmem:[%s681_s1 + $0x20] sm:$0xff]   ;;  %v527_v18 = vld [vmem:[%s681_s1 + $0x18] sm:$0xff]   ;;  %v531_v22 = vld [vmem:[%s681_s1 + $0x10] sm:$0xff]  }
   0x8   :  { %468 = vmatpush3.bf16.msra.mxu0 %v515_v6  ;;  %v524_v15 = vld [vmem:[%s681_s1 + $0xa0] sm:$0xff]   ;;  %v528_v19 = vld [vmem:[%s681_s1 + $0x98] sm:$0xff]   ;;  %v532_v23 = vld [vmem:[%s681_s1 + $0x90] sm:$0xff]  }
   0x9   :  { %490 = vmatpush3.bf16.msra.mxu1 %v516_v7  ;;  %469 = vmatprep.subr.bf16.mxu0 %v517_v8  ;;  %v533_v24 = vld [vmem:[%s681_s1 + $0x48] sm:$0xff]   ;;  %v537_v28 = vld [vmem:[%s681_s1 + $0x40] sm:$0xff]  }
   0xa   :  { %491 = vmatprep.subr.bf16.mxu1 %v518_v9  ;;  %v534_v25 = vld [vmem:[%s681_s1 + $0xc8] sm:$0xff]   ;;  %v538_v29 = vld [vmem:[%s681_s1 + $0xc0] sm:$0xff]  }
   0xb   :  { %v535_v26 = vld [vmem:[%s681_s1 + $0x8] sm:$0xff]   ;;  %v539_v30 = vld [vmem:[%s681_s1] sm:$0xff]  }
   0xc   :  { %470 = vmatpush3.bf16.msra.mxu0 %v519_v10  ;;  %v536_v27 = vld [vmem:[%s681_s1 + $0x88] sm:$0xff]   ;;  %v540_v31 = vld [vmem:[%s681_s1 + $0x80] sm:$0xff]  }
   0xd   :  { %492 = vmatpush3.bf16.msra.mxu1 %v520_v11  ;;  %471 = vmatprep.subr.bf16.mxu0 %v521_v12  ;;  %v541_v32 = vld [vmem:[%s682_s0] ss:$16 sps:$4 sm:$0xff]   ;;  %v543_v33 = vld [vmem:[%s682_s0 + $0x4] ss:$16 sps:$4 sm:$0xff]   ;;  %v544_v34 = vld [vmem:[%s682_s0 + $0x8] ss:$16 sps:$4 sm:$0xff]  }
   0xe   :  { %493 = vmatprep.subr.bf16.mxu1 %v522_v13  ;;  %v546_v35 = vld [vmem:[%s682_s0 + $0xc] ss:$16 sps:$4 sm:$0xff]   ;;  %335 = vmatprep.mubr.bf16.mxu0 %v543_v33  ;;  %v455_v46 = vld [vmem:[%s683_s2] ss:$0 sm:$0xff] }
   0xf   :  { %376 = vmatprep.mubr.bf16.mxu1 %v546_v35 }
  0x10   :  { %472 = vmatpush3.bf16.msra.mxu0 %v523_v14 }
  0x11   :  { %494 = vmatpush3.bf16.msra.mxu1 %v524_v15  ;;  %473 = vmatprep.subr.bf16.mxu0 %v525_v16 }
  0x12   :  { %495 = vmatprep.subr.bf16.mxu1 %v526_v17 }
  0x14   :  { %474 = vmatpush3.bf16.msra.mxu0 %v527_v18 }
  0x15   :  { %496 = vmatpush3.bf16.msra.mxu1 %v528_v19  ;;  %475 = vmatprep.subr.bf16.mxu0 %v529_v20 }
  0x16   :  { %497 = vmatprep.subr.bf16.mxu1 %v530_v21 }
  0x18   :  { %476 = vmatpush3.bf16.msra.mxu0 %v531_v22 }
  0x19   :  { %498 = vmatpush3.bf16.msra.mxu1 %v532_v23  ;;  %477 = vmatprep.subr.bf16.mxu0 %v533_v24 }
  0x1a   :  { %499 = vmatprep.subr.bf16.mxu1 %v534_v25 }
  0x1c   :  { %478 = vmatpush3.bf16.msra.mxu0 %v535_v26 }
  0x1d   :  { %500 = vmatpush3.bf16.msra.mxu1 %v536_v27  ;;  %479 = vmatprep.subr.bf16.mxu0 %v537_v28 }
  0x1e   :  { %501 = vmatprep.subr.bf16.mxu1 %v538_v29 }
  0x20   :  { %480 = vmatpush3.bf16.msra.mxu0 %v539_v30 }
  0x21   :  { %502 = vmatpush3.bf16.msra.mxu1 %v540_v31 }
  0x23   :  { %336 = vmatmul.mubr.bf16.vlgmr.msra.gmra.mxu0 %v541_v32 }
  0x24   :  { %377 = vmatmul.mubr.bf16.vlgmr.msra.gmra.mxu1 %v544_v34 }
  0xe3   :  { %v481_v36 = vpop.f32.mrf.mxu0 }
  0xe4   :  { %v503_v37 = vpop.f32.mrf.mxu1 }
  0xe5   :  { %v482_v38 = vpop.f32.mrf.mxu0 }
  0xe6   :  { %v483_v39 = vadd.f32 %v482_v38, %v481_v36  ;;  %v504_v40 = vpop.f32.mrf.mxu1 }
  0xe7   :  { %v505_v41 = vadd.f32 %v504_v40, %v503_v37  ;;  %v484_v42 = vpop.f32.mrf.mxu0 }
  0xe8   :  { %v506_v43 = vpop.f32.mrf.mxu1 }
  0xe9   :  { %v379_v44 = vadd.f32 %v505_v41, %v483_v39  ;;  %v485_v45 = vpop.f32.mrf.mxu0 }
  0xea   :  { %v486_v47 = vadd.f32 %v485_v45, %v484_v42  ;;  %v507_v48 = vpop.f32.mrf.mxu1 }
  0xeb   :  { %v508_v49 = vadd.f32 %v507_v48, %v506_v43  ;;  %v401_v50 = vadd.f32 %v455_v46, %v379_v44 }
  0xed   :  { %v382_v51 = vadd.f32 %v508_v49, %v486_v47  ;;  %v403_v53 = vmax.f32 %v401_v50, 0.0 }
  0xef   :  { %v402_v52 = vadd.f32 %v455_v46, %v382_v51 }
  0xf1   :  { %v404_v54 = vmax.f32 %v402_v52, 0.0 }
  0xf3   :  { %v463_v55 = vpack.c.bf16 %v404_v54, %v403_v53 }
  0xf5   :  { %464 = vst [vmem:[%s684_s3] sm:$0xff] %v463_v55  }

// kernel: vgg16_roihead_side2_forward.13
= control target key start
LH: loop header
LB: loop body
LE: loop exit
PB: predicated region body
PF: predicated region fallthrough
CT: control target
= control target key end

     0   :  { %s781_s0 = inlined_call_operand.vmem [shape: s32[8], index: 0, kind: input, shape index: {}]   ;;  %s782_s1 = inlined_call_operand.vmem [shape: bf16[8,49,256], index: 1, kind: input, shape index: {}]   ;;  %s783_s2 = inlined_call_operand.vmem [shape: bf16[2,256,32], index: 2, kind: input, shape index: {}]   ;;  %s784_s3 = inlined_call_operand.vmem [shape: bf16[8,49,32], index: 3, kind: output, shape index: {}]  }
   0x1   :  { %s8_s14 = sshll.u32 %s781_s0, 4  ;;  %s9_s14 = int_to_ptr.vmem [resolvable:$true] %s8_s14 }
   0x2   :  { %s668_s15 = scalar_lea.vmem %s9_s14, 16  ;;  %p673_p1 = scmp.lt.s32.totalorder %s9_s14, %s9_s14 }
   0x3   :  { %p669_p0 = scmp.ne.s32.totalorder %s9_s14, %s668_s15  ;;  %p674_p2 = scmp.lt.s32.totalorder %s668_s15, %s668_s15 }
   0x5   :  { %p675_p3 = por %p674_p2, %p673_p1 }
   0x7   :  { %p676_p4 = pnand %p675_p3, %p669_p0 }
   0x9   :  { %679 = shalt.err (!%p676_p4)  }
   0xa   :  { %s690_s16 = smov [#allocation3]  }
   0xb   :  { %11 = dma.vmem_to_smem %s9_s14, 16, %s690_s16, [#allocation2] }
   0xc   :  { %684 = dma.done.wait [#allocation2], 16 }
   0xd   :  { %685 = vsyncadd [#allocation2], 4294967280 }
   0xe   :  { %13 = sfence }
   0xf   :  { %s714_s17 = smov 0  }
  0x10 LB: > { %s524_s0 = sadd.s32 4294967295, %s688_s17   ;;  %p528_p5 = scmp.ge.s32.totalorder %s688_s17, 1  ;;  %s688_s17 = sphi %s714_s17, %s19_s17  }
  0x11   : > { %p133_p6 = scmp.lt.s32.totalorder %s688_s17, 9 }
  0x13   : > { %p134_p7 = pnand %p528_p5, %p133_p6 }
  0x14   : > { %s166_s18 = sld [smem:[#allocation3 + %s524_s0]] (!%p134_p7)  ;;  %p161_p8 = scmp.lt.s32.totalorder (!%p134_p7), %s524_s0, 7 }
  0x15   : > { %137 = sbr.rel (%p134_p7) target bundleno = 276 (0x114), region = 28 }
  0x1a   : > { %s786_s0 = smov (!%p161_p8, %s524_s0), 7  ;;  %p167_p9 = scmp.lt.s32.totalorder %s166_s18, 1  ;;  %vm444_vm0 = vcmask 257024   ;;  %vm451_vm1 = vcmask 253952   ;;  %vm452_vm2 = vsmask.f32 256 }
  0x1b   : > { %s630_s19 = smul.u32 56, %s786_s0  ;;  %vm453_vm3 = vmand %vm451_vm1, %vm452_vm2 }
  0x1c   : > { %s788_s18 = smov (!%p167_p9, %s166_s18), 1  ;;  %s631_s27 = smul.u32 28, %s786_s0 }
  0x1d   : > { %s728_s22 = scalar_lea.vmem %s782_s1, %s630_s19  ;;  %s566_s23 = sshll.u32 %s788_s18, 7 }
  0x1e   : > { %v659_v0 = vld [vmem:[%s728_s22 + $0x4] ss:$8 sps:$4 sm:$0xff]   ;;  %s735_s26 = scalar_lea.vmem %s783_s2, %s566_s23  ;;  %v185_v18 = vld [vmem:[%s728_s22 + $0x30] sm:$0x11]  ;;  %v657_v19 = vld [vmem:[%s728_s22] ss:$8 sps:$4 sm:$0xff]   ;;  %s762_s30 = scalar_lea.vmem %s784_s3, %s631_s27 }
  0x1f   : > { %v662_v1 = vld [vmem:[%s728_s22 + $0x24] ss:$8 sps:$4 sm:$0xff]   ;;  %383 = vmatprep.mubr.bf16.mxu0 %v659_v0  ;;  %v641_v2 = vld [vmem:[%s735_s26 + $0x78] sm:$0xff]   ;;  %v643_v4 = vld [vmem:[%s735_s26 + $0x70] sm:$0xff]   ;;  %v540_v22 = vcombine.high %v185_v18, %v185_v18  ;;  %v539_v24 = vcombine.low %v185_v18, %v185_v18 }
  0x20   : > { %399 = vmatprep.mubr.bf16.mxu1 %v662_v1  ;;  %v642_v3 = vld [vmem:[%s735_s26 + $0x38] sm:$0xff]   ;;  %574 = vmatprep.subr.bf16.mxu0 %v641_v2  ;;  %v644_v5 = vld [vmem:[%s735_s26 + $0x30] sm:$0xff]   ;;  %v645_v6 = vld [vmem:[%s735_s26 + $0x68] sm:$0xff]  }
  0x21   : > { %614 = vmatprep.subr.bf16.mxu1 %v641_v2  ;;  %575 = vmatpush3.bf16.msra.mxu0 %v642_v3  ;;  %v646_v7 = vld [vmem:[%s735_s26 + $0x28] sm:$0xff]   ;;  %v647_v8 = vld [vmem:[%s735_s26 + $0x60] sm:$0xff]   ;;  %v649_v10 = vld [vmem:[%s735_s26 + $0x58] sm:$0xff]  }
  0x22   : > { %622 = vmatpush3.bf16.msra.mxu1 %v642_v3  ;;  %576 = vmatprep.subr.bf16.mxu0 %v643_v4  ;;  %v648_v9 = vld [vmem:[%s735_s26 + $0x20] sm:$0xff]   ;;  %v650_v11 = vld [vmem:[%s735_s26 + $0x18] sm:$0xff]   ;;  %v651_v12 = vld [vmem:[%s735_s26 + $0x50] sm:$0xff]  }
  0x23   : > { %615 = vmatprep.subr.bf16.mxu1 %v643_v4  ;;  %v652_v13 = vld [vmem:[%s735_s26 + $0x10] sm:$0xff]   ;;  %v653_v14 = vld [vmem:[%s735_s26 + $0x48] sm:$0xff]   ;;  %v655_v16 = vld [vmem:[%s735_s26 + $0x40] sm:$0xff]  }
  0x24   : > { %v654_v15 = vld [vmem:[%s735_s26 + $0x8] sm:$0xff]   ;;  %v656_v17 = vld [vmem:[%s735_s26] sm:$0xff]   ;;  %v663_v21 = vld [vmem:[%s728_s22 + $0x14] ss:$8 sps:$4 sm:$0xff]  }
  0x25   : > { %577 = vmatpush3.bf16.msra.mxu0 %v644_v5  ;;  %v660_v20 = vld [vmem:[%s728_s22 + $0x20] ss:$8 sps:$4 sm:$0xff]   ;;  %v666_v23 = vld [vmem:[%s728_s22 + $0x10] ss:$8 sps:$4 sm:$0xff]  }
  0x26   : > { %623 = vmatpush3.bf16.msra.mxu1 %v644_v5  ;;  %578 = vmatprep.subr.bf16.mxu0 %v645_v6  ;;  %v454_v47 = vld [vmem:[%s762_s30 + $0x18] sm:$0x1] }
  0x27   : > { %616 = vmatprep.subr.bf16.mxu1 %v645_v6 }
  0x29   : > { %579 = vmatpush3.bf16.msra.mxu0 %v646_v7 }
  0x2a   : > { %624 = vmatpush3.bf16.msra.mxu1 %v646_v7  ;;  %580 = vmatprep.subr.bf16.mxu0 %v647_v8 }
  0x2b   : > { %617 = vmatprep.subr.bf16.mxu1 %v647_v8 }
  0x2d   : > { %581 = vmatpush3.bf16.msra.mxu0 %v648_v9 }
  0x2e   : > { %625 = vmatpush3.bf16.msra.mxu1 %v648_v9  ;;  %582 = vmatprep.subr.bf16.mxu0 %v649_v10 }
  0x2f   : > { %618 = vmatprep.subr.bf16.mxu1 %v649_v10 }
  0x31   : > { %583 = vmatpush3.bf16.msra.mxu0 %v650_v11 }
  0x32   : > { %626 = vmatpush3.bf16.msra.mxu1 %v650_v11  ;;  %584 = vmatprep.subr.bf16.mxu0 %v651_v12 }
  0x33   : > { %619 = vmatprep.subr.bf16.mxu1 %v651_v12 }
  0x35   : > { %585 = vmatpush3.bf16.msra.mxu0 %v652_v13 }
  0x36   : > { %627 = vmatpush3.bf16.msra.mxu1 %v652_v13  ;;  %586 = vmatprep.subr.bf16.mxu0 %v653_v14 }
  0x37   : > { %620 = vmatprep.subr.bf16.mxu1 %v653_v14 }
  0x39   : > { %587 = vmatpush3.bf16.msra.mxu0 %v654_v15 }
  0x3a   : > { %628 = vmatpush3.bf16.msra.mxu1 %v654_v15  ;;  %588 = vmatprep.subr.bf16.mxu0 %v655_v16 }
  0x3b   : > { %621 = vmatprep.subr.bf16.mxu1 %v655_v16 }
  0x3d   : > { %589 = vmatpush3.bf16.msra.mxu0 %v656_v17 }
  0x3e   : > { %629 = vmatpush3.bf16.msra.mxu1 %v656_v17 }
  0x40   : > { %384 = vmatmul.mubr.bf16.vlgmr.msra.gmra.mxu0 %v657_v19 }
  0x41   : > { %400 = vmatmul.mubr.bf16.vlgmr.msra.gmra.mxu1 %v660_v20  ;;  %391 = vmatprep.mubr.bf16.mxu0 %v663_v21 }
  0x42   : > { %407 = vmatprep.mubr.bf16.mxu1 %v540_v22 }
  0x48   : > { %392 = vmatmul.mubr.bf16.gmra.mxu0 %v666_v23 }
  0x49   : > { %408 = vmatmul.mubr.bf16.gmra.mxu1 %v539_v24 }
 0x100   : > { %v590_v25 = vpop.f32.mrf.mxu0 }
 0x101   : > { %v602_v26 = vpop.f32.mrf.mxu1 }
 0x102   : > { %v591_v27 = vpop.f32.mrf.mxu0 }
 0x103   : > { %v603_v28 = vpop.f32.mrf.mxu1  ;;  %v592_v29 = vadd.f32 %v591_v27, %v590_v25 }
 0x104   : > { %v604_v30 = vadd.f32 %v603_v28, %v602_v26  ;;  %v593_v31 = vpop.f32.mrf.mxu0 }
 0x105   : > { %v605_v32 = vpop.f32.mrf.mxu1  ;;  %v567_v33 = vpack.c.bf16 %v592_v29, %v592_v29 }
 0x106   : > { %v571_v34 = vpack.c.bf16 %v604_v30, %v604_v30  ;;  %v594_v35 = vpop.f32.mrf.mxu0 }
 0x107   : > { %v606_v36 = vpop.f32.mrf.mxu1  ;;  %445 = vst.msk [vmem:[%s762_s30] sm:$0xf] %vm444_vm0, %v567_v33  ;;  %v595_v37 = vadd.f32 %v594_v35, %v593_v31 }
 0x108   : > { %449 = vst.msk [vmem:[%s762_s30 + $0x10] sm:$0xf] %vm444_vm0, %v571_v34  ;;  %v607_v38 = vadd.f32 %v606_v36, %v605_v32  ;;  %v596_v39 = vpop.f32.mrf.mxu0 }
 0x109   : > { %v608_v40 = vpop.f32.mrf.mxu1  ;;  %v568_v41 = vpack.c.bf16 %v595_v37, %v595_v37 }
 0x10a   : > { %v572_v42 = vpack.c.bf16 %v607_v38, %v607_v38  ;;  %v597_v43 = vpop.f32.mrf.mxu0 }
 0x10b   : > { %v609_v44 = vpop.f32.mrf.mxu1  ;;  %446 = vst.msk [vmem:[%s762_s30 + $0x4] sm:$0xf] %vm444_vm0, %v568_v41  ;;  %v598_v45 = vadd.f32 %v597_v43, %v596_v39 }
 0x10c   : > { %450 = vst.msk [vmem:[%s762_s30 + $0x14] sm:$0xf] %vm444_vm0, %v572_v42  ;;  %v610_v46 = vadd.f32 %v609_v44, %v608_v40  ;;  %v599_v48 = vpop.f32.mrf.mxu0 }
 0x10d   : > { %v611_v49 = vpop.f32.mrf.mxu1  ;;  %v569_v50 = vpack.c.bf16 %v598_v45, %v598_v45 }
 0x10e   : > { %v573_v51 = vpack.c.bf16 %v610_v46, %v610_v46  ;;  %v600_v52 = vpop.f32.mrf.mxu0 }
 0x10f   : > { %v612_v53 = vpop.f32.mrf.mxu1  ;;  %447 = vst.msk [vmem:[%s762_s30 + $0x8] sm:$0xf] %vm444_vm0, %v569_v50  ;;  %v601_v55 = vadd.f32 %v600_v52, %v599_v48 }
 0x110   : > { %v455_v54 = vsel %vm453_vm3, %v573_v51, %v454_v47 }
 0x111   : > { %456 = vst [vmem:[%s762_s30 + $0x18] sm:$0x1] %v455_v54  ;;  %v570_v56 = vpack.c.bf16 %v601_v55, %v601_v55 }
 0x113   : > { %448 = vst.msk [vmem:[%s762_s30 + $0xc] sm:$0xf] %vm444_vm0, %v570_v56 }
 0x114 PF: > { %s19_s17 = sadd.s32 1, %s688_s17  }
 0x115   : > { %p16_p10 = scmp.ge.s32.totalorder %s19_s17, 10  }
 0x117   :  { %18 = sbr.rel (!%p16_p10) target bundleno = 16 (0x10), region = 61 }

// kernel: vgg16_roihead_side2_forward.15
= control target key start
LH: loop header
LB: loop body
LE: loop exit
PB: predicated region body
PF: predicated region fallthrough
CT: control target
= control target key end

     0   :  { %s977_s12 = smov 0   ;;  %s979_s13 = smov 0   ;;  %s1150_s0 = inlined_call_operand.vmem [shape: bf16[16,256], index: 0, kind: input, shape index: {}]   ;;  %s1151_s1 = inlined_call_operand.vmem [shape: bf16[256,256], index: 1, kind: input, shape index: {}]   ;;  %s1152_s2 = inlined_call_operand.vmem [shape: f32[1,256], index: 2, kind: input, shape index: {}]   ;;  %s1153_s3 = inlined_call_operand.vmem [shape: bf16[16,256], index: 3, kind: output, shape index: {}]  }
   0x1   :  { %s981_s14 = smov 0   ;;  %s983_s15 = smov 0  }
   0x2   :  { %s985_s16 = smov 0  }
   0x3 LB: > { %s28_s17 = sadd.s32 1, %s951_s15  ;;  %s794_s18 = sadd.s32 4294967295, %s955_s16   ;;  %s955_s16 = sphi %s985_s16, %s13_s16   ;;  %s951_s15 = sphi %s983_s15, %s1158_s15   ;;  %s947_s14 = sphi %s981_s14, %s1157_s14   ;;  %s943_s13 = sphi %s979_s13, %s1156_s13   ;;  %s939_s12 = sphi %s977_s12, %s1155_s12  }
   0x4   : > { %p30_p0 = scmp.ge.s32.totalorder %s28_s17, 2  ;;  %p76_p1 = scmp.ne.s32.totalorder %s943_s13, %s939_s12 }
   0x5   : > { %p77_p2 = scmp.eq.s32.totalorder %s955_s16, 0  ;;  %p134_p4 = scmp.eq.s32.totalorder %s794_s18, 1 }
   0x6   : > { %s1160_s17 = smov (%p30_p0, %s28_s17), 0  ;;  %s69_s20 = sadd.s32 1, %s943_s13 }
   0x7   : > { %p78_p3 = por %p77_p2, %p76_p1  ;;  %s65_s19 = ssub.s32 %s951_s15, %s1160_s17 }
   0x8   : > { %p67_p5 = scmp.eq.s32.totalorder %s65_s19, 0  ;;  %p1012_p6 = por %p134_p4, %p76_p1 }
   0x9   : > { %p798_p7 = scmp.ge.s32.totalorder %s955_s16, 2 }
   0xa   : > { %s1017_s22 = scalar_select %p67_p5, %s943_s13, %s69_s20  }
   0xb   : > { %171 = sbr.rel (%p798_p7) target bundleno = 41 (0x29), region = 20 }
  0x10   : > { %174 = sbr.rel (!%p78_p3) target bundleno = 41 (0x29), region = 24  ;;  %s176_s23 = sand.u32 (%p78_p3), 1, %s943_s13  }
  0x11   : > { %s800_s24 = sshll.u32 (%p78_p3), %s951_s15, 2  ;;  %s799_s25 = sshll.u32 (%p78_p3), %s176_s23, 7 }
  0x12   : > { %s1025_s28 = scalar_lea.vmem (%p78_p3), %s1151_s1, %s800_s24  ;;  %s1029_s29 = scalar_lea.vmem (%p78_p3), [#allocation3], %s799_s25 }
  0x13   : > { %v200_v0 = vld [vmem:[%s1025_s28] sm:$0xf] (%p78_p3)  ;;  %v202_v1 = vld [vmem:[%s1025_s28 + $0x8] sm:$0xf] (%p78_p3)  ;;  %v204_v2 = vld [vmem:[%s1025_s28 + $0x10] sm:$0xf] (%p78_p3) }
  0x14   : > { %201 = vst [vmem:[%s1029_s29] sm:$0xf] (%p78_p3), %v200_v0  ;;  %203 = vst [vmem:[%s1029_s29 + $0x4] sm:$0xf] (%p78_p3), %v202_v1  ;;  %v206_v3 = vld [vmem:[%s1025_s28 + $0x18] sm:$0xf] (%p78_p3) }
  0x15   : > { %v208_v4 = vld [vmem:[%s1025_s28 + $0x20] sm:$0xf]  ;;  %205 = vst [vmem:[%s1029_s29 + $0x8] sm:$0xf] %v204_v2  ;;  %207 = vst [vmem:[%s1029_s29 + $0xc] sm:$0xf] %v206_v3 }
  0x16   : > { %209 = vst [vmem:[%s1029_s29 + $0x10] sm:$0xf] %v208_v4  ;;  %v210_v5 = vld [vmem:[%s1025_s28 + $0x28] sm:$0xf]  ;;  %v212_v6 = vld [vmem:[%s1025_s28 + $0x30] sm:$0xf] }
  0x17   : > { %v214_v7 = vld [vmem:[%s1025_s28 + $0x38] sm:$0xf]  ;;  %211 = vst [vmem:[%s1029_s29 + $0x14] sm:$0xf] %v210_v5  ;;  %213 = vst [vmem:[%s1029_s29 + $0x18] sm:$0xf] %v212_v6 }
  0x18   : > { %215 = vst [vmem:[%s1029_s29 + $0x1c] sm:$0xf] %v214_v7  ;;  %v216_v8 = vld [vmem:[%s1025_s28 + $0x40] sm:$0xf]  ;;  %v218_v9 = vld [vmem:[%s1025_s28 + $0x48] sm:$0xf] }
  0x19   : > { %v220_v10 = vld [vmem:[%s1025_s28 + $0x50] sm:$0xf]  ;;  %217 = vst [vmem:[%s1029_s29 + $0x20] sm:$0xf] %v216_v8  ;;  %219 = vst [vmem:[%s1029_s29 + $0x24] sm:$0xf] %v218_v9 }
  0x1a   : > { %221 = vst [vmem:[%s1029_s29 + $0x28] sm:$0xf] %v220_v10  ;;  %v222_v11 = vld [vmem:[%s1025_s28 + $0x58] sm:$0xf]  ;;  %v224_v12 = vld [vmem:[%s1025_s28 + $0x60] sm:$0xf] }
  0x1b   : > { %v226_v13 = vld [vmem:[%s1025_s28 + $0x68] sm:$0xf]  ;;  %223 = vst [vmem:[%s1029_s29 + $0x2c] sm:$0xf] %v222_v11  ;;  %225 = vst [vmem:[%s1029_s29 + $0x30] sm:$0xf] %v224_v12 }
  0x1c   : > { %227 = vst [vmem:[%s1029_s29 + $0x34] sm:$0xf] %v226_v13  ;;  %v228_v14 = vld [vmem:[%s1025_s28 + $0x70] sm:$0xf]  ;;  %v230_v15 = vld [vmem:[%s1025_s28 + $0x78] sm:$0xf] }
  0x1d   : > { %v232_v16 = vld [vmem:[%s1025_s28 + $0x80] sm:$0xf]  ;;  %229 = vst [vmem:[%s1029_s29 + $0x38] sm:$0xf] %v228_v14  ;;  %231 = vst [vmem:[%s1029_s29 + $0x3c] sm:$0xf] %v230_v15 }
  0x1e   : > { %233 = vst [vmem:[%s1029_s29 + $0x40] sm:$0xf] %v232_v16  ;;  %v234_v17 = vld [vmem:[%s1025_s28 + $0x88] sm:$0xf]  ;;  %v236_v18 = vld [vmem:[%s1025_s28 + $0x90] sm:$0xf] }
  0x1f   : > { %v238_v19 = vld [vmem:[%s1025_s28 + $0x98] sm:$0xf]  ;;  %235 = vst [vmem:[%s1029_s29 + $0x44] sm:$0xf] %v234_v17  ;;  %237 = vst [vmem:[%s1029_s29 + $0x48] sm:$0xf] %v236_v18 }
  0x20   : > { %239 = vst [vmem:[%s1029_s29 + $0x4c] sm:$0xf] %v238_v19  ;;  %v240_v20 = vld [vmem:[%s1025_s28 + $0xa0] sm:$0xf]  ;;  %v242_v21 = vld [vmem:[%s1025_s28 + $0xa8] sm:$0xf] }
  0x21   : > { %v244_v22 = vld [vmem:[%s1025_s28 + $0xb0] sm:$0xf]  ;;  %241 = vst [vmem:[%s1029_s29 + $0x50] sm:$0xf] %v240_v20  ;;  %243 = vst [vmem:[%s1029_s29 + $0x54] sm:$0xf] %v242_v21 }
  0x22   : > { %245 = vst [vmem:[%s1029_s29 + $0x58] sm:$0xf] %v244_v22  ;;  %v246_v23 = vld [vmem:[%s1025_s28 + $0xb8] sm:$0xf]  ;;  %v248_v24 = vld [vmem:[%s1025_s28 + $0xc0] sm:$0xf] }
  0x23   : > { %v250_v25 = vld [vmem:[%s1025_s28 + $0xc8] sm:$0xf]  ;;  %247 = vst [vmem:[%s1029_s29 + $0x5c] sm:$0xf] %v246_v23  ;;  %249 = vst [vmem:[%s1029_s29 + $0x60] sm:$0xf] %v248_v24 }
  0x24   : > { %251 = vst [vmem:[%s1029_s29 + $0x64] sm:$0xf] %v250_v25  ;;  %v252_v26 = vld [vmem:[%s1025_s28 + $0xd0] sm:$0xf]  ;;  %v254_v27 = vld [vmem:[%s1025_s28 + $0xd8] sm:$0xf] }
  0x25   : > { %v256_v28 = vld [vmem:[%s1025_s28 + $0xe0] sm:$0xf]  ;;  %253 = vst [vmem:[%s1029_s29 + $0x68] sm:$0xf] %v252_v26  ;;  %255 = vst [vmem:[%s1029_s29 + $0x6c] sm:$0xf] %v254_v27 }
  0x26   : > { %257 = vst [vmem:[%s1029_s29 + $0x70] sm:$0xf] %v256_v28  ;;  %v258_v29 = vld [vmem:[%s1025_s28 + $0xe8] sm:$0xf]  ;;  %v260_v30 = vld [vmem:[%s1025_s28 + $0xf0] sm:$0xf] }
  0x27   : > { %v262_v31 = vld [vmem:[%s1025_s28 + $0xf8] sm:$0xf]  ;;  %259 = vst [vmem:[%s1029_s29 + $0x74] sm:$0xf] %v258_v29  ;;  %261 = vst [vmem:[%s1029_s29 + $0x78] sm:$0xf] %v260_v30 }
  0x28   : > { %263 = vst [vmem:[%s1029_s29 + $0x7c] sm:$0xf] %v262_v31 }
  0x29 PF: > { %p801_p8 = scmp.ge.s32.totalorder %s955_s16, 1  ;;  %p356_p9 = scmp.lt.s32.totalorder %s955_s16, 3 }
  0x2b   : > { %p357_p10 = pnand %p801_p8, %p356_p9 }
  0x2c   : > { %s363_s30 = sand.u32 (!%p357_p10), 1, %s939_s12   ;;  %p411_p11 = scmp.lt.s32.totalorder (!%p357_p10), %s947_s14, 1 }
  0x2d   : > { %360 = sbr.rel (%p357_p10) target bundleno = 299 (0x12b), region = 69  ;;  %s802_s4 = sshll.u32 (!%p357_p10), %s363_s30, 7 }
  0x2e   : > { %s1101_s7 = scalar_lea.vmem (!%p357_p10), [#allocation3], %s802_s4  ;;  %s803_s20 = sshll.u32 (!%p357_p10), %s363_s30, 3 }
  0x2f   : > { %s397_s23 = scalar_lea.vmem (!%p357_p10), [#allocation4], %s803_s20 }
  0x32   : > { %v916_v32 = vld [vmem:[%s1150_s0 + $0x4] ss:$8 sps:$4 sm:$0xff]   ;;  %v898_v33 = vld [vmem:[%s1101_s7 + $0x78] sm:$0xff]   ;;  %v900_v35 = vld [vmem:[%s1101_s7 + $0x70] sm:$0xff]   ;;  %s412_s10 = scalar_select %p411_p11, %s947_s14, 1 }
  0x33   : > { %596 = vmatprep.mubr.bf16.mxu0 %v916_v32  ;;  %v899_v34 = vld [vmem:[%s1101_s7 + $0x38] sm:$0xff]   ;;  %836 = vmatprep.subr.bf16.mxu0 %v898_v33  ;;  %v901_v36 = vld [vmem:[%s1101_s7 + $0x30] sm:$0xff]   ;;  %v902_v37 = vld [vmem:[%s1101_s7 + $0x68] sm:$0xff]   ;;  %s826_s24 = sshll.u32 (%p1012_p6), %s947_s14, 2 }
  0x34   : > { %837 = vmatpush3.bf16.msra.mxu0 %v899_v34  ;;  %v903_v38 = vld [vmem:[%s1101_s7 + $0x28] sm:$0xff]   ;;  %v904_v39 = vld [vmem:[%s1101_s7 + $0x60] sm:$0xff]   ;;  %v906_v41 = vld [vmem:[%s1101_s7 + $0x58] sm:$0xff]   ;;  %s413_s19 = scalar_lea.vmem %s1152_s2, %s412_s10  ;;  %s646_s27 = scalar_lea.vmem (%p1012_p6), %s1153_s3, %s826_s24 }
  0x35   : > { %838 = vmatprep.subr.bf16.mxu0 %v900_v35  ;;  %v905_v40 = vld [vmem:[%s1101_s7 + $0x20] sm:$0xff]   ;;  %v907_v42 = vld [vmem:[%s1101_s7 + $0x18] sm:$0xff]   ;;  %v908_v43 = vld [vmem:[%s1101_s7 + $0x50] sm:$0xff]  }
  0x36   : > { %v909_v44 = vld [vmem:[%s1101_s7 + $0x10] sm:$0xff]   ;;  %v910_v45 = vld [vmem:[%s1101_s7 + $0x48] sm:$0xff]   ;;  %v912_v47 = vld [vmem:[%s1101_s7 + $0x40] sm:$0xff]  }
  0x37   : > { %v911_v46 = vld [vmem:[%s1101_s7 + $0x8] sm:$0xff]   ;;  %v913_v48 = vld [vmem:[%s1101_s7] sm:$0xff]  }
  0x38   : > { %839 = vmatpush3.bf16.msra.mxu0 %v901_v36  ;;  %v914_v49 = vld [vmem:[%s1150_s0] ss:$8 sps:$4 sm:$0xff]  }
  0x39   : > { %840 = vmatprep.subr.bf16.mxu0 %v902_v37  ;;  %v822_v53 = vld [vmem:[%s413_s19] ss:$0 sm:$0xff] }
  0x3c   : > { %841 = vmatpush3.bf16.msra.mxu0 %v903_v38 }
  0x3d   : > { %842 = vmatprep.subr.bf16.mxu0 %v904_v39 }
  0x40   : > { %843 = vmatpush3.bf16.msra.mxu0 %v905_v40 }
  0x41   : > { %844 = vmatprep.subr.bf16.mxu0 %v906_v41 }
  0x44   : > { %845 = vmatpush3.bf16.msra.mxu0 %v907_v42 }
  0x45   : > { %846 = vmatprep.subr.bf16.mxu0 %v908_v43 }
  0x48   : > { %847 = vmatpush3.bf16.msra.mxu0 %v909_v44 }
  0x49   : > { %848 = vmatprep.subr.bf16.mxu0 %v910_v45 }
  0x4c   : > { %849 = vmatpush3.bf16.msra.mxu0 %v911_v46 }
  0x4d   : > { %850 = vmatprep.subr.bf16.mxu0 %v912_v47 }
  0x50   : > { %851 = vmatpush3.bf16.msra.mxu0 %v913_v48 }
  0x53   : > { %597 = vmatmul.mubr.bf16.vlgmr.msra.gmra.mxu0 %v914_v49 }
 0x113   : > { %v852_v50 = vpop.f32.mrf.mxu0 }
 0x115   : > { %v853_v51 = vpop.f32.mrf.mxu0 }
 0x116   : > { %v854_v52 = vadd.f32 %v853_v51, %v852_v50 }
 0x117   : > { %v855_v54 = vpop.f32.mrf.mxu0 }
 0x118   : > { %v621_v56 = vadd.f32 %v854_v52, %v822_v53 }
 0x119   : > { %v856_v55 = vpop.f32.mrf.mxu0 }
 0x11a   : > { %v857_v57 = vadd.f32 %v856_v55, %v855_v54  ;;  %v623_v59 = vmax.f32 %v621_v56, 0.0 }
 0x11c   : > { %v622_v58 = vadd.f32 %v857_v57, %v822_v53 }
 0x11e   : > { %v624_v60 = vmax.f32 %v622_v58, 0.0  ;;  %641 = sbr.rel (!%p1012_p6) target bundleno = 299 (0x12b), region = 85 }
 0x120   : > { %v834_v61 = vpack.c.bf16 %v624_v60, %v623_v59 }
 0x122   : > { %835 = vst [vmem:[%s397_s23] sm:$0xff] %v834_v61  }
 0x129   : > { %v663_v62 = vld [vmem:[%s397_s23] sm:$0xf]  ;;  %v665_v63 = vld [vmem:[%s397_s23 + $0x4] sm:$0xf] }
 0x12a   : > { %664 = vst [vmem:[%s646_s27] sm:$0xf] %v663_v62  ;;  %666 = vst [vmem:[%s646_s27 + $0x8] sm:$0xf] %v665_v63 }
 0x12b PF: > { %s13_s16 = sadd.s32 1, %s955_s16   ;;  %s1155_s12 = smov %s943_s13 }
 0x12c   : > { %p10_p12 = scmp.ge.s32.totalorder %s13_s16, 4   ;;  %s1156_s13 = smov %s1017_s22 }
 0x12d   : > { %s1157_s14 = smov %s951_s15  ;;  %s1158_s15 = smov %s1160_s17 }
 0x12e   :  { %12 = sbr.rel (!%p10_p12) target bundleno = 3 (0x3), region = 163 }

// kernel: vgg16_roihead_side2_forward.14
= control target key start
LH: loop header
LB: loop body
LE: loop exit
PB: predicated region body
PF: predicated region fallthrough
CT: control target
= control target key end

     0   :  { %s3045_s12 = smov 0   ;;  %s3047_s13 = smov 0   ;;  %s3691_s0 = inlined_call_operand.vmem [shape: bf16[16,1664], index: 0, kind: input, shape index: {}]   ;;  %s3692_s1 = inlined_call_operand.vmem [shape: bf16[1664,256], index: 1, kind: input, shape index: {}]   ;;  %s3693_s2 = inlined_call_operand.vmem [shape: f32[1,256], index: 2, kind: input, shape index: {}]   ;;  %s3694_s3 = inlined_call_operand.vmem [shape: bf16[16,256], index: 3, kind: output, shape index: {}]  }
   0x1   :  { %s3049_s14 = smov 0   ;;  %s3051_s15 = smov 0  }
   0x2   :  { %s3053_s16 = smov 0  }
   0x3 LB: > { %s28_s17 = sadd.s32 1, %s3017_s15  ;;  %s2516_s18 = sadd.s32 4294967295, %s3021_s16   ;;  %s3021_s16 = sphi %s3053_s16, %s13_s16   ;;  %s3017_s15 = sphi %s3051_s15, %s3699_s15   ;;  %s3013_s14 = sphi %s3049_s14, %s3698_s14   ;;  %s3009_s13 = sphi %s3047_s13, %s3697_s13   ;;  %s3005_s12 = sphi %s3045_s12, %s3696_s12  }
   0x4   : > { %p30_p0 = scmp.ge.s32.totalorder %s28_s17, 2  ;;  %p76_p1 = scmp.ne.s32.totalorder %s3009_s13, %s3005_s12 }
   0x5   : > { %p77_p2 = scmp.eq.s32.totalorder %s3021_s16, 0  ;;  %p134_p4 = scmp.eq.s32.totalorder %s2516_s18, 1 }
   0x6   : > { %s3701_s17 = smov (%p30_p0, %s28_s17), 0  ;;  %s69_s20 = sadd.s32 1, %s3009_s13 }
   0x7   : > { %p78_p3 = por %p77_p2, %p76_p1  ;;  %s65_s19 = ssub.s32 %s3017_s15, %s3701_s17 }
   0x8   : > { %p67_p5 = scmp.eq.s32.totalorder %s65_s19, 0  ;;  %p3080_p6 = por %p134_p4, %p76_p1 }
   0x9   : > { %p2520_p7 = scmp.ge.s32.totalorder %s3021_s16, 2 }
   0xa   : > { %s3085_s22 = scalar_select %p67_p5, %s3009_s13, %s69_s20  }
   0xb   : > { %171 = sbr.rel (%p2520_p7) target bundleno = 159 (0x9f), region = 20 }
  0x10   : > { %174 = sbr.rel (!%p78_p3) target bundleno = 159 (0x9f), region = 24  ;;  %s176_s23 = sand.u32 (%p78_p3), 1, %s3009_s13  }
  0x11   : > { %s2521_s24 = sshll.u32 (%p78_p3), %s3017_s15, 2  ;;  %s2816_s25 = smul.u32 (%p78_p3), 832, %s176_s23 }
  0x12   : > { %s3093_s28 = scalar_lea.vmem (%p78_p3), %s3692_s1, %s2521_s24 }
  0x13   : > { %v200_v0 = vld [vmem:[%s3093_s28] sm:$0xf] (%p78_p3)  ;;  %v202_v1 = vld [vmem:[%s3093_s28 + $0x8] sm:$0xf] (%p78_p3)  ;;  %v204_v2 = vld [vmem:[%s3093_s28 + $0x10] sm:$0xf] (%p78_p3) }
  0x14   : > { %v206_v3 = vld [vmem:[%s3093_s28 + $0x18] sm:$0xf] (%p78_p3)  ;;  %v208_v4 = vld [vmem:[%s3093_s28 + $0x20] sm:$0xf] (%p78_p3)  ;;  %s3100_s29 = scalar_lea.vmem (%p78_p3), [#allocation3], %s2816_s25 }
  0x15   : > { %201 = vst [vmem:[%s3100_s29] sm:$0xf] %v200_v0  ;;  %203 = vst [vmem:[%s3100_s29 + $0x4] sm:$0xf] %v202_v1  ;;  %v210_v5 = vld [vmem:[%s3093_s28 + $0x28] sm:$0xf] }
  0x16   : > { %205 = vst [vmem:[%s3100_s29 + $0x8] sm:$0xf] %v204_v2  ;;  %207 = vst [vmem:[%s3100_s29 + $0xc] sm:$0xf] %v206_v3  ;;  %v212_v6 = vld [vmem:[%s3093_s28 + $0x30] sm:$0xf] }
  0x17   : > { %209 = vst [vmem:[%s3100_s29 + $0x10] sm:$0xf] %v208_v4  ;;  %v214_v7 = vld [vmem:[%s3093_s28 + $0x38] sm:$0xf]  ;;  %211 = vst [vmem:[%s3100_s29 + $0x14] sm:$0xf] %v210_v5 }
  0x18   : > { %213 = vst [vmem:[%s3100_s29 + $0x18] sm:$0xf] %v212_v6  ;;  %215 = vst [vmem:[%s3100_s29 + $0x1c] sm:$0xf] %v214_v7  ;;  %v216_v8 = vld [vmem:[%s3093_s28 + $0x40] sm:$0xf] }
  0x19   : > { %v218_v9 = vld [vmem:[%s3093_s28 + $0x48] sm:$0xf]  ;;  %v220_v10 = vld [vmem:[%s3093_s28 + $0x50] sm:$0xf]  ;;  %217 = vst [vmem:[%s3100_s29 + $0x20] sm:$0xf] %v216_v8 }
  0x1a   : > { %219 = vst [vmem:[%s3100_s29 + $0x24] sm:$0xf] %v218_v9  ;;  %221 = vst [vmem:[%s3100_s29 + $0x28] sm:$0xf] %v220_v10  ;;  %v222_v11 = vld [vmem:[%s3093_s28 + $0x58] sm:$0xf] }
  0x1b   : > { %v224_v12 = vld [vmem:[%s3093_s28 + $0x60] sm:$0xf]  ;;  %v226_v13 = vld [vmem:[%s3093_s28 + $0x68] sm:$0xf]  ;;  %223 = vst [vmem:[%s3100_s29 + $0x2c] sm:$0xf] %v222_v11 }
  0x1c   : > { %225 = vst [vmem:[%s3100_s29 + $0x30] sm:$0xf] %v224_v12  ;;  %227 = vst [vmem:[%s3100_s29 + $0x34] sm:$0xf] %v226_v13  ;;  %v228_v14 = vld [vmem:[%s3093_s28 + $0x70] sm:$0xf] }
  0x1d   : > { %v230_v15 = vld [vmem:[%s3093_s28 + $0x78] sm:$0xf]  ;;  %v232_v16 = vld [vmem:[%s3093_s28 + $0x80] sm:$0xf]  ;;  %229 = vst [vmem:[%s3100_s29 + $0x38] sm:$0xf] %v228_v14 }
  0x1e   : > { %231 = vst [vmem:[%s3100_s29 + $0x3c] sm:$0xf] %v230_v15  ;;  %233 = vst [vmem:[%s3100_s29 + $0x40] sm:$0xf] %v232_v16  ;;  %v234_v17 = vld [vmem:[%s3093_s28 + $0x88] sm:$0xf] }
  0x1f   : > { %v236_v18 = vld [vmem:[%s3093_s28 + $0x90] sm:$0xf]  ;;  %v238_v19 = vld [vmem:[%s3093_s28 + $0x98] sm:$0xf]  ;;  %235 = vst [vmem:[%s3100_s29 + $0x44] sm:$0xf] %v234_v17 }
  0x20   : > { %237 = vst [vmem:[%s3100_s29 + $0x48] sm:$0xf] %v236_v18  ;;  %239 = vst [vmem:[%s3100_s29 + $0x4c] sm:$0xf] %v238_v19  ;;  %v240_v20 = vld [vmem:[%s3093_s28 + $0xa0] sm:$0xf] }
  0x21   : > { %v242_v21 = vld [vmem:[%s3093_s28 + $0xa8] sm:$0xf]  ;;  %v244_v22 = vld [vmem:[%s3093_s28 + $0xb0] sm:$0xf]  ;;  %241 = vst [vmem:[%s3100_s29 + $0x50] sm:$0xf] %v240_v20 }
  0x22   : > { %243 = vst [vmem:[%s3100_s29 + $0x54] sm:$0xf] %v242_v21  ;;  %245 = vst [vmem:[%s3100_s29 + $0x58] sm:$0xf] %v244_v22  ;;  %v246_v23 = vld [vmem:[%s3093_s28 + $0xb8] sm:$0xf] }
  0x23   : > { %v248_v24 = vld [vmem:[%s3093_s28 + $0xc0] sm:$0xf]  ;;  %v250_v25 = vld [vmem:[%s3093_s28 + $0xc8] sm:$0xf]  ;;  %247 = vst [vmem:[%s3100_s29 + $0x5c] sm:$0xf] %v246_v23 }
  0x24   : > { %249 = vst [vmem:[%s3100_s29 + $0x60] sm:$0xf] %v248_v24  ;;  %251 = vst [vmem:[%s3100_s29 + $0x64] sm:$0xf] %v250_v25  ;;  %v252_v26 = vld [vmem:[%s3093_s28 + $0xd0] sm:$0xf] }
  0x25   : > { %v254_v27 = vld [vmem:[%s3093_s28 + $0xd8] sm:$0xf]  ;;  %v256_v28 = vld [vmem:[%s3093_s28 + $0xe0] sm:$0xf]  ;;  %253 = vst [vmem:[%s3100_s29 + $0x68] sm:$0xf] %v252_v26 }
  0x26   : > { %255 = vst [vmem:[%s3100_s29 + $0x6c] sm:$0xf] %v254_v27  ;;  %257 = vst [vmem:[%s3100_s29 + $0x70] sm:$0xf] %v256_v28  ;;  %v258_v29 = vld [vmem:[%s3093_s28 + $0xe8] sm:$0xf] }
  0x27   : > { %v260_v30 = vld [vmem:[%s3093_s28 + $0xf0] sm:$0xf]  ;;  %v262_v31 = vld [vmem:[%s3093_s28 + $0xf8] sm:$0xf]  ;;  %259 = vst [vmem:[%s3100_s29 + $0x74] sm:$0xf] %v258_v29 }
  0x28   : > { %261 = vst [vmem:[%s3100_s29 + $0x78] sm:$0xf] %v260_v30  ;;  %263 = vst [vmem:[%s3100_s29 + $0x7c] sm:$0xf] %v262_v31  ;;  %v264_v32 = vld [vmem:[%s3093_s28 + $0x100] sm:$0xf] }
  0x29   : > { %v266_v33 = vld [vmem:[%s3093_s28 + $0x108] sm:$0xf]  ;;  %v268_v34 = vld [vmem:[%s3093_s28 + $0x110] sm:$0xf]  ;;  %265 = vst [vmem:[%s3100_s29 + $0x80] sm:$0xf] %v264_v32 }
  0x2a   : > { %267 = vst [vmem:[%s3100_s29 + $0x84] sm:$0xf] %v266_v33  ;;  %269 = vst [vmem:[%s3100_s29 + $0x88] sm:$0xf] %v268_v34  ;;  %v270_v35 = vld [vmem:[%s3093_s28 + $0x118] sm:$0xf] }
  0x2b   : > { %v272_v36 = vld [vmem:[%s3093_s28 + $0x120] sm:$0xf]  ;;  %v274_v37 = vld [vmem:[%s3093_s28 + $0x128] sm:$0xf]  ;;  %271 = vst [vmem:[%s3100_s29 + $0x8c] sm:$0xf] %v270_v35 }
  0x2c   : > { %273 = vst [vmem:[%s3100_s29 + $0x90] sm:$0xf] %v272_v36  ;;  %275 = vst [vmem:[%s3100_s29 + $0x94] sm:$0xf] %v274_v37  ;;  %v276_v38 = vld [vmem:[%s3093_s28 + $0x130] sm:$0xf] }
  0x2d   : > { %v278_v39 = vld [vmem:[%s3093_s28 + $0x138] sm:$0xf]  ;;  %v280_v40 = vld [vmem:[%s3093_s28 + $0x140] sm:$0xf]  ;;  %277 = vst [vmem:[%s3100_s29 + $0x98] sm:$0xf] %v276_v38 }
  0x2e   : > { %279 = vst [vmem:[%s3100_s29 + $0x9c] sm:$0xf] %v278_v39  ;;  %281 = vst [vmem:[%s3100_s29 + $0xa0] sm:$0xf] %v280_v40  ;;  %v282_v41 = vld [vmem:[%s3093_s28 + $0x148] sm:$0xf] }
  0x2f   : > { %v284_v42 = vld [vmem:[%s3093_s28 + $0x150] sm:$0xf]  ;;  %v286_v43 = vld [vmem:[%s3093_s28 + $0x158] sm:$0xf]  ;;  %283 = vst [vmem:[%s3100_s29 + $0xa4] sm:$0xf] %v282_v41 }
  0x30   : > { %285 = vst [vmem:[%s3100_s29 + $0xa8] sm:$0xf] %v284_v42  ;;  %287 = vst [vmem:[%s3100_s29 + $0xac] sm:$0xf] %v286_v43  ;;  %v288_v44 = vld [vmem:[%s3093_s28 + $0x160] sm:$0xf] }
  0x31   : > { %v290_v45 = vld [vmem:[%s3093_s28 + $0x168] sm:$0xf]  ;;  %v292_v46 = vld [vmem:[%s3093_s28 + $0x170] sm:$0xf]  ;;  %289 = vst [vmem:[%s3100_s29 + $0xb0] sm:$0xf] %v288_v44 }
  0x32   : > { %291 = vst [vmem:[%s3100_s29 + $0xb4] sm:$0xf] %v290_v45  ;;  %293 = vst [vmem:[%s3100_s29 + $0xb8] sm:$0xf] %v292_v46  ;;  %v294_v47 = vld [vmem:[%s3093_s28 + $0x178] sm:$0xf] }
  0x33   : > { %v296_v48 = vld [vmem:[%s3093_s28 + $0x180] sm:$0xf]  ;;  %v298_v49 = vld [vmem:[%s3093_s28 + $0x188] sm:$0xf]  ;;  %295 = vst [vmem:[%s3100_s29 + $0xbc] sm:$0xf] %v294_v47 }
  0x34   : > { %297 = vst [vmem:[%s3100_s29 + $0xc0] sm:$0xf] %v296_v48  ;;  %299 = vst [vmem:[%s3100_s29 + $0xc4] sm:$0xf] %v298_v49  ;;  %v300_v50 = vld [vmem:[%s3093_s28 + $0x190] sm:$0xf] }
  0x35   : > { %v302_v51 = vld [vmem:[%s3093_s28 + $0x198] sm:$0xf]  ;;  %v304_v52 = vld [vmem:[%s3093_s28 + $0x1a0] sm:$0xf]  ;;  %301 = vst [vmem:[%s3100_s29 + $0xc8] sm:$0xf] %v300_v50 }
  0x36   : > { %303 = vst [vmem:[%s3100_s29 + $0xcc] sm:$0xf] %v302_v51  ;;  %305 = vst [vmem:[%s3100_s29 + $0xd0] sm:$0xf] %v304_v52  ;;  %v306_v53 = vld [vmem:[%s3093_s28 + $0x1a8] sm:$0xf] }
  0x37   : > { %v308_v54 = vld [vmem:[%s3093_s28 + $0x1b0] sm:$0xf]  ;;  %v310_v55 = vld [vmem:[%s3093_s28 + $0x1b8] sm:$0xf]  ;;  %307 = vst [vmem:[%s3100_s29 + $0xd4] sm:$0xf] %v306_v53 }
  0x38   : > { %309 = vst [vmem:[%s3100_s29 + $0xd8] sm:$0xf] %v308_v54  ;;  %311 = vst [vmem:[%s3100_s29 + $0xdc] sm:$0xf] %v310_v55  ;;  %v312_v56 = vld [vmem:[%s3093_s28 + $0x1c0] sm:$0xf] }
  0x39   : > { %v314_v57 = vld [vmem:[%s3093_s28 + $0x1c8] sm:$0xf]  ;;  %v316_v58 = vld [vmem:[%s3093_s28 + $0x1d0] sm:$0xf]  ;;  %313 = vst [vmem:[%s3100_s29 + $0xe0] sm:$0xf] %v312_v56 }
  0x3a   : > { %315 = vst [vmem:[%s3100_s29 + $0xe4] sm:$0xf] %v314_v57  ;;  %317 = vst [vmem:[%s3100_s29 + $0xe8] sm:$0xf] %v316_v58  ;;  %v318_v59 = vld [vmem:[%s3093_s28 + $0x1d8] sm:$0xf] }
  0x3b   : > { %v320_v60 = vld [vmem:[%s3093_s28 + $0x1e0] sm:$0xf]  ;;  %v322_v61 = vld [vmem:[%s3093_s28 + $0x1e8] sm:$0xf]  ;;  %319 = vst [vmem:[%s3100_s29 + $0xec] sm:$0xf] %v318_v59 }
  0x3c   : > { %321 = vst [vmem:[%s3100_s29 + $0xf0] sm:$0xf] %v320_v60  ;;  %323 = vst [vmem:[%s3100_s29 + $0xf4] sm:$0xf] %v322_v61  ;;  %v324_v62 = vld [vmem:[%s3093_s28 + $0x1f0] sm:$0xf] }
  0x3d   : > { %v326_v63 = vld [vmem:[%s3093_s28 + $0x1f8] sm:$0xf]  ;;  %v328_v0 = vld [vmem:[%s3093_s28 + $0x200] sm:$0xf]  ;;  %325 = vst [vmem:[%s3100_s29 + $0xf8] sm:$0xf] %v324_v62 }
  0x3e   : > { %327 = vst [vmem:[%s3100_s29 + $0xfc] sm:$0xf] %v326_v63  ;;  %329 = vst [vmem:[%s3100_s29 + $0x100] sm:$0xf] %v328_v0  ;;  %v330_v1 = vld [vmem:[%s3093_s28 + $0x208] sm:$0xf] }
  0x3f   : > { %v332_v2 = vld [vmem:[%s3093_s28 + $0x210] sm:$0xf]  ;;  %v334_v3 = vld [vmem:[%s3093_s28 + $0x218] sm:$0xf]  ;;  %331 = vst [vmem:[%s3100_s29 + $0x104] sm:$0xf] %v330_v1 }
  0x40   : > { %333 = vst [vmem:[%s3100_s29 + $0x108] sm:$0xf] %v332_v2  ;;  %335 = vst [vmem:[%s3100_s29 + $0x10c] sm:$0xf] %v334_v3  ;;  %v336_v4 = vld [vmem:[%s3093_s28 + $0x220] sm:$0xf] }
  0x41   : > { %v338_v5 = vld [vmem:[%s3093_s28 + $0x228] sm:$0xf]  ;;  %v340_v6 = vld [vmem:[%s3093_s28 + $0x230] sm:$0xf]  ;;  %337 = vst [vmem:[%s3100_s29 + $0x110] sm:$0xf] %v336_v4 }
  0x42   : > { %339 = vst [vmem:[%s3100_s29 + $0x114] sm:$0xf] %v338_v5  ;;  %341 = vst [vmem:[%s3100_s29 + $0x118] sm:$0xf] %v340_v6  ;;  %v342_v7 = vld [vmem:[%s3093_s28 + $0x238] sm:$0xf] }
  0x43   : > { %v344_v8 = vld [vmem:[%s3093_s28 + $0x240] sm:$0xf]  ;;  %v346_v9 = vld [vmem:[%s3093_s28 + $0x248] sm:$0xf]  ;;  %343 = vst [vmem:[%s3100_s29 + $0x11c] sm:$0xf] %v342_v7 }
  0x44   : > { %345 = vst [vmem:[%s3100_s29 + $0x120] sm:$0xf] %v344_v8  ;;  %347 = vst [vmem:[%s3100_s29 + $0x124] sm:$0xf] %v346_v9  ;;  %v348_v10 = vld [vmem:[%s3093_s28 + $0x250] sm:$0xf] }
  0x45   : > { %v350_v11 = vld [vmem:[%s3093_s28 + $0x258] sm:$0xf]  ;;  %v352_v12 = vld [vmem:[%s3093_s28 + $0x260] sm:$0xf]  ;;  %349 = vst [vmem:[%s3100_s29 + $0x128] sm:$0xf] %v348_v10 }
  0x46   : > { %351 = vst [vmem:[%s3100_s29 + $0x12c] sm:$0xf] %v350_v11  ;;  %353 = vst [vmem:[%s3100_s29 + $0x130] sm:$0xf] %v352_v12  ;;  %v354_v13 = vld [vmem:[%s3093_s28 + $0x268] sm:$0xf] }
  0x47   : > { %v356_v14 = vld [vmem:[%s3093_s28 + $0x270] sm:$0xf]  ;;  %v358_v15 = vld [vmem:[%s3093_s28 + $0x278] sm:$0xf]  ;;  %355 = vst [vmem:[%s3100_s29 + $0x134] sm:$0xf] %v354_v13 }
  0x48   : > { %357 = vst [vmem:[%s3100_s29 + $0x138] sm:$0xf] %v356_v14  ;;  %359 = vst [vmem:[%s3100_s29 + $0x13c] sm:$0xf] %v358_v15  ;;  %v360_v16 = vld [vmem:[%s3093_s28 + $0x280] sm:$0xf] }
  0x49   : > { %v362_v17 = vld [vmem:[%s3093_s28 + $0x288] sm:$0xf]  ;;  %v364_v18 = vld [vmem:[%s3093_s28 + $0x290] sm:$0xf]  ;;  %361 = vst [vmem:[%s3100_s29 + $0x140] sm:$0xf] %v360_v16 }
  0x4a   : > { %363 = vst [vmem:[%s3100_s29 + $0x144] sm:$0xf] %v362_v17  ;;  %365 = vst [vmem:[%s3100_s29 + $0x148] sm:$0xf] %v364_v18  ;;  %v366_v19 = vld [vmem:[%s3093_s28 + $0x298] sm:$0xf] }
  0x4b   : > { %v368_v20 = vld [vmem:[%s3093_s28 + $0x2a0] sm:$0xf]  ;;  %v370_v21 = vld [vmem:[%s3093_s28 + $0x2a8] sm:$0xf]  ;;  %367 = vst [vmem:[%s3100_s29 + $0x14c] sm:$0xf] %v366_v19 }
  0x4c   : > { %369 = vst [vmem:[%s3100_s29 + $0x150] sm:$0xf] %v368_v20  ;;  %371 = vst [vmem:[%s3100_s29 + $0x154] sm:$0xf] %v370_v21  ;;  %v372_v22 = vld [vmem:[%s3093_s28 + $0x2b0] sm:$0xf] }
  0x4d   : > { %v374_v23 = vld [vmem:[%s3093_s28 + $0x2b8] sm:$0xf]  ;;  %v376_v24 = vld [vmem:[%s3093_s28 + $0x2c0] sm:$0xf]  ;;  %373 = vst [vmem:[%s3100_s29 + $0x158] sm:$0xf] %v372_v22 }
  0x4e   : > { %375 = vst [vmem:[%s3100_s29 + $0x15c] sm:$0xf] %v374_v23  ;;  %377 = vst [vmem:[%s3100_s29 + $0x160] sm:$0xf] %v376_v24  ;;  %v378_v25 = vld [vmem:[%s3093_s28 + $0x2c8] sm:$0xf] }
  0x4f   : > { %v380_v26 = vld [vmem:[%s3093_s28 + $0x2d0] sm:$0xf]  ;;  %v382_v27 = vld [vmem:[%s3093_s28 + $0x2d8] sm:$0xf]  ;;  %379 = vst [vmem:[%s3100_s29 + $0x164] sm:$0xf] %v378_v25 }
  0x50   : > { %381 = vst [vmem:[%s3100_s29 + $0x168] sm:$0xf] %v380_v26  ;;  %383 = vst [vmem:[%s3100_s29 + $0x16c] sm:$0xf] %v382_v27  ;;  %v384_v28 = vld [vmem:[%s3093_s28 + $0x2e0] sm:$0xf] }
  0x51   : > { %v386_v29 = vld [vmem:[%s3093_s28 + $0x2e8] sm:$0xf]  ;;  %v388_v30 = vld [vmem:[%s3093_s28 + $0x2f0] sm:$0xf]  ;;  %385 = vst [vmem:[%s3100_s29 + $0x170] sm:$0xf] %v384_v28 }
  0x52   : > { %387 = vst [vmem:[%s3100_s29 + $0x174] sm:$0xf] %v386_v29  ;;  %389 = vst [vmem:[%s3100_s29 + $0x178] sm:$0xf] %v388_v30  ;;  %v390_v31 = vld [vmem:[%s3093_s28 + $0x2f8] sm:$0xf] }
  0x53   : > { %v392_v32 = vld [vmem:[%s3093_s28 + $0x300] sm:$0xf]  ;;  %v394_v33 = vld [vmem:[%s3093_s28 + $0x308] sm:$0xf]  ;;  %391 = vst [vmem:[%s3100_s29 + $0x17c] sm:$0xf] %v390_v31 }
  0x54   : > { %393 = vst [vmem:[%s3100_s29 + $0x180] sm:$0xf] %v392_v32  ;;  %395 = vst [vmem:[%s3100_s29 + $0x184] sm:$0xf] %v394_v33  ;;  %v396_v34 = vld [vmem:[%s3093_s28 + $0x310] sm:$0xf] }
  0x55   : > { %v398_v35 = vld [vmem:[%s3093_s28 + $0x318] sm:$0xf]  ;;  %v400_v36 = vld [vmem:[%s3093_s28 + $0x320] sm:$0xf]  ;;  %397 = vst [vmem:[%s3100_s29 + $0x188] sm:$0xf] %v396_v34 }
  0x56   : > { %399 = vst [vmem:[%s3100_s29 + $0x18c] sm:$0xf] %v398_v35  ;;  %401 = vst [vmem:[%s3100_s29 + $0x190] sm:$0xf] %v400_v36  ;;  %v402_v37 = vld [vmem:[%s3093_s28 + $0x328] sm:$0xf] }
  0x57   : > { %v404_v38 = vld [vmem:[%s3093_s28 + $0x330] sm:$0xf]  ;;  %v406_v39 = vld [vmem:[%s3093_s28 + $0x338] sm:$0xf]  ;;  %403 = vst [vmem:[%s3100_s29 + $0x194] sm:$0xf] %v402_v37 }
  0x58   : > { %405 = vst [vmem:[%s3100_s29 + $0x198] sm:$0xf] %v404_v38  ;;  %407 = vst [vmem:[%s3100_s29 + $0x19c] sm:$0xf] %v406_v39  ;;  %v408_v40 = vld [vmem:[%s3093_s28 + $0x340] sm:$0xf] }
  0x59   : > { %v410_v41 = vld [vmem:[%s3093_s28 + $0x348] sm:$0xf]  ;;  %v412_v42 = vld [vmem:[%s3093_s28 + $0x350] sm:$0xf]  ;;  %409 = vst [vmem:[%s3100_s29 + $0x1a0] sm:$0xf] %v408_v40 }
  0x5a   : > { %411 = vst [vmem:[%s3100_s29 + $0x1a4] sm:$0xf] %v410_v41  ;;  %413 = vst [vmem:[%s3100_s29 + $0x1a8] sm:$0xf] %v412_v42  ;;  %v414_v43 = vld [vmem:[%s3093_s28 + $0x358] sm:$0xf] }
  0x5b   : > { %v416_v44 = vld [vmem:[%s3093_s28 + $0x360] sm:$0xf]  ;;  %v418_v45 = vld [vmem:[%s3093_s28 + $0x368] sm:$0xf]  ;;  %415 = vst [vmem:[%s3100_s29 + $0x1ac] sm:$0xf] %v414_v43 }
  0x5c   : > { %417 = vst [vmem:[%s3100_s29 + $0x1b0] sm:$0xf] %v416_v44  ;;  %419 = vst [vmem:[%s3100_s29 + $0x1b4] sm:$0xf] %v418_v45  ;;  %v420_v46 = vld [vmem:[%s3093_s28 + $0x370] sm:$0xf] }
  0x5d   : > { %v422_v47 = vld [vmem:[%s3093_s28 + $0x378] sm:$0xf]  ;;  %v424_v48 = vld [vmem:[%s3093_s28 + $0x380] sm:$0xf]  ;;  %421 = vst [vmem:[%s3100_s29 + $0x1b8] sm:$0xf] %v420_v46 }
  0x5e   : > { %423 = vst [vmem:[%s3100_s29 + $0x1bc] sm:$0xf] %v422_v47  ;;  %425 = vst [vmem:[%s3100_s29 + $0x1c0] sm:$0xf] %v424_v48  ;;  %v426_v49 = vld [vmem:[%s3093_s28 + $0x388] sm:$0xf] }
  0x5f   : > { %v428_v50 = vld [vmem:[%s3093_s28 + $0x390] sm:$0xf]  ;;  %v430_v51 = vld [vmem:[%s3093_s28 + $0x398] sm:$0xf]  ;;  %427 = vst [vmem:[%s3100_s29 + $0x1c4] sm:$0xf] %v426_v49 }
  0x60   : > { %429 = vst [vmem:[%s3100_s29 + $0x1c8] sm:$0xf] %v428_v50  ;;  %431 = vst [vmem:[%s3100_s29 + $0x1cc] sm:$0xf] %v430_v51  ;;  %v432_v52 = vld [vmem:[%s3093_s28 + $0x3a0] sm:$0xf] }
  0x61   : > { %v434_v53 = vld [vmem:[%s3093_s28 + $0x3a8] sm:$0xf]  ;;  %v436_v54 = vld [vmem:[%s3093_s28 + $0x3b0] sm:$0xf]  ;;  %433 = vst [vmem:[%s3100_s29 + $0x1d0] sm:$0xf] %v432_v52 }
  0x62   : > { %435 = vst [vmem:[%s3100_s29 + $0x1d4] sm:$0xf] %v434_v53  ;;  %437 = vst [vmem:[%s3100_s29 + $0x1d8] sm:$0xf] %v436_v54  ;;  %v438_v55 = vld [vmem:[%s3093_s28 + $0x3b8] sm:$0xf] }
  0x63   : > { %v440_v56 = vld [vmem:[%s3093_s28 + $0x3c0] sm:$0xf]  ;;  %v442_v57 = vld [vmem:[%s3093_s28 + $0x3c8] sm:$0xf]  ;;  %439 = vst [vmem:[%s3100_s29 + $0x1dc] sm:$0xf] %v438_v55 }
  0x64   : > { %441 = vst [vmem:[%s3100_s29 + $0x1e0] sm:$0xf] %v440_v56  ;;  %443 = vst [vmem:[%s3100_s29 + $0x1e4] sm:$0xf] %v442_v57  ;;  %v444_v58 = vld [vmem:[%s3093_s28 + $0x3d0] sm:$0xf] }
  0x65   : > { %v446_v59 = vld [vmem:[%s3093_s28 + $0x3d8] sm:$0xf]  ;;  %v448_v60 = vld [vmem:[%s3093_s28 + $0x3e0] sm:$0xf]  ;;  %445 = vst [vmem:[%s3100_s29 + $0x1e8] sm:$0xf] %v444_v58 }
  0x66   : > { %447 = vst [vmem:[%s3100_s29 + $0x1ec] sm:$0xf] %v446_v59  ;;  %449 = vst [vmem:[%s3100_s29 + $0x1f0] sm:$0xf] %v448_v60  ;;  %v450_v61 = vld [vmem:[%s3093_s28 + $0x3e8] sm:$0xf] }
  0x67   : > { %v452_v62 = vld [vmem:[%s3093_s28 + $0x3f0] sm:$0xf]  ;;  %v454_v63 = vld [vmem:[%s3093_s28 + $0x3f8] sm:$0xf]  ;;  %451 = vst [vmem:[%s3100_s29 + $0x1f4] sm:$0xf] %v450_v61 }
  0x68   : > { %453 = vst [vmem:[%s3100_s29 + $0x1f8] sm:$0xf] %v452_v62  ;;  %455 = vst [vmem:[%s3100_s29 + $0x1fc] sm:$0xf] %v454_v63  ;;  %v456_v0 = vld [vmem:[%s3093_s28 + $0x400] sm:$0xf] }
  0x69   : > { %v458_v1 = vld [vmem:[%s3093_s28 + $0x408] sm:$0xf]  ;;  %v460_v2 = vld [vmem:[%s3093_s28 + $0x410] sm:$0xf]  ;;  %457 = vst [vmem:[%s3100_s29 + $0x200] sm:$0xf] %v456_v0 }
  0x6a   : > { %459 = vst [vmem:[%s3100_s29 + $0x204] sm:$0xf] %v458_v1  ;;  %461 = vst [vmem:[%s3100_s29 + $0x208] sm:$0xf] %v460_v2  ;;  %v462_v3 = vld [vmem:[%s3093_s28 + $0x418] sm:$0xf] }
  0x6b   : > { %v464_v4 = vld [vmem:[%s3093_s28 + $0x420] sm:$0xf]  ;;  %v466_v5 = vld [vmem:[%s3093_s28 + $0x428] sm:$0xf]  ;;  %463 = vst [vmem:[%s3100_s29 + $0x20c] sm:$0xf] %v462_v3 }
  0x6c   : > { %465 = vst [vmem:[%s3100_s29 + $0x210] sm:$0xf] %v464_v4  ;;  %467 = vst [vmem:[%s3100_s29 + $0x214] sm:$0xf] %v466_v5  ;;  %v468_v6 = vld [vmem:[%s3093_s28 + $0x430] sm:$0xf] }
  0x6d   : > { %v470_v7 = vld [vmem:[%s3093_s28 + $0x438] sm:$0xf]  ;;  %v472_v8 = vld [vmem:[%s3093_s28 + $0x440] sm:$0xf]  ;;  %469 = vst [vmem:[%s3100_s29 + $0x218] sm:$0xf] %v468_v6 }
  0x6e   : > { %471 = vst [vmem:[%s3100_s29 + $0x21c] sm:$0xf] %v470_v7  ;;  %473 = vst [vmem:[%s3100_s29 + $0x220] sm:$0xf] %v472_v8  ;;  %v474_v9 = vld [vmem:[%s3093_s28 + $0x448] sm:$0xf] }
  0x6f   : > { %v476_v10 = vld [vmem:[%s3093_s28 + $0x450] sm:$0xf]  ;;  %v478_v11 = vld [vmem:[%s3093_s28 + $0x458] sm:$0xf]  ;;  %475 = vst [vmem:[%s3100_s29 + $0x224] sm:$0xf] %v474_v9 }
  0x70   : > { %477 = vst [vmem:[%s3100_s29 + $0x228] sm:$0xf] %v476_v10  ;;  %479 = vst [vmem:[%s3100_s29 + $0x22c] sm:$0xf] %v478_v11  ;;  %v480_v12 = vld [vmem:[%s3093_s28 + $0x460] sm:$0xf] }
  0x71   : > { %v482_v13 = vld [vmem:[%s3093_s28 + $0x468] sm:$0xf]  ;;  %v484_v14 = vld [vmem:[%s3093_s28 + $0x470] sm:$0xf]  ;;  %481 = vst [vmem:[%s3100_s29 + $0x230] sm:$0xf] %v480_v12 }
  0x72   : > { %483 = vst [vmem:[%s3100_s29 + $0x234] sm:$0xf] %v482_v13  ;;  %485 = vst [vmem:[%s3100_s29 + $0x238] sm:$0xf] %v484_v14  ;;  %v486_v15 = vld [vmem:[%s3093_s28 + $0x478] sm:$0xf] }
  0x73   : > { %v488_v16 = vld [vmem:[%s3093_s28 + $0x480] sm:$0xf]  ;;  %v490_v17 = vld [vmem:[%s3093_s28 + $0x488] sm:$0xf]  ;;  %487 = vst [vmem:[%s3100_s29 + $0x23c] sm:$0xf] %v486_v15 }
  0x74   : > { %489 = vst [vmem:[%s3100_s29 + $0x240] sm:$0xf] %v488_v16  ;;  %491 = vst [vmem:[%s3100_s29 + $0x244] sm:$0xf] %v490_v17  ;;  %v492_v18 = vld [vmem:[%s3093_s28 + $0x490] sm:$0xf] }
  0x75   : > { %v494_v19 = vld [vmem:[%s3093_s28 + $0x498] sm:$0xf]  ;;  %v496_v20 = vld [vmem:[%s3093_s28 + $0x4a0] sm:$0xf]  ;;  %493 = vst [vmem:[%s3100_s29 + $0x248] sm:$0xf] %v492_v18 }
  0x76   : > { %495 = vst [vmem:[%s3100_s29 + $0x24c] sm:$0xf] %v494_v19  ;;  %497 = vst [vmem:[%s3100_s29 + $0x250] sm:$0xf] %v496_v20  ;;  %v498_v21 = vld [vmem:[%s3093_s28 + $0x4a8] sm:$0xf] }
  0x77   : > { %v500_v22 = vld [vmem:[%s3093_s28 + $0x4b0] sm:$0xf]  ;;  %v502_v23 = vld [vmem:[%s3093_s28 + $0x4b8] sm:$0xf]  ;;  %499 = vst [vmem:[%s3100_s29 + $0x254] sm:$0xf] %v498_v21 }
  0x78   : > { %501 = vst [vmem:[%s3100_s29 + $0x258] sm:$0xf] %v500_v22  ;;  %503 = vst [vmem:[%s3100_s29 + $0x25c] sm:$0xf] %v502_v23  ;;  %v504_v24 = vld [vmem:[%s3093_s28 + $0x4c0] sm:$0xf] }
  0x79   : > { %v506_v25 = vld [vmem:[%s3093_s28 + $0x4c8] sm:$0xf]  ;;  %v508_v26 = vld [vmem:[%s3093_s28 + $0x4d0] sm:$0xf]  ;;  %505 = vst [vmem:[%s3100_s29 + $0x260] sm:$0xf] %v504_v24 }
  0x7a   : > { %507 = vst [vmem:[%s3100_s29 + $0x264] sm:$0xf] %v506_v25  ;;  %509 = vst [vmem:[%s3100_s29 + $0x268] sm:$0xf] %v508_v26  ;;  %v510_v27 = vld [vmem:[%s3093_s28 + $0x4d8] sm:$0xf] }
  0x7b   : > { %v512_v28 = vld [vmem:[%s3093_s28 + $0x4e0] sm:$0xf]  ;;  %v514_v29 = vld [vmem:[%s3093_s28 + $0x4e8] sm:$0xf]  ;;  %511 = vst [vmem:[%s3100_s29 + $0x26c] sm:$0xf] %v510_v27 }
  0x7c   : > { %513 = vst [vmem:[%s3100_s29 + $0x270] sm:$0xf] %v512_v28  ;;  %515 = vst [vmem:[%s3100_s29 + $0x274] sm:$0xf] %v514_v29  ;;  %v516_v30 = vld [vmem:[%s3093_s28 + $0x4f0] sm:$0xf] }
  0x7d   : > { %v518_v31 = vld [vmem:[%s3093_s28 + $0x4f8] sm:$0xf]  ;;  %v520_v32 = vld [vmem:[%s3093_s28 + $0x500] sm:$0xf]  ;;  %517 = vst [vmem:[%s3100_s29 + $0x278] sm:$0xf] %v516_v30 }
  0x7e   : > { %519 = vst [vmem:[%s3100_s29 + $0x27c] sm:$0xf] %v518_v31  ;;  %521 = vst [vmem:[%s3100_s29 + $0x280] sm:$0xf] %v520_v32  ;;  %v522_v33 = vld [vmem:[%s3093_s28 + $0x508] sm:$0xf] }
  0x7f   : > { %v524_v34 = vld [vmem:[%s3093_s28 + $0x510] sm:$0xf]  ;;  %v526_v35 = vld [vmem:[%s3093_s28 + $0x518] sm:$0xf]  ;;  %523 = vst [vmem:[%s3100_s29 + $0x284] sm:$0xf] %v522_v33 }
  0x80   : > { %525 = vst [vmem:[%s3100_s29 + $0x288] sm:$0xf] %v524_v34  ;;  %527 = vst [vmem:[%s3100_s29 + $0x28c] sm:$0xf] %v526_v35  ;;  %v528_v36 = vld [vmem:[%s3093_s28 + $0x520] sm:$0xf] }
  0x81   : > { %v530_v37 = vld [vmem:[%s3093_s28 + $0x528] sm:$0xf]  ;;  %v532_v38 = vld [vmem:[%s3093_s28 + $0x530] sm:$0xf]  ;;  %529 = vst [vmem:[%s3100_s29 + $0x290] sm:$0xf] %v528_v36 }
  0x82   : > { %531 = vst [vmem:[%s3100_s29 + $0x294] sm:$0xf] %v530_v37  ;;  %533 = vst [vmem:[%s3100_s29 + $0x298] sm:$0xf] %v532_v38  ;;  %v534_v39 = vld [vmem:[%s3093_s28 + $0x538] sm:$0xf] }
  0x83   : > { %v536_v40 = vld [vmem:[%s3093_s28 + $0x540] sm:$0xf]  ;;  %v538_v41 = vld [vmem:[%s3093_s28 + $0x548] sm:$0xf]  ;;  %535 = vst [vmem:[%s3100_s29 + $0x29c] sm:$0xf] %v534_v39 }
  0x84   : > { %537 = vst [vmem:[%s3100_s29 + $0x2a0] sm:$0xf] %v536_v40  ;;  %539 = vst [vmem:[%s3100_s29 + $0x2a4] sm:$0xf] %v538_v41  ;;  %v540_v42 = vld [vmem:[%s3093_s28 + $0x550] sm:$0xf] }
  0x85   : > { %v542_v43 = vld [vmem:[%s3093_s28 + $0x558] sm:$0xf]  ;;  %v544_v44 = vld [vmem:[%s3093_s28 + $0x560] sm:$0xf]  ;;  %541 = vst [vmem:[%s3100_s29 + $0x2a8] sm:$0xf] %v540_v42 }
  0x86   : > { %543 = vst [vmem:[%s3100_s29 + $0x2ac] sm:$0xf] %v542_v43  ;;  %545 = vst [vmem:[%s3100_s29 + $0x2b0] sm:$0xf] %v544_v44  ;;  %v546_v45 = vld [vmem:[%s3093_s28 + $0x568] sm:$0xf] }
  0x87   : > { %v548_v46 = vld [vmem:[%s3093_s28 + $0x570] sm:$0xf]  ;;  %v550_v47 = vld [vmem:[%s3093_s28 + $0x578] sm:$0xf]  ;;  %547 = vst [vmem:[%s3100_s29 + $0x2b4] sm:$0xf] %v546_v45 }
  0x88   : > { %549 = vst [vmem:[%s3100_s29 + $0x2b8] sm:$0xf] %v548_v46  ;;  %551 = vst [vmem:[%s3100_s29 + $0x2bc] sm:$0xf] %v550_v47  ;;  %v552_v48 = vld [vmem:[%s3093_s28 + $0x580] sm:$0xf] }
  0x89   : > { %v554_v49 = vld [vmem:[%s3093_s28 + $0x588] sm:$0xf]  ;;  %v556_v50 = vld [vmem:[%s3093_s28 + $0x590] sm:$0xf]  ;;  %553 = vst [vmem:[%s3100_s29 + $0x2c0] sm:$0xf] %v552_v48 }
  0x8a   : > { %555 = vst [vmem:[%s3100_s29 + $0x2c4] sm:$0xf] %v554_v49  ;;  %557 = vst [vmem:[%s3100_s29 + $0x2c8] sm:$0xf] %v556_v50  ;;  %v558_v51 = vld [vmem:[%s3093_s28 + $0x598] sm:$0xf] }
  0x8b   : > { %v560_v52 = vld [vmem:[%s3093_s28 + $0x5a0] sm:$0xf]  ;;  %v562_v53 = vld [vmem:[%s3093_s28 + $0x5a8] sm:$0xf]  ;;  %559 = vst [vmem:[%s3100_s29 + $0x2cc] sm:$0xf] %v558_v51 }
  0x8c   : > { %561 = vst [vmem:[%s3100_s29 + $0x2d0] sm:$0xf] %v560_v52  ;;  %563 = vst [vmem:[%s3100_s29 + $0x2d4] sm:$0xf] %v562_v53  ;;  %v564_v54 = vld [vmem:[%s3093_s28 + $0x5b0] sm:$0xf] }
  0x8d   : > { %v566_v55 = vld [vmem:[%s3093_s28 + $0x5b8] sm:$0xf]  ;;  %v568_v56 = vld [vmem:[%s3093_s28 + $0x5c0] sm:$0xf]  ;;  %565 = vst [vmem:[%s3100_s29 + $0x2d8] sm:$0xf] %v564_v54 }
  0x8e   : > { %567 = vst [vmem:[%s3100_s29 + $0x2dc] sm:$0xf] %v566_v55  ;;  %569 = vst [vmem:[%s3100_s29 + $0x2e0] sm:$0xf] %v568_v56  ;;  %v570_v57 = vld [vmem:[%s3093_s28 + $0x5c8] sm:$0xf] }
  0x8f   : > { %v572_v58 = vld [vmem:[%s3093_s28 + $0x5d0] sm:$0xf]  ;;  %v574_v59 = vld [vmem:[%s3093_s28 + $0x5d8] sm:$0xf]  ;;  %571 = vst [vmem:[%s3100_s29 + $0x2e4] sm:$0xf] %v570_v57 }
  0x90   : > { %573 = vst [vmem:[%s3100_s29 + $0x2e8] sm:$0xf] %v572_v58  ;;  %575 = vst [vmem:[%s3100_s29 + $0x2ec] sm:$0xf] %v574_v59  ;;  %v576_v60 = vld [vmem:[%s3093_s28 + $0x5e0] sm:$0xf] }
  0x91   : > { %v578_v61 = vld [vmem:[%s3093_s28 + $0x5e8] sm:$0xf]  ;;  %v580_v62 = vld [vmem:[%s3093_s28 + $0x5f0] sm:$0xf]  ;;  %577 = vst [vmem:[%s3100_s29 + $0x2f0] sm:$0xf] %v576_v60 }
  0x92   : > { %579 = vst [vmem:[%s3100_s29 + $0x2f4] sm:$0xf] %v578_v61  ;;  %581 = vst [vmem:[%s3100_s29 + $0x2f8] sm:$0xf] %v580_v62  ;;  %v582_v63 = vld [vmem:[%s3093_s28 + $0x5f8] sm:$0xf] }
  0x93   : > { %v584_v0 = vld [vmem:[%s3093_s28 + $0x600] sm:$0xf]  ;;  %v586_v1 = vld [vmem:[%s3093_s28 + $0x608] sm:$0xf]  ;;  %583 = vst [vmem:[%s3100_s29 + $0x2fc] sm:$0xf] %v582_v63 }
  0x94   : > { %585 = vst [vmem:[%s3100_s29 + $0x300] sm:$0xf] %v584_v0  ;;  %587 = vst [vmem:[%s3100_s29 + $0x304] sm:$0xf] %v586_v1  ;;  %v588_v2 = vld [vmem:[%s3093_s28 + $0x610] sm:$0xf] }
  0x95   : > { %v590_v3 = vld [vmem:[%s3093_s28 + $0x618] sm:$0xf]  ;;  %v592_v4 = vld [vmem:[%s3093_s28 + $0x620] sm:$0xf]  ;;  %589 = vst [vmem:[%s3100_s29 + $0x308] sm:$0xf] %v588_v2 }
  0x96   : > { %591 = vst [vmem:[%s3100_s29 + $0x30c] sm:$0xf] %v590_v3  ;;  %593 = vst [vmem:[%s3100_s29 + $0x310] sm:$0xf] %v592_v4  ;;  %v594_v5 = vld [vmem:[%s3093_s28 + $0x628] sm:$0xf] }
  0x97   : > { %v596_v6 = vld [vmem:[%s3093_s28 + $0x630] sm:$0xf]  ;;  %v598_v7 = vld [vmem:[%s3093_s28 + $0x638] sm:$0xf]  ;;  %595 = vst [vmem:[%s3100_s29 + $0x314] sm:$0xf] %v594_v5 }
  0x98   : > { %597 = vst [vmem:[%s3100_s29 + $0x318] sm:$0xf] %v596_v6  ;;  %599 = vst [vmem:[%s3100_s29 + $0x31c] sm:$0xf] %v598_v7  ;;  %v600_v8 = vld [vmem:[%s3093_s28 + $0x640] sm:$0xf] }
  0x99   : > { %v602_v9 = vld [vmem:[%s3093_s28 + $0x648] sm:$0xf]  ;;  %v604_v10 = vld [vmem:[%s3093_s28 + $0x650] sm:$0xf]  ;;  %601 = vst [vmem:[%s3100_s29 + $0x320] sm:$0xf] %v600_v8 }
  0x9a   : > { %603 = vst [vmem:[%s3100_s29 + $0x324] sm:$0xf] %v602_v9  ;;  %605 = vst [vmem:[%s3100_s29 + $0x328] sm:$0xf] %v604_v10  ;;  %v606_v11 = vld [vmem:[%s3093_s28 + $0x658] sm:$0xf] }
  0x9b   : > { %v608_v12 = vld [vmem:[%s3093_s28 + $0x660] sm:$0xf]  ;;  %v610_v13 = vld [vmem:[%s3093_s28 + $0x668] sm:$0xf]  ;;  %607 = vst [vmem:[%s3100_s29 + $0x32c] sm:$0xf] %v606_v11 }
  0x9c   : > { %609 = vst [vmem:[%s3100_s29 + $0x330] sm:$0xf] %v608_v12  ;;  %611 = vst [vmem:[%s3100_s29 + $0x334] sm:$0xf] %v610_v13  ;;  %v612_v14 = vld [vmem:[%s3093_s28 + $0x670] sm:$0xf] }
  0x9d   : > { %v614_v15 = vld [vmem:[%s3093_s28 + $0x678] sm:$0xf]  ;;  %613 = vst [vmem:[%s3100_s29 + $0x338] sm:$0xf] %v612_v14 }
  0x9e   : > { %615 = vst [vmem:[%s3100_s29 + $0x33c] sm:$0xf] %v614_v15 }
  0x9f PF: > { %p2522_p8 = scmp.ge.s32.totalorder %s3021_s16, 1  ;;  %p1060_p9 = scmp.lt.s32.totalorder %s3021_s16, 3 }
  0xa1   : > { %p1061_p10 = pnand %p2522_p8, %p1060_p9 }
  0xa2   : > { %s1067_s30 = sand.u32 (!%p1061_p10), 1, %s3005_s12   ;;  %p1115_p11 = scmp.lt.s32.totalorder (!%p1061_p10), %s3013_s14, 1 }
  0xa3   : > { %1064 = sbr.rel (%p1061_p10) target bundleno = 513 (0x201), region = 69  ;;  %s2523_s26 = sshll.u32 (!%p1061_p10), %s1067_s30, 3 }
  0xa4   : > { %s2817_s4 = smul.u32 (!%p1061_p10), 832, %s1067_s30  ;;  %s1101_s27 = scalar_lea.vmem (!%p1061_p10), [#allocation4], %s2523_s26 }
  0xa6   : > { %s3524_s9 = scalar_lea.vmem (!%p1061_p10), [#allocation3], %s2817_s4 }
  0xa8   : > { %v2894_v16 = vld [vmem:[%s3691_s0 + $0x4] ss:$52 sps:$4 sm:$0xff]   ;;  %v2897_v17 = vld [vmem:[%s3691_s0 + $0xc] ss:$52 sps:$4 sm:$0xff]   ;;  %v2864_v22 = vld [vmem:[%s3524_s9 + $0x70] sm:$0xff]   ;;  %vm3024_vm0 = vmmov 0  }
  0xa9   : > { %2072 = vmatprep.mubr.bf16.mxu0 %v2894_v16  ;;  %v2860_v18 = vld [vmem:[%s3524_s9 + $0x78] sm:$0xff]   ;;  %2113 = vmatprep.mubr.bf16.mxu1 %v2897_v17  ;;  %v2865_v23 = vld [vmem:[%s3524_s9 + $0xf0] sm:$0xff]   ;;  %v2868_v26 = vld [vmem:[%s3524_s9 + $0x68] sm:$0xff]   ;;  %s2645_s28 = sshll.u32 (%p3080_p6), %s3013_s14, 2 }
  0xaa   : > { %v2861_v19 = vld [vmem:[%s3524_s9 + $0xf8] sm:$0xff]   ;;  %2655 = vmatprep.subr.bf16.mxu0 %v2860_v18  ;;  %v2866_v24 = vld [vmem:[%s3524_s9 + $0x30] sm:$0xff]   ;;  %v2869_v27 = vld [vmem:[%s3524_s9 + $0xe8] sm:$0xff]   ;;  %s2368_s5 = scalar_lea.vmem (%p3080_p6), %s3694_s3, %s2645_s28 }
  0xab   : > { %v2862_v20 = vld [vmem:[%s3524_s9 + $0x38] sm:$0xff]   ;;  %2677 = vmatprep.subr.bf16.mxu1 %v2861_v19  ;;  %v2867_v25 = vld [vmem:[%s3524_s9 + $0xb0] sm:$0xff]   ;;  %v2870_v28 = vld [vmem:[%s3524_s9 + $0x28] sm:$0xff]  }
  0xac   : > { %v2863_v21 = vld [vmem:[%s3524_s9 + $0xb8] sm:$0xff]   ;;  %2656 = vmatpush3.bf16.msra.mxu0 %v2862_v20  ;;  %v2871_v29 = vld [vmem:[%s3524_s9 + $0xa8] sm:$0xff]   ;;  %v2872_v30 = vld [vmem:[%s3524_s9 + $0x60] sm:$0xff]  }
  0xad   : > { %2678 = vmatpush3.bf16.msra.mxu1 %v2863_v21  ;;  %2657 = vmatprep.subr.bf16.mxu0 %v2864_v22  ;;  %v2873_v31 = vld [vmem:[%s3524_s9 + $0xe0] sm:$0xff]   ;;  %v2876_v34 = vld [vmem:[%s3524_s9 + $0x58] sm:$0xff]   ;;  %v2880_v38 = vld [vmem:[%s3524_s9 + $0x50] sm:$0xff]  }
  0xae   : > { %2679 = vmatprep.subr.bf16.mxu1 %v2865_v23  ;;  %v2874_v32 = vld [vmem:[%s3524_s9 + $0x20] sm:$0xff]   ;;  %v2877_v35 = vld [vmem:[%s3524_s9 + $0xd8] sm:$0xff]   ;;  %v2881_v39 = vld [vmem:[%s3524_s9 + $0xd0] sm:$0xff]  }
  0xaf   : > { %v2875_v33 = vld [vmem:[%s3524_s9 + $0xa0] sm:$0xff]   ;;  %v2878_v36 = vld [vmem:[%s3524_s9 + $0x18] sm:$0xff]   ;;  %v2882_v40 = vld [vmem:[%s3524_s9 + $0x10] sm:$0xff]  }
  0xb0   : > { %2658 = vmatpush3.bf16.msra.mxu0 %v2866_v24  ;;  %v2879_v37 = vld [vmem:[%s3524_s9 + $0x98] sm:$0xff]   ;;  %v2883_v41 = vld [vmem:[%s3524_s9 + $0x90] sm:$0xff]   ;;  %v2884_v42 = vld [vmem:[%s3524_s9 + $0x48] sm:$0xff]  }
  0xb1   : > { %2680 = vmatpush3.bf16.msra.mxu1 %v2867_v25  ;;  %2659 = vmatprep.subr.bf16.mxu0 %v2868_v26  ;;  %v2885_v43 = vld [vmem:[%s3524_s9 + $0xc8] sm:$0xff]   ;;  %v2888_v46 = vld [vmem:[%s3524_s9 + $0x40] sm:$0xff]   ;;  %v2898_v53 = vld [vmem:[%s3524_s9 + $0x178] sm:$0xff]  }
  0xb2   : > { %2681 = vmatprep.subr.bf16.mxu1 %v2869_v27  ;;  %v2886_v44 = vld [vmem:[%s3524_s9 + $0x8] sm:$0xff]   ;;  %v2889_v47 = vld [vmem:[%s3524_s9 + $0xc0] sm:$0xff]   ;;  %v2899_v54 = vld [vmem:[%s3524_s9 + $0x138] sm:$0xff]  }
  0xb3   : > { %v2887_v45 = vld [vmem:[%s3524_s9 + $0x88] sm:$0xff]   ;;  %v2892_v48 = vld [vmem:[%s3691_s0] ss:$52 sps:$4 sm:$0xff]   ;;  %v2900_v55 = vld [vmem:[%s3524_s9 + $0x1f8] sm:$0xff]  }
  0xb4   : > { %2660 = vmatpush3.bf16.msra.mxu0 %v2870_v28  ;;  %v2890_v49 = vld [vmem:[%s3524_s9] sm:$0xff]   ;;  %v2895_v50 = vld [vmem:[%s3691_s0 + $0x8] ss:$52 sps:$4 sm:$0xff]   ;;  %v2902_v57 = vld [vmem:[%s3524_s9 + $0x170] sm:$0xff]  }
  0xb5   : > { %2682 = vmatpush3.bf16.msra.mxu1 %v2871_v29  ;;  %2661 = vmatprep.subr.bf16.mxu0 %v2872_v30  ;;  %v2891_v51 = vld [vmem:[%s3524_s9 + $0x80] sm:$0xff]   ;;  %v2931_v52 = vld [vmem:[%s3691_s0 + $0x14] ss:$52 sps:$4 sm:$0xff]   ;;  %v2901_v56 = vld [vmem:[%s3524_s9 + $0x1b8] sm:$0xff]  }
  0xb6   : > { %2683 = vmatprep.subr.bf16.mxu1 %v2873_v31  ;;  %v2903_v58 = vld [vmem:[%s3524_s9 + $0x130] sm:$0xff]   ;;  %v2906_v61 = vld [vmem:[%s3524_s9 + $0x168] sm:$0xff]   ;;  %v2910_v1 = vld [vmem:[%s3524_s9 + $0x160] sm:$0xff]  }
  0xb7   : > { %v2904_v59 = vld [vmem:[%s3524_s9 + $0x1f0] sm:$0xff]   ;;  %v2907_v62 = vld [vmem:[%s3524_s9 + $0x128] sm:$0xff]   ;;  %v2911_v2 = vld [vmem:[%s3524_s9 + $0x120] sm:$0xff]  }
  0xb8   : > { %2662 = vmatpush3.bf16.msra.mxu0 %v2874_v32  ;;  %v2905_v60 = vld [vmem:[%s3524_s9 + $0x1b0] sm:$0xff]   ;;  %v2908_v63 = vld [vmem:[%s3524_s9 + $0x1e8] sm:$0xff]   ;;  %v2912_v3 = vld [vmem:[%s3524_s9 + $0x1e0] sm:$0xff]  }
  0xb9   : > { %2684 = vmatpush3.bf16.msra.mxu1 %v2875_v33  ;;  %2663 = vmatprep.subr.bf16.mxu0 %v2876_v34  ;;  %v2909_v0 = vld [vmem:[%s3524_s9 + $0x1a8] sm:$0xff]   ;;  %v2913_v4 = vld [vmem:[%s3524_s9 + $0x1a0] sm:$0xff]   ;;  %v2914_v5 = vld [vmem:[%s3524_s9 + $0x158] sm:$0xff]  }
  0xba   : > { %2685 = vmatprep.subr.bf16.mxu1 %v2877_v35  ;;  %v2915_v6 = vld [vmem:[%s3524_s9 + $0x118] sm:$0xff]   ;;  %v2918_v9 = vld [vmem:[%s3524_s9 + $0x150] sm:$0xff]   ;;  %v2922_v13 = vld [vmem:[%s3524_s9 + $0x148] sm:$0xff]  }
  0xbb   : > { %v2916_v7 = vld [vmem:[%s3524_s9 + $0x1d8] sm:$0xff]   ;;  %v2919_v10 = vld [vmem:[%s3524_s9 + $0x110] sm:$0xff]   ;;  %v2923_v14 = vld [vmem:[%s3524_s9 + $0x108] sm:$0xff]  }
  0xbc   : > { %2664 = vmatpush3.bf16.msra.mxu0 %v2878_v36  ;;  %v2917_v8 = vld [vmem:[%s3524_s9 + $0x198] sm:$0xff]   ;;  %v2920_v11 = vld [vmem:[%s3524_s9 + $0x1d0] sm:$0xff]   ;;  %v2924_v15 = vld [vmem:[%s3524_s9 + $0x1c8] sm:$0xff]  }
  0xbd   : > { %2686 = vmatpush3.bf16.msra.mxu1 %v2879_v37  ;;  %2665 = vmatprep.subr.bf16.mxu0 %v2880_v38  ;;  %v2921_v12 = vld [vmem:[%s3524_s9 + $0x190] sm:$0xff]   ;;  %v2925_v16 = vld [vmem:[%s3524_s9 + $0x188] sm:$0xff]   ;;  %v2926_v17 = vld [vmem:[%s3524_s9 + $0x140] sm:$0xff]  }
  0xbe   : > { %2687 = vmatprep.subr.bf16.mxu1 %v2881_v39  ;;  %v2927_v18 = vld [vmem:[%s3524_s9 + $0x100] sm:$0xff]   ;;  %v2933_v22 = vld [vmem:[%s3524_s9 + $0x278] sm:$0xff]   ;;  %v2940_v28 = vld [vmem:[%s3524_s9 + $0x270] sm:$0xff]  }
  0xbf   : > { %v2929_v19 = vld [vmem:[%s3691_s0 + $0x10] ss:$52 sps:$4 sm:$0xff]   ;;  %v2934_v23 = vld [vmem:[%s3691_s0 + $0x18] ss:$52 sps:$4 sm:$0xff]  }
  0xc0   : > { %2666 = vmatpush3.bf16.msra.mxu0 %v2882_v40  ;;  %v2928_v20 = vld [vmem:[%s3524_s9 + $0x1c0] sm:$0xff]   ;;  %v2936_v24 = vld [vmem:[%s3691_s0 + $0x1c] ss:$52 sps:$4 sm:$0xff]   ;;  %v2944_v32 = vld [vmem:[%s3524_s9 + $0x268] sm:$0xff]  }
  0xc1   : > { %2688 = vmatpush3.bf16.msra.mxu1 %v2883_v41  ;;  %2667 = vmatprep.subr.bf16.mxu0 %v2884_v42  ;;  %v2932_v21 = vld [vmem:[%s3524_s9 + $0x180] sm:$0xff]   ;;  %v2937_v25 = vld [vmem:[%s3524_s9 + $0x238] sm:$0xff]   ;;  %v2941_v29 = vld [vmem:[%s3524_s9 + $0x230] sm:$0xff]  }
  0xc2   : > { %2689 = vmatprep.subr.bf16.mxu1 %v2885_v43  ;;  %v2938_v26 = vld [vmem:[%s3524_s9 + $0x2f8] sm:$0xff]   ;;  %v2942_v30 = vld [vmem:[%s3524_s9 + $0x2f0] sm:$0xff]   ;;  %v2945_v33 = vld [vmem:[%s3524_s9 + $0x228] sm:$0xff]  }
  0xc3   : > { %v2939_v27 = vld [vmem:[%s3524_s9 + $0x2b8] sm:$0xff]   ;;  %v2943_v31 = vld [vmem:[%s3524_s9 + $0x2b0] sm:$0xff]   ;;  %v2946_v34 = vld [vmem:[%s3524_s9 + $0x2e8] sm:$0xff]  }
  0xc4   : > { %2668 = vmatpush3.bf16.msra.mxu0 %v2886_v44  ;;  %v2947_v35 = vld [vmem:[%s3524_s9 + $0x2a8] sm:$0xff]   ;;  %v2948_v36 = vld [vmem:[%s3524_s9 + $0x260] sm:$0xff]   ;;  %v2952_v40 = vld [vmem:[%s3524_s9 + $0x258] sm:$0xff]  }
  0xc5   : > { %2690 = vmatpush3.bf16.msra.mxu1 %v2887_v45  ;;  %2669 = vmatprep.subr.bf16.mxu0 %v2888_v46  ;;  %v2949_v37 = vld [vmem:[%s3524_s9 + $0x220] sm:$0xff]   ;;  %v2953_v41 = vld [vmem:[%s3524_s9 + $0x218] sm:$0xff]   ;;  %v2956_v44 = vld [vmem:[%s3524_s9 + $0x250] sm:$0xff]  }
  0xc6   : > { %2691 = vmatprep.subr.bf16.mxu1 %v2889_v47  ;;  %v2950_v38 = vld [vmem:[%s3524_s9 + $0x2e0] sm:$0xff]   ;;  %v2954_v42 = vld [vmem:[%s3524_s9 + $0x2d8] sm:$0xff]   ;;  %v2957_v45 = vld [vmem:[%s3524_s9 + $0x210] sm:$0xff]  }
  0xc7   : > { %v2951_v39 = vld [vmem:[%s3524_s9 + $0x2a0] sm:$0xff]   ;;  %v2955_v43 = vld [vmem:[%s3524_s9 + $0x298] sm:$0xff]   ;;  %v2958_v46 = vld [vmem:[%s3524_s9 + $0x2d0] sm:$0xff]  }
  0xc8   : > { %2670 = vmatpush3.bf16.msra.mxu0 %v2890_v49  ;;  %v2959_v47 = vld [vmem:[%s3524_s9 + $0x290] sm:$0xff]   ;;  %v2961_v49 = vld [vmem:[%s3524_s9 + $0x208] sm:$0xff]  }
  0xc9   : > { %2692 = vmatpush3.bf16.msra.mxu1 %v2891_v51  ;;  %2699 = vmatprep.subr.bf16.mxu0 %v2898_v53  ;;  %v2963_v51 = vld [vmem:[%s3524_s9 + $0x288] sm:$0xff]   ;;  %v2965_v53 = vld [vmem:[%s3524_s9 + $0x200] sm:$0xff]  }
  0xca   : > { %2721 = vmatprep.subr.bf16.mxu1 %v2900_v55  ;;  %v2967_v55 = vld [vmem:[%s3691_s0 + $0x20] ss:$52 sps:$4 sm:$0xff]  }
  0xcb   : > { %2073 = vmatmul.mubr.bf16.vlgmr.msra.gmra.mxu0 %v2892_v48  ;;  %v2960_v48 = vld [vmem:[%s3524_s9 + $0x248] sm:$0xff]  }
  0xcc   : > { %2114 = vmatmul.mubr.bf16.vlgmr.msra.gmra.mxu1 %v2895_v50  ;;  %2700 = vmatpush3.bf16.msra.mxu0 %v2899_v54  ;;  %v2962_v50 = vld [vmem:[%s3524_s9 + $0x2c8] sm:$0xff]   ;;  %v2966_v54 = vld [vmem:[%s3524_s9 + $0x2c0] sm:$0xff]  }
  0xcd   : > { %2154 = vmatprep.mubr.bf16.mxu0 %v2931_v52  ;;  %2722 = vmatpush3.bf16.msra.mxu1 %v2901_v56  ;;  %v2964_v52 = vld [vmem:[%s3524_s9 + $0x240] sm:$0xff]  }
  0xce   : > { %2701 = vmatprep.subr.bf16.mxu0 %v2902_v57  ;;  %2723 = vmatprep.subr.bf16.mxu1 %v2904_v59  ;;  %v2969_v56 = vld [vmem:[%s3691_s0 + $0x24] ss:$52 sps:$4 sm:$0xff]   ;;  %v2971_v59 = vld [vmem:[%s3691_s0 + $0x28] ss:$52 sps:$4 sm:$0xff]  }
  0xcf   : > { %2195 = vmatprep.mubr.bf16.mxu1 %v2936_v24  ;;  %v2970_v57 = vld [vmem:[%s3524_s9 + $0x280] sm:$0xff]  }
  0xd0   : > { %2702 = vmatpush3.bf16.msra.mxu0 %v2903_v58  ;;  %v3023_v58 = vmov 0.0  }
  0xd1   : > { %2724 = vmatpush3.bf16.msra.mxu1 %v2905_v60  ;;  %2703 = vmatprep.subr.bf16.mxu0 %v2906_v61  ;;  %v2973_v60 = vld [vmem:[%s3691_s0 + $0x2c] ss:$52 sps:$4 sm:$0xff]   ;;  %v2974_v61 = vld [vmem:[%s3524_s9 + $0x338] sm:$0xff]  }
  0xd2   : > { %2725 = vmatprep.subr.bf16.mxu1 %v2908_v63  ;;  %v2976_v63 = vld [vmem:[%s3524_s9 + $0x328] sm:$0xff]  }
  0xd4   : > { %2704 = vmatpush3.bf16.msra.mxu0 %v2907_v62  ;;  %v2975_v62 = vld [vmem:[%s3524_s9 + $0x330] sm:$0xff]  }
  0xd5   : > { %2726 = vmatpush3.bf16.msra.mxu1 %v2909_v0  ;;  %2705 = vmatprep.subr.bf16.mxu0 %v2910_v1  ;;  %v2977_v0 = vld [vmem:[%s3524_s9 + $0x320] sm:$0xff]   ;;  %v2978_v1 = vld [vmem:[%s3524_s9 + $0x318] sm:$0xff]  }
  0xd6   : > { %2727 = vmatprep.subr.bf16.mxu1 %v2912_v3  ;;  %v2980_v3 = vld [vmem:[%s3524_s9 + $0x308] sm:$0xff]  }
  0xd8   : > { %2706 = vmatpush3.bf16.msra.mxu0 %v2911_v2  ;;  %v2979_v2 = vld [vmem:[%s3524_s9 + $0x310] sm:$0xff]  }
  0xd9   : > { %2728 = vmatpush3.bf16.msra.mxu1 %v2913_v4  ;;  %2707 = vmatprep.subr.bf16.mxu0 %v2914_v5  ;;  %v2981_v4 = vld [vmem:[%s3524_s9 + $0x300] sm:$0xff]   ;;  %s1116_s9 = scalar_select %p1115_p11, %s3013_s14, 1 }
  0xda   : > { %2729 = vmatprep.subr.bf16.mxu1 %v2916_v7  ;;  %v2982_v5 = vld [vmem:[%s3691_s0 + $0x30] ss:$52 sps:$4 sm:$0xff]  }
  0xdb   : > { %s1117_s25 = scalar_lea.vmem %s3693_s2, %s1116_s9 }
  0xdc   : > { %2708 = vmatpush3.bf16.msra.mxu0 %v2915_v6 }
  0xdd   : > { %2730 = vmatpush3.bf16.msra.mxu1 %v2917_v8  ;;  %2709 = vmatprep.subr.bf16.mxu0 %v2918_v9 }
  0xde   : > { %2731 = vmatprep.subr.bf16.mxu1 %v2920_v11 }
  0xe0   : > { %2710 = vmatpush3.bf16.msra.mxu0 %v2919_v10 }
  0xe1   : > { %2732 = vmatpush3.bf16.msra.mxu1 %v2921_v12  ;;  %2711 = vmatprep.subr.bf16.mxu0 %v2922_v13 }
  0xe2   : > { %2733 = vmatprep.subr.bf16.mxu1 %v2924_v15 }
  0xe4   : > { %2712 = vmatpush3.bf16.msra.mxu0 %v2923_v14 }
  0xe5   : > { %2734 = vmatpush3.bf16.msra.mxu1 %v2925_v16  ;;  %2713 = vmatprep.subr.bf16.mxu0 %v2926_v17 }
  0xe6   : > { %2735 = vmatprep.subr.bf16.mxu1 %v2928_v20 }
  0xe8   : > { %2714 = vmatpush3.bf16.msra.mxu0 %v2927_v18 }
  0xe9   : > { %2736 = vmatpush3.bf16.msra.mxu1 %v2932_v21  ;;  %2743 = vmatprep.subr.bf16.mxu0 %v2933_v22 }
  0xea   : > { %2765 = vmatprep.subr.bf16.mxu1 %v2938_v26 }
  0xeb   : > { %2155 = vmatmul.mubr.bf16.vlgmr.msra.gmra.mxu0 %v2929_v19 }
  0xec   : > { %2744 = vmatpush3.bf16.msra.mxu0 %v2937_v25  ;;  %2196 = vmatmul.mubr.bf16.vlgmr.msra.gmra.mxu1 %v2934_v23 }
  0xed   : > { %2766 = vmatpush3.bf16.msra.mxu1 %v2939_v27  ;;  %2745 = vmatprep.subr.bf16.mxu0 %v2940_v28 }
  0xee   : > { %2767 = vmatprep.subr.bf16.mxu1 %v2942_v30  ;;  %2236 = vmatprep.mubr.bf16.mxu0 %v2969_v56 }
  0xef   : > { %2277 = vmatprep.mubr.bf16.mxu1 %v2973_v60 }
  0xf0   : > { %2746 = vmatpush3.bf16.msra.mxu0 %v2941_v29 }
  0xf1   : > { %2768 = vmatpush3.bf16.msra.mxu1 %v2943_v31  ;;  %2747 = vmatprep.subr.bf16.mxu0 %v2944_v32 }
  0xf2   : > { %2769 = vmatprep.subr.bf16.mxu1 %v2946_v34 }
  0xf4   : > { %2748 = vmatpush3.bf16.msra.mxu0 %v2945_v33 }
  0xf5   : > { %2770 = vmatpush3.bf16.msra.mxu1 %v2947_v35  ;;  %2749 = vmatprep.subr.bf16.mxu0 %v2948_v36 }
  0xf6   : > { %2771 = vmatprep.subr.bf16.mxu1 %v2950_v38 }
  0xf8   : > { %2750 = vmatpush3.bf16.msra.mxu0 %v2949_v37 }
  0xf9   : > { %2772 = vmatpush3.bf16.msra.mxu1 %v2951_v39  ;;  %2751 = vmatprep.subr.bf16.mxu0 %v2952_v40 }
  0xfa   : > { %2773 = vmatprep.subr.bf16.mxu1 %v2954_v42 }
  0xfc   : > { %2752 = vmatpush3.bf16.msra.mxu0 %v2953_v41 }
  0xfd   : > { %2774 = vmatpush3.bf16.msra.mxu1 %v2955_v43  ;;  %2753 = vmatprep.subr.bf16.mxu0 %v2956_v44 }
  0xfe   : > { %2775 = vmatprep.subr.bf16.mxu1 %v2958_v46 }
 0x100   : > { %2754 = vmatpush3.bf16.msra.mxu0 %v2957_v45 }
 0x101   : > { %2776 = vmatpush3.bf16.msra.mxu1 %v2959_v47  ;;  %2755 = vmatprep.subr.bf16.mxu0 %v2960_v48 }
 0x102   : > { %2777 = vmatprep.subr.bf16.mxu1 %v2962_v50 }
 0x104   : > { %2756 = vmatpush3.bf16.msra.mxu0 %v2961_v49 }
 0x105   : > { %2778 = vmatpush3.bf16.msra.mxu1 %v2963_v51  ;;  %2757 = vmatprep.subr.bf16.mxu0 %v2964_v52 }
 0x106   : > { %2779 = vmatprep.subr.bf16.mxu1 %v2966_v54 }
 0x108   : > { %2758 = vmatpush3.bf16.msra.mxu0 %v2965_v53  ;;  %v2641_v53 = vld [vmem:[%s1117_s25] ss:$0 sm:$0xff] }
 0x109   : > { %2796 = vmatprep.subr.bf16.mxu0 %v3023_v58  ;;  %2780 = vmatpush3.bf16.msra.mxu1 %v2970_v57 }
 0x10b   : > { %2237 = vmatmul.mubr.bf16.vlgmr.msra.gmra.mxu0 %v2967_v55 }
 0x10c   : > { %2812 = vmatprep.mubr.msk.bf16.mxu0 %vm3024_vm0, %v3023_v58  ;;  %2797 = vmatpush3.bf16.msra.mxu0 %v2974_v61 }
 0x10d   : > { %2278 = vmatmul.mubr.bf16.vlgmr.msra.gmra.mxu1 %v2971_v59  ;;  %2798 = vmatprep.subr.bf16.mxu0 %v3023_v58 }
 0x110   : > { %2799 = vmatpush3.bf16.msra.mxu0 %v2975_v62 }
 0x111   : > { %2800 = vmatprep.subr.bf16.mxu0 %v3023_v58 }
 0x114   : > { %2801 = vmatpush3.bf16.msra.mxu0 %v2976_v63 }
 0x115   : > { %2802 = vmatprep.subr.bf16.mxu0 %v3023_v58 }
 0x118   : > { %2803 = vmatpush3.bf16.msra.mxu0 %v2977_v0 }
 0x119   : > { %2804 = vmatprep.subr.bf16.mxu0 %v3023_v58 }
 0x11c   : > { %2805 = vmatpush3.bf16.msra.mxu0 %v2978_v1 }
 0x11d   : > { %2806 = vmatprep.subr.bf16.mxu0 %v3023_v58 }
 0x120   : > { %2807 = vmatpush3.bf16.msra.mxu0 %v2979_v2 }
 0x121   : > { %2808 = vmatprep.subr.bf16.mxu0 %v3023_v58 }
 0x124   : > { %2809 = vmatpush3.bf16.msra.mxu0 %v2980_v3 }
 0x125   : > { %2810 = vmatprep.subr.bf16.mxu0 %v3023_v58 }
 0x128   : > { %2811 = vmatpush3.bf16.msra.mxu0 %v2981_v4 }
 0x12b   : > { %2813 = vmatmul.mubr.bf16.vlgmr.msra.gmra.mxu0 %v2982_v5 }
 0x18b   : > { %v2671_v6 = vpop.f32.mrf.mxu0 }
 0x18c   : > { %v2693_v7 = vpop.f32.mrf.mxu1 }
 0x18d   : > { %v2672_v8 = vpop.f32.mrf.mxu0 }
 0x18e   : > { %v2694_v9 = vpop.f32.mrf.mxu1  ;;  %v2673_v23 = vadd.f32 %v2672_v8, %v2671_v6 }
 0x18f   : > { %v2674_v10 = vpop.f32.mrf.mxu0  ;;  %v2695_v24 = vadd.f32 %v2694_v9, %v2693_v7 }
 0x190   : > { %v2696_v11 = vpop.f32.mrf.mxu1 }
 0x191   : > { %v2675_v12 = vpop.f32.mrf.mxu0  ;;  %v2116_v28 = vadd.f32 %v2695_v24, %v2673_v23 }
 0x192   : > { %v2697_v14 = vpop.f32.mrf.mxu1  ;;  %v2676_v29 = vadd.f32 %v2675_v12, %v2674_v10 }
 0x193   : > { %v2698_v30 = vadd.f32 %v2697_v14, %v2696_v11 }
 0x195   : > { %v2119_v36 = vadd.f32 %v2698_v30, %v2676_v29 }
 0x1ab   : > { %v2715_v13 = vpop.f32.mrf.mxu0 }
 0x1ac   : > { %v2737_v16 = vpop.f32.mrf.mxu1 }
 0x1ad   : > { %v2716_v15 = vpop.f32.mrf.mxu0 }
 0x1ae   : > { %v2738_v18 = vpop.f32.mrf.mxu1  ;;  %v2717_v27 = vadd.f32 %v2716_v15, %v2715_v13 }
 0x1af   : > { %v2718_v17 = vpop.f32.mrf.mxu0  ;;  %v2739_v34 = vadd.f32 %v2738_v18, %v2737_v16 }
 0x1b0   : > { %v2740_v20 = vpop.f32.mrf.mxu1  ;;  %v2157_v33 = vadd.f32 %v2717_v27, %v2116_v28 }
 0x1b1   : > { %v2719_v19 = vpop.f32.mrf.mxu0 }
 0x1b2   : > { %v2741_v22 = vpop.f32.mrf.mxu1  ;;  %v2720_v35 = vadd.f32 %v2719_v19, %v2718_v17  ;;  %v2198_v40 = vadd.f32 %v2739_v34, %v2157_v33 }
 0x1b3   : > { %v2742_v42 = vadd.f32 %v2741_v22, %v2740_v20 }
 0x1b4   : > { %v2160_v41 = vadd.f32 %v2720_v35, %v2119_v36 }
 0x1b6   : > { %v2201_v47 = vadd.f32 %v2742_v42, %v2160_v41 }
 0x1cb   : > { %v2759_v21 = vpop.f32.mrf.mxu0 }
 0x1cd   : > { %v2760_v25 = vpop.f32.mrf.mxu0  ;;  %v2781_v26 = vpop.f32.mrf.mxu1 }
 0x1ce   : > { %v2761_v37 = vadd.f32 %v2760_v25, %v2759_v21 }
 0x1cf   : > { %v2762_v31 = vpop.f32.mrf.mxu0  ;;  %v2782_v32 = vpop.f32.mrf.mxu1 }
 0x1d0   : > { %v2239_v43 = vadd.f32 %v2761_v37, %v2198_v40  ;;  %v2783_v44 = vadd.f32 %v2782_v32, %v2781_v26 }
 0x1d1   : > { %v2763_v38 = vpop.f32.mrf.mxu0  ;;  %v2784_v39 = vpop.f32.mrf.mxu1 }
 0x1d2   : > { %v2764_v45 = vadd.f32 %v2763_v38, %v2762_v31  ;;  %v2280_v50 = vadd.f32 %v2783_v44, %v2239_v43 }
 0x1d3   : > { %v2785_v46 = vpop.f32.mrf.mxu1 }
 0x1d4   : > { %v2242_v48 = vadd.f32 %v2764_v45, %v2201_v47  ;;  %v2786_v49 = vadd.f32 %v2785_v46, %v2784_v39 }
 0x1d6   : > { %v2283_v55 = vadd.f32 %v2786_v49, %v2242_v48 }
 0x1eb   : > { %v2320_v51 = vpop.f32.mrf.mxu0 }
 0x1ec   : > { %v2321_v52 = vadd.f32 %v2320_v51, %v2280_v50 }
 0x1ed   : > { %v2814_v54 = vpop.f32.mrf.mxu0 }
 0x1ee   : > { %v2343_v57 = vadd.f32 %v2641_v53, %v2321_v52 }
 0x1ef   : > { %v2323_v56 = vpop.f32.mrf.mxu0 }
 0x1f0   : > { %v2324_v58 = vadd.f32 %v2323_v56, %v2283_v55  ;;  %v2345_v61 = vmax.f32 %v2343_v57, 0.0 }
 0x1f1   : > { %v2815_v59 = vpop.f32.mrf.mxu0 }
 0x1f2   : > { %v2344_v60 = vadd.f32 %v2641_v53, %v2324_v58 }
 0x1f4   : > { %v2346_v62 = vmax.f32 %v2344_v60, 0.0  ;;  %2363 = sbr.rel (!%p3080_p6) target bundleno = 513 (0x201), region = 85 }
 0x1f6   : > { %v2653_v63 = vpack.c.bf16 %v2346_v62, %v2345_v61 }
 0x1f8   : > { %2654 = vst [vmem:[%s1101_s27] sm:$0xff] %v2653_v63  }
 0x1ff   : > { %v2385_v0 = vld [vmem:[%s1101_s27] sm:$0xf]  ;;  %v2387_v1 = vld [vmem:[%s1101_s27 + $0x4] sm:$0xf] }
 0x200   : > { %2386 = vst [vmem:[%s2368_s5] sm:$0xf] %v2385_v0  ;;  %2388 = vst [vmem:[%s2368_s5 + $0x8] sm:$0xf] %v2387_v1 }
 0x201 PF: > { %s13_s16 = sadd.s32 1, %s3021_s16   ;;  %s3696_s12 = smov %s3009_s13 }
 0x202   : > { %p10_p12 = scmp.ge.s32.totalorder %s13_s16, 4   ;;  %s3697_s13 = smov %s3085_s22 }
 0x203   : > { %s3698_s14 = smov %s3017_s15  ;;  %s3699_s15 = smov %s3701_s17 }
 0x204   :  { %12 = sbr.rel (!%p10_p12) target bundleno = 3 (0x3), region = 163 }

// kernel: vgg16_roihead_side2_forward.17
= control target key start
LH: loop header
LB: loop body
LE: loop exit
PB: predicated region body
PF: predicated region fallthrough
CT: control target
= control target key end

     0   :  { %v450_v0 = vmov 0.0   ;;  %vm451_vm0 = vmmov 0   ;;  %s562_s1 = inlined_call_operand.vmem [shape: bf16[384,128], index: 1, kind: input, shape index: {}]   ;;  %s563_s0 = inlined_call_operand.vmem [shape: bf16[16,384], index: 0, kind: input, shape index: {}]   ;;  %s564_s2 = inlined_call_operand.vmem [shape: f32[1,128], index: 2, kind: input, shape index: {}]   ;;  %s565_s3 = inlined_call_operand.vmem [shape: f32[16,128], index: 3, kind: output, shape index: {}]  }
   0x1   :  { %400 = vmatprep.subr.bf16.mxu1 %v450_v0  ;;  %v422_v1 = vld [vmem:[%s562_s1 + $0x78] sm:$0xff]   ;;  %416 = vmatprep.mubr.msk.bf16.mxu1 %vm451_vm0, %v450_v0  ;;  %v425_v4 = vld [vmem:[%s562_s1 + $0x70] sm:$0xff]   ;;  %v428_v7 = vld [vmem:[%s562_s1 + $0x68] sm:$0xff]  }
   0x2   :  { %v423_v2 = vld [vmem:[%s562_s1 + $0xb8] sm:$0xff]   ;;  %369 = vmatprep.subr.bf16.mxu0 %v422_v1  ;;  %v426_v5 = vld [vmem:[%s562_s1 + $0xb0] sm:$0xff]   ;;  %v429_v8 = vld [vmem:[%s562_s1 + $0xa8] sm:$0xff]  }
   0x3   :  { %v424_v3 = vld [vmem:[%s562_s1 + $0x38] sm:$0xff]   ;;  %401 = vmatpush3.bf16.msra.mxu1 %v423_v2  ;;  %v427_v6 = vld [vmem:[%s562_s1 + $0x30] sm:$0xff]   ;;  %v430_v9 = vld [vmem:[%s562_s1 + $0x28] sm:$0xff]  }
   0x4   :  { %370 = vmatpush3.bf16.msra.mxu0 %v424_v3  ;;  %402 = vmatprep.subr.bf16.mxu1 %v450_v0  ;;  %v431_v10 = vld [vmem:[%s562_s1 + $0x60] sm:$0xff]   ;;  %v434_v13 = vld [vmem:[%s562_s1 + $0x58] sm:$0xff]   ;;  %v437_v16 = vld [vmem:[%s562_s1 + $0x50] sm:$0xff]  }
   0x5   :  { %371 = vmatprep.subr.bf16.mxu0 %v425_v4  ;;  %v432_v11 = vld [vmem:[%s562_s1 + $0xa0] sm:$0xff]   ;;  %v435_v14 = vld [vmem:[%s562_s1 + $0x98] sm:$0xff]   ;;  %v438_v17 = vld [vmem:[%s562_s1 + $0x90] sm:$0xff]  }
   0x6   :  { %v433_v12 = vld [vmem:[%s562_s1 + $0x20] sm:$0xff]   ;;  %v436_v15 = vld [vmem:[%s562_s1 + $0x18] sm:$0xff]   ;;  %v439_v18 = vld [vmem:[%s562_s1 + $0x10] sm:$0xff]  }
   0x7   :  { %403 = vmatpush3.bf16.msra.mxu1 %v426_v5  ;;  %v440_v19 = vld [vmem:[%s562_s1 + $0x48] sm:$0xff]   ;;  %v443_v22 = vld [vmem:[%s562_s1 + $0x40] sm:$0xff]  }
   0x8   :  { %372 = vmatpush3.bf16.msra.mxu0 %v427_v6  ;;  %404 = vmatprep.subr.bf16.mxu1 %v450_v0  ;;  %v441_v20 = vld [vmem:[%s562_s1 + $0x88] sm:$0xff]   ;;  %v448_v23 = vld [vmem:[%s563_s0 + $0x4] ss:$12 sps:$4 sm:$0xff]   ;;  %v368_v34 = vld [vmem:[%s564_s2] ss:$0 sm:$0xff] }
   0x9   :  { %373 = vmatprep.subr.bf16.mxu0 %v428_v7  ;;  %v442_v21 = vld [vmem:[%s562_s1 + $0x8] sm:$0xff]   ;;  %v444_v24 = vld [vmem:[%s562_s1 + $0x80] sm:$0xff]   ;;  %267 = vmatprep.mubr.bf16.mxu0 %v448_v23 }
   0xa   :  { %v445_v25 = vld [vmem:[%s562_s1] sm:$0xff]   ;;  %v449_v26 = vld [vmem:[%s563_s0 + $0x8] ss:$12 sps:$4 sm:$0xff]  }
   0xb   :  { %405 = vmatpush3.bf16.msra.mxu1 %v429_v8  ;;  %v446_v27 = vld [vmem:[%s563_s0] ss:$12 sps:$4 sm:$0xff]  }
   0xc   :  { %374 = vmatpush3.bf16.msra.mxu0 %v430_v9  ;;  %406 = vmatprep.subr.bf16.mxu1 %v450_v0 }
   0xd   :  { %375 = vmatprep.subr.bf16.mxu0 %v431_v10 }
   0xf   :  { %407 = vmatpush3.bf16.msra.mxu1 %v432_v11 }
  0x10   :  { %376 = vmatpush3.bf16.msra.mxu0 %v433_v12  ;;  %408 = vmatprep.subr.bf16.mxu1 %v450_v0 }
  0x11   :  { %377 = vmatprep.subr.bf16.mxu0 %v434_v13 }
  0x13   :  { %409 = vmatpush3.bf16.msra.mxu1 %v435_v14 }
  0x14   :  { %378 = vmatpush3.bf16.msra.mxu0 %v436_v15  ;;  %410 = vmatprep.subr.bf16.mxu1 %v450_v0 }
  0x15   :  { %379 = vmatprep.subr.bf16.mxu0 %v437_v16 }
  0x17   :  { %411 = vmatpush3.bf16.msra.mxu1 %v438_v17 }
  0x18   :  { %380 = vmatpush3.bf16.msra.mxu0 %v439_v18  ;;  %412 = vmatprep.subr.bf16.mxu1 %v450_v0 }
  0x19   :  { %381 = vmatprep.subr.bf16.mxu0 %v440_v19 }
  0x1b   :  { %413 = vmatpush3.bf16.msra.mxu1 %v441_v20 }
  0x1c   :  { %382 = vmatpush3.bf16.msra.mxu0 %v442_v21  ;;  %414 = vmatprep.subr.bf16.mxu1 %v450_v0 }
  0x1d   :  { %383 = vmatprep.subr.bf16.mxu0 %v443_v22 }
  0x1f   :  { %415 = vmatpush3.bf16.msra.mxu1 %v444_v24 }
  0x20   :  { %384 = vmatpush3.bf16.msra.mxu0 %v445_v25 }
  0x22   :  { %417 = vmatmul.mubr.bf16.vlgmr.msra.gmra.mxu1 %v449_v26 }
  0x23   :  { %268 = vmatmul.mubr.bf16.vlgmr.msra.gmra.mxu0 %v446_v27 }
  0xe2   :  { %v310_v28 = vpop.f32.mrf.mxu1 }
  0xe3   :  { %v385_v29 = vpop.f32.mrf.mxu0 }
  0xe4   :  { %v418_v30 = vpop.f32.mrf.mxu1 }
  0xe5   :  { %v386_v31 = vpop.f32.mrf.mxu0 }
  0xe6   :  { %v387_v32 = vadd.f32 %v386_v31, %v385_v29  ;;  %v313_v33 = vpop.f32.mrf.mxu1 }
  0xe7   :  { %v388_v35 = vpop.f32.mrf.mxu0 }
  0xe8   :  { %v311_v36 = vadd.f32 %v387_v32, %v310_v28  ;;  %v419_v37 = vpop.f32.mrf.mxu1 }
  0xe9   :  { %v389_v38 = vpop.f32.mrf.mxu0 }
  0xea   :  { %v333_v39 = vadd.f32 %v368_v34, %v311_v36  ;;  %v390_v40 = vadd.f32 %v389_v38, %v388_v35 }
  0xec   :  { %335 = vst [vmem:[%s565_s3] sm:$0xff] %v333_v39  ;;  %v314_v41 = vadd.f32 %v390_v40, %v313_v33 }
  0xee   :  { %v334_v42 = vadd.f32 %v368_v34, %v314_v41 }
  0xf0   :  { %336 = vst [vmem:[%s565_s3 + $0x8] sm:$0xff] %v334_v42 }

</bundles_post_ra>
